<compile_context>
chip_gen: v7x
topology: tpu7x:2x2x1
jax: 0.10.0
libtpu: 0.0.40
codegen_flags: <defaults>
</compile_context>

<pallas_src>
import functools
import math

import jax
import jax.numpy as jnp
from jax.experimental import pallas as pl
from jax.experimental.pallas import tpu as pltpu

# ----------------------------- config ---------------------------------------
N_EMBD = 32      # C
N_HEAD = 4       # H
BLOCK_SIZE = 8   # max T (size of the registered causal-mask buffer)


# ----------------------------- kernel ---------------------------------------
def _attn_kernel(x_ref, wqkv_ref, bqkv_ref, wp_ref, bp_ref,
                 amask_ref, stackm_ref, segsel_ref, o_ref, *,
                 seq_len, n_head, group, approx_recip):
    """One grid step: a slab of Bt sequences flattened to (R, C) rows.

    x_ref:      (R, C)      with R = Bt * seq_len (b-major, t-minor row order)
    wqkv_ref:   (C, 3C)     fused [Wq*scale | Wk | Wv]  (compute dtype, bf16 default)
    bqkv_ref:   (1, 3C)     fused [bq*scale | bk | bv]  (f32)
    wp_ref:     (C, C)      projection weight (compute dtype)
    bp_ref:     (1, C)      projection bias (f32)
    amask_ref:  (GT, HGT)   additive causal+same-sequence mask, tiled per head (f32)
    stackm_ref: (HGT, C)    0/1 head routing mask for the stacked K/V operands (f32)
    segsel_ref: (H, HGT)    0/1 per-head lane-segment selectors (f32)
    o_ref:      (R, C)
    """
    R, C = x_ref.shape
    T, H, G = seq_len, n_head, group
    GT = G * T                 # rows per score chunk
    HGT = H * GT               # fused-head score width (lanes)
    n_chunks = R // GT
    cdt = wqkv_ref.dtype       # MXU operand dtype (bf16 default, f32 for exact path)

    # ---- fused QKV projection: one MXU matmul over the whole slab, f32 accum.
    x = x_ref[...].astype(cdt)
    qkv = jnp.dot(x, wqkv_ref[...], preferred_element_type=jnp.float32)
    qkv = qkv + bqkv_ref[...]                     # (R, 3C) f32
    q = qkv[:, :C]                                # 1/sqrt(D) folded into Wq
    k = qkv[:, C:2 * C]
    v = qkv[:, 2 * C:]

    # ---- loop-invariant constants (DMA'd once, resident; hoisted out of loops).
    amask = amask_ref[...]                        # (GT, HGT) f32 additive mask
    stackm = stackm_ref[...]                      # (HGT, C)  f32 0/1
    segsel = segsel_ref[...]                      # (H, HGT)  f32 0/1
    seg_f = [segsel[h:h + 1, :] for h in range(H)]
    seg_b = [sf > 0.5 for sf in seg_f]
    neg_big = jnp.float32(-1e30)

    # ---- chunked, head-fused attention.  Per chunk of G sequences:
    #   scores  (GT, HGT) = q_c @ (stacked, head-masked K)^T   -- one matmul
    #   softmax per 32-lane head segment (f32)
    #   y_c     (GT, C)   = P @ (stacked, head-masked V)       -- one matmul
    y_chunks = []
    for c in range(n_chunks):
        r0 = c * GT
        q_c = q[r0:r0 + GT, :]                    # (GT, C) f32, sublane slice
        k_c = k[r0:r0 + GT, :]
        v_c = v[r0:r0 + GT, :]

        # Head-stacked operands: row block h holds this chunk's K/V restricted to
        # head h's columns (the 0/1 mask routes heads; no width-8 lane slicing).
        k_stack = (jnp.concatenate([k_c] * H, axis=0) * stackm).astype(cdt)  # (HGT, C)
        v_stack = (jnp.concatenate([v_c] * H, axis=0) * stackm).astype(cdt)  # (HGT, C)

        # Fused per-head scores: s[r, h*GT + s'] = q_h[r] . k_h[s']   (f32 accum)
        s = jnp.einsum("rc,kc->rk", q_c.astype(cdt), k_stack,
                       preferred_element_type=jnp.float32)                   # (GT, HGT)
        s = s + amask

        # Segmented softmax over each head's 32-lane key segment, all in f32.
        m_b = 0.0
        for h in range(H):
            m_h = jnp.max(jnp.where(seg_b[h], s, neg_big), axis=-1, keepdims=True)
            m_b = m_b + m_h * seg_f[h]            # broadcast segment max back
        p = jnp.exp(s - m_b)                      # masked entries -> 0
        d_b = 0.0
        for h in range(H):
            d_h = jnp.sum(jnp.where(seg_b[h], p, 0.0), axis=-1, keepdims=True)
            d_b = d_b + d_h * seg_f[h]            # broadcast segment sum back
        if approx_recip:
            p = p * pl.reciprocal(d_b, approx=True)   # EUP slot, ~free
        else:
            p = p / d_b

        # Fused per-head PV: one (GT, HGT) x (HGT, C) matmul; head outputs land
        # directly in their own column block (no concat / scatter).
        y_chunks.append(
            jnp.einsum("rk,kc->rc", p.astype(cdt), v_stack,
                       preferred_element_type=jnp.float32))                  # (GT, C)

    y = y_chunks[0] if n_chunks == 1 else jnp.concatenate(y_chunks, axis=0)  # (R, C)

    out = jnp.dot(y.astype(cdt), wp_ref[...], preferred_element_type=jnp.float32)
    out = out + bp_ref[...]
    o_ref[...] = out.astype(o_ref.dtype)


# ----------------------------- wrapper ---------------------------------------
def causal_self_attention(x, params, *, block_rows=128,
                          compute_dtype=jnp.bfloat16, approx_recip=True):
    """x: (B, T, C).  params: wq/wk/wv/wp as (C, C), bq/bk/bv/bp as (1, C).

    block_rows:    target rows (Bt*T) per grid step.  The score/softmax stage is
                   chunked, so its cost is LINEAR in block_rows: on single-TC
                   v5e/v6e raise it (256-512, or Bt=B) to amortize the ~0.35us
                   per-step grid overhead; on v7x keep num_steps a multiple of 2
                   with >=3-4 steps per core so both TensorCores pipeline.
    compute_dtype: MXU-operand dtype (bf16 default -- the native high-rate MXU
                   path on v5e/v6e/v7x).  Accumulation, masks and softmax stay
                   f32.  Pass jnp.float32 for the exact path.
    approx_recip:  use pl.reciprocal(approx=True) for the softmax denominator
                   (~2^-12 rel. error); set False for bit-parity-style tests.
    """
    B, T, C = x.shape
    H = N_HEAD
    assert C == N_EMBD and C % H == 0
    assert T <= BLOCK_SIZE
    D = C // H
    scale = 1.0 / math.sqrt(D)

    w_dtype = compute_dtype

    # Fuse Q/K/V weights; fold the 1/sqrt(D) scale into the query projection so
    # the kernel never scales the score matrix.
    wqkv = jnp.concatenate(
        [params["wq"] * scale, params["wk"], params["wv"]], axis=1).astype(w_dtype)
    bqkv = jnp.concatenate(
        [params["bq"] * scale, params["bk"], params["bv"]], axis=1).astype(jnp.float32)
    wp = params["wp"].astype(w_dtype)
    bp = params["bp"].astype(jnp.float32)

    # ---- score-stage chunking: G sequences per chunk so the fused per-chunk
    # score tile is (G*T, H*G*T) with the lane dimension (~128) fully packed.
    g_align = 8 // math.gcd(T, 8)              # keep G*T a multiple of 8 (sublanes)
    G = max(1, (128 // H) // T)                # ~32-lane key segment per head
    G = max(g_align, (G // g_align) * g_align)
    GT = G * T
    HGT = H * GT

    # ---- batch tiling: Bt sequences (a multiple of G) per grid step.
    Bt = G * max(1, block_rows // GT)
    R = Bt * T
    num_steps = pl.cdiv(B, Bt)
    Bpad = num_steps * Bt
    if Bpad != B:
        x = jnp.pad(x, ((0, Bpad - B), (0, 0), (0, 0)))   # padded rows discarded
    x2d = x.reshape(Bpad * T, C)

    # ---- loop-invariant constants, hoisted out of the kernel (resident inputs).
    r_idx = jnp.arange(GT)
    allowed = ((r_idx[:, None] // T) == (r_idx[None, :] // T)) & \
              (r_idx[None, :] <= r_idx[:, None])
    amask_chunk = jnp.where(allowed, 0.0, -1e30).astype(jnp.float32)       # (GT, GT)
    amask = jnp.tile(amask_chunk, (1, H))                                  # (GT, HGT)
    head_of_row = jnp.arange(HGT) // GT
    head_of_col = jnp.arange(C) // D
    stackm = (head_of_row[:, None] == head_of_col[None, :]).astype(jnp.float32)  # (HGT, C)
    segsel = (jnp.arange(H)[:, None] == head_of_row[None, :]).astype(jnp.float32)  # (H, HGT)

    kernel = functools.partial(_attn_kernel, seq_len=T, n_head=H, group=G,
                               approx_recip=approx_recip)

    out2d = pl.pallas_call(
        kernel,
        out_shape=jax.ShapeDtypeStruct((Bpad * T, C), x.dtype),
        grid_spec=pltpu.PrefetchScalarGridSpec(
            num_scalar_prefetch=0,
            grid=(num_steps,),
            in_specs=[
                pl.BlockSpec((R, C), lambda i: (i, 0)),          # x row slab
                pl.BlockSpec((C, 3 * C), lambda i: (0, 0)),      # fused Wqkv (resident)
                pl.BlockSpec((1, 3 * C), lambda i: (0, 0)),      # fused bias
                pl.BlockSpec((C, C), lambda i: (0, 0)),          # Wproj
                pl.BlockSpec((1, C), lambda i: (0, 0)),          # bproj
                pl.BlockSpec((GT, HGT), lambda i: (0, 0)),       # additive mask
                pl.BlockSpec((HGT, C), lambda i: (0, 0)),        # head routing mask
                pl.BlockSpec((H, HGT), lambda i: (0, 0)),        # segment selectors
            ],
            out_specs=pl.BlockSpec((R, C), lambda i: (i, 0)),
        ),
        compiler_params=pltpu.CompilerParams(
            dimension_semantics=("parallel",)),   # megacore sharding on v7x
    )(x2d, wqkv, bqkv, wp, bp, amask, stackm, segsel)

    return out2d.reshape(Bpad, T, C)[:B]


# ----------------------------- reference -------------------------------------
def causal_self_attention_ref(x, params):
    B, T, C = x.shape
    H = N_HEAD
    D = C // H
    q = x @ params["wq"] + params["bq"]
    k = x @ params["wk"] + params["bk"]
    v = x @ params["wv"] + params["bv"]
    q = q.reshape(B, T, H, D).transpose(0, 2, 1, 3)
    k = k.reshape(B, T, H, D).transpose(0, 2, 1, 3)
    v = v.reshape(B, T, H, D).transpose(0, 2, 1, 3)
    att = (q @ k.transpose(0, 1, 3, 2)) * (1.0 / math.sqrt(D))
    mask = jnp.tril(jnp.ones((T, T), dtype=bool))
    att = jnp.where(mask[None, None], att, -jnp.inf)
    att = jax.nn.softmax(att, axis=-1)
    y = (att @ v).transpose(0, 2, 1, 3).reshape(B, T, C)
    return y @ params["wp"] + params["bp"]


# ----------------------------- main ------------------------------------------
if __name__ == "__main__":
    key = jax.random.PRNGKey(0)
    kx, *kw = jax.random.split(key, 10)

    B, T, C = 32, 8, N_EMBD          # 32 sequences -> 2 grid steps of 128 rows
    x = jax.random.normal(kx, (B, T, C), dtype=jnp.float32)

    bound = 1.0 / math.sqrt(C)       # nn.Linear default init range
    def lin(k):
        kw_, kb_ = jax.random.split(k)
        W = jax.random.uniform(kw_, (C, C), jnp.float32, -bound, bound)
        b = jax.random.uniform(kb_, (1, C), jnp.float32, -bound, bound)
        return W, b

    wq, bq = lin(kw[0]); wk, bk = lin(kw[1]); wv, bv = lin(kw[2]); wp, bp = lin(kw[3])
    params = dict(wq=wq, bq=bq, wk=wk, bk=bk, wv=wv, bv=bv, wp=wp, bp=bp)

    ref = causal_self_attention_ref(x, params)

    # Default bf16 MXU-operand path (f32 accumulation / f32 softmax).
    out_bf16 = jax.block_until_ready(causal_self_attention(x, params))
    assert out_bf16.shape == ref.shape
    assert jnp.allclose(out_bf16, ref, atol=3e-2, rtol=3e-2), "bf16 path mismatch vs reference"

    # Exact f32 path (tolerance covers the approx-reciprocal softmax).
    out_f32 = jax.block_until_ready(
        causal_self_attention(x, params, compute_dtype=jnp.float32))
    assert jnp.allclose(out_f32, ref, atol=5e-3, rtol=5e-3), "f32 path mismatch vs reference"

    print("KERNEL_OK")
</pallas_src>

<mosaic_0001>
module attributes {stable_mosaic.version = 11 : i64} {
  func.func @_attn_kernel(%arg0: i32, %arg1: memref<128x32xf32, #tpu.memory_space<vmem>>, %arg2: memref<32x96xbf16, #tpu.memory_space<vmem>>, %arg3: memref<1x96xf32, #tpu.memory_space<vmem>>, %arg4: memref<32x32xbf16, #tpu.memory_space<vmem>>, %arg5: memref<1x32xf32, #tpu.memory_space<vmem>>, %arg6: memref<32x128xf32, #tpu.memory_space<vmem>>, %arg7: memref<128x32xf32, #tpu.memory_space<vmem>>, %arg8: memref<4x128xf32, #tpu.memory_space<vmem>>, %arg9: memref<128x32xf32, #tpu.memory_space<vmem>>) attributes {dimension_semantics = [#tpu.dimension_semantics<parallel>], iteration_bounds = array<i64: 2>, scalar_prefetch = 0 : i64, scratch_operands = 0 : i64, tpu.core_type = #tpu.core_type<tc>, window_params = [{transform_indices = @transform_0, window_bounds = array<i64: 128, 32>}, {pipeline_mode = #tpu.pipeline_mode<synchronous>, transform_indices = @transform_1, window_bounds = array<i64: 32, 96>}, {pipeline_mode = #tpu.pipeline_mode<synchronous>, transform_indices = @transform_2, window_bounds = array<i64: 1, 96>}, {pipeline_mode = #tpu.pipeline_mode<synchronous>, transform_indices = @transform_3, window_bounds = array<i64: 32, 32>}, {pipeline_mode = #tpu.pipeline_mode<synchronous>, transform_indices = @transform_4, window_bounds = array<i64: 1, 32>}, {pipeline_mode = #tpu.pipeline_mode<synchronous>, transform_indices = @transform_5, window_bounds = array<i64: 32, 128>}, {pipeline_mode = #tpu.pipeline_mode<synchronous>, transform_indices = @transform_6, window_bounds = array<i64: 128, 32>}, {pipeline_mode = #tpu.pipeline_mode<synchronous>, transform_indices = @transform_7, window_bounds = array<i64: 4, 128>}, {transform_indices = @transform_8, window_bounds = array<i64: 128, 32>}]} {
    %c0 = arith.constant 0 : index
    %c0_0 = arith.constant 0 : index
    %0 = vector.load %arg1[%c0, %c0_0] : memref<128x32xf32, #tpu.memory_space<vmem>>, vector<128x32xf32>
    %1 = arith.truncf %0 : vector<128x32xf32> to vector<128x32xbf16>
    %c0_1 = arith.constant 0 : index
    %c0_2 = arith.constant 0 : index
    %2 = vector.load %arg2[%c0_1, %c0_2] : memref<32x96xbf16, #tpu.memory_space<vmem>>, vector<32x96xbf16>
    %cst = arith.constant dense<0.000000e+00> : vector<128x96xf32>
    %3 = tpu.matmul %1, %2, %cst {dimension_numbers = #tpu.dot_dimension_numbers<[1], [0], [0], [1], [0, 0, 1, 1], [], []>} : vector<128x32xbf16>, vector<32x96xbf16>, vector<128x96xf32> -> vector<128x96xf32>
    %c0_3 = arith.constant 0 : index
    %c0_4 = arith.constant 0 : index
    %4 = vector.load %arg3[%c0_3, %c0_4] : memref<1x96xf32, #tpu.memory_space<vmem>>, vector<1x96xf32>
    %5 = vector.broadcast %4 : vector<1x96xf32> to vector<128x96xf32>
    %6 = arith.addf %3, %5 : vector<128x96xf32>
    %7 = vector.extract_strided_slice %6 {offsets = [0, 0], sizes = [128, 32], strides = [1, 1]} : vector<128x96xf32> to vector<128x32xf32>
    %8 = vector.extract_strided_slice %6 {offsets = [0, 32], sizes = [128, 32], strides = [1, 1]} : vector<128x96xf32> to vector<128x32xf32>
    %9 = vector.extract_strided_slice %6 {offsets = [0, 64], sizes = [128, 32], strides = [1, 1]} : vector<128x96xf32> to vector<128x32xf32>
    %c0_5 = arith.constant 0 : index
    %c0_6 = arith.constant 0 : index
    %10 = vector.load %arg6[%c0_5, %c0_6] : memref<32x128xf32, #tpu.memory_space<vmem>>, vector<32x128xf32>
    %c0_7 = arith.constant 0 : index
    %c0_8 = arith.constant 0 : index
    %11 = vector.load %arg7[%c0_7, %c0_8] : memref<128x32xf32, #tpu.memory_space<vmem>>, vector<128x32xf32>
    %c0_9 = arith.constant 0 : index
    %c0_10 = arith.constant 0 : index
    %12 = vector.load %arg8[%c0_9, %c0_10] : memref<4x128xf32, #tpu.memory_space<vmem>>, vector<4x128xf32>
    %13 = vector.extract_strided_slice %12 {offsets = [0, 0], sizes = [1, 128], strides = [1, 1]} : vector<4x128xf32> to vector<1x128xf32>
    %14 = vector.extract_strided_slice %12 {offsets = [1, 0], sizes = [1, 128], strides = [1, 1]} : vector<4x128xf32> to vector<1x128xf32>
    %15 = vector.extract_strided_slice %12 {offsets = [2, 0], sizes = [1, 128], strides = [1, 1]} : vector<4x128xf32> to vector<1x128xf32>
    %16 = vector.extract_strided_slice %12 {offsets = [3, 0], sizes = [1, 128], strides = [1, 1]} : vector<4x128xf32> to vector<1x128xf32>
    %cst_11 = arith.constant 5.000000e-01 : f32
    %17 = vector.broadcast %cst_11 : f32 to vector<1x128xf32>
    %18 = arith.cmpf ogt, %13, %17 : vector<1x128xf32>
    %cst_12 = arith.constant 5.000000e-01 : f32
    %19 = vector.broadcast %cst_12 : f32 to vector<1x128xf32>
    %20 = arith.cmpf ogt, %14, %19 : vector<1x128xf32>
    %cst_13 = arith.constant 5.000000e-01 : f32
    %21 = vector.broadcast %cst_13 : f32 to vector<1x128xf32>
    %22 = arith.cmpf ogt, %15, %21 : vector<1x128xf32>
    %cst_14 = arith.constant 5.000000e-01 : f32
    %23 = vector.broadcast %cst_14 : f32 to vector<1x128xf32>
    %24 = arith.cmpf ogt, %16, %23 : vector<1x128xf32>
    %25 = vector.extract_strided_slice %7 {offsets = [0, 0], sizes = [32, 32], strides = [1, 1]} : vector<128x32xf32> to vector<32x32xf32>
    %26 = vector.extract_strided_slice %8 {offsets = [0, 0], sizes = [32, 32], strides = [1, 1]} : vector<128x32xf32> to vector<32x32xf32>
    %27 = vector.extract_strided_slice %9 {offsets = [0, 0], sizes = [32, 32], strides = [1, 1]} : vector<128x32xf32> to vector<32x32xf32>
    %28 = tpu.concatenate %26, %26, %26, %26 in 0 : vector<32x32xf32>, vector<32x32xf32>, vector<32x32xf32>, vector<32x32xf32> -> vector<128x32xf32>
    %29 = arith.mulf %28, %11 : vector<128x32xf32>
    %30 = arith.truncf %29 : vector<128x32xf32> to vector<128x32xbf16>
    %31 = tpu.concatenate %27, %27, %27, %27 in 0 : vector<32x32xf32>, vector<32x32xf32>, vector<32x32xf32>, vector<32x32xf32> -> vector<128x32xf32>
    %32 = arith.mulf %31, %11 : vector<128x32xf32>
    %33 = arith.truncf %32 : vector<128x32xf32> to vector<128x32xbf16>
    %34 = arith.truncf %25 : vector<32x32xf32> to vector<32x32xbf16>
    "tpu.trace_start"() <{level = 10 : i32, message = "rc,kc->rk"}> : () -> ()
    %cst_15 = arith.constant dense<0.000000e+00> : vector<32x128xf32>
    %35 = tpu.matmul %34, %30, %cst_15 {dimension_numbers = #tpu.dot_dimension_numbers<[1], [1], [0], [0], [0, 0, 1, 0], [], []>} : vector<32x32xbf16>, vector<128x32xbf16>, vector<32x128xf32> -> vector<32x128xf32>
    "tpu.trace_stop"() : () -> ()
    %36 = arith.addf %35, %10 : vector<32x128xf32>
    %cst_16 = arith.constant -1.000000e+30 : f32
    %37 = vector.shape_cast %18 : vector<1x128xi1> to vector<1x128xi1>
    %38 = vector.broadcast %37 : vector<1x128xi1> to vector<32x128xi1>
    %39 = vector.broadcast %cst_16 : f32 to vector<32x128xf32>
    %40 = arith.select %38, %36, %39 : vector<32x128xi1>, vector<32x128xf32>
    %cst_17 = arith.constant dense<0xFF800000> : vector<32xf32>
    %41 = vector.multi_reduction <maximumf>, %40, %cst_17 [1] : vector<32x128xf32> to vector<32xf32>
    %42 = vector.shape_cast %41 : vector<32xf32> to vector<32x1xf32>
    %43 = vector.broadcast %42 : vector<32x1xf32> to vector<32x128xf32>
    %44 = vector.broadcast %13 : vector<1x128xf32> to vector<32x128xf32>
    %45 = arith.mulf %43, %44 : vector<32x128xf32>
    %cst_18 = arith.constant 0.000000e+00 : f32
    %46 = vector.broadcast %cst_18 : f32 to vector<32x128xf32>
    %47 = arith.addf %46, %45 : vector<32x128xf32>
    %cst_19 = arith.constant -1.000000e+30 : f32
    %48 = vector.shape_cast %20 : vector<1x128xi1> to vector<1x128xi1>
    %49 = vector.broadcast %48 : vector<1x128xi1> to vector<32x128xi1>
    %50 = vector.broadcast %cst_19 : f32 to vector<32x128xf32>
    %51 = arith.select %49, %36, %50 : vector<32x128xi1>, vector<32x128xf32>
    %cst_20 = arith.constant dense<0xFF800000> : vector<32xf32>
    %52 = vector.multi_reduction <maximumf>, %51, %cst_20 [1] : vector<32x128xf32> to vector<32xf32>
    %53 = vector.shape_cast %52 : vector<32xf32> to vector<32x1xf32>
    %54 = vector.broadcast %53 : vector<32x1xf32> to vector<32x128xf32>
    %55 = vector.broadcast %14 : vector<1x128xf32> to vector<32x128xf32>
    %56 = arith.mulf %54, %55 : vector<32x128xf32>
    %57 = arith.addf %47, %56 : vector<32x128xf32>
    %cst_21 = arith.constant -1.000000e+30 : f32
    %58 = vector.shape_cast %22 : vector<1x128xi1> to vector<1x128xi1>
    %59 = vector.broadcast %58 : vector<1x128xi1> to vector<32x128xi1>
    %60 = vector.broadcast %cst_21 : f32 to vector<32x128xf32>
    %61 = arith.select %59, %36, %60 : vector<32x128xi1>, vector<32x128xf32>
    %cst_22 = arith.constant dense<0xFF800000> : vector<32xf32>
    %62 = vector.multi_reduction <maximumf>, %61, %cst_22 [1] : vector<32x128xf32> to vector<32xf32>
    %63 = vector.shape_cast %62 : vector<32xf32> to vector<32x1xf32>
    %64 = vector.broadcast %63 : vector<32x1xf32> to vector<32x128xf32>
    %65 = vector.broadcast %15 : vector<1x128xf32> to vector<32x128xf32>
    %66 = arith.mulf %64, %65 : vector<32x128xf32>
    %67 = arith.addf %57, %66 : vector<32x128xf32>
    %cst_23 = arith.constant -1.000000e+30 : f32
    %68 = vector.shape_cast %24 : vector<1x128xi1> to vector<1x128xi1>
    %69 = vector.broadcast %68 : vector<1x128xi1> to vector<32x128xi1>
    %70 = vector.broadcast %cst_23 : f32 to vector<32x128xf32>
    %71 = arith.select %69, %36, %70 : vector<32x128xi1>, vector<32x128xf32>
    %cst_24 = arith.constant dense<0xFF800000> : vector<32xf32>
    %72 = vector.multi_reduction <maximumf>, %71, %cst_24 [1] : vector<32x128xf32> to vector<32xf32>
    %73 = vector.shape_cast %72 : vector<32xf32> to vector<32x1xf32>
    %74 = vector.broadcast %73 : vector<32x1xf32> to vector<32x128xf32>
    %75 = vector.broadcast %16 : vector<1x128xf32> to vector<32x128xf32>
    %76 = arith.mulf %74, %75 : vector<32x128xf32>
    %77 = arith.addf %67, %76 : vector<32x128xf32>
    %78 = arith.subf %36, %77 : vector<32x128xf32>
    %79 = math.exp %78 : vector<32x128xf32>
    %cst_25 = arith.constant 0.000000e+00 : f32
    %80 = vector.shape_cast %18 : vector<1x128xi1> to vector<1x128xi1>
    %81 = vector.broadcast %80 : vector<1x128xi1> to vector<32x128xi1>
    %82 = vector.broadcast %cst_25 : f32 to vector<32x128xf32>
    %83 = arith.select %81, %79, %82 : vector<32x128xi1>, vector<32x128xf32>
    %cst_26 = arith.constant dense<0.000000e+00> : vector<32xf32>
    %84 = vector.multi_reduction <add>, %83, %cst_26 [1] : vector<32x128xf32> to vector<32xf32>
    %85 = vector.shape_cast %84 : vector<32xf32> to vector<32x1xf32>
    %86 = vector.broadcast %85 : vector<32x1xf32> to vector<32x128xf32>
    %87 = vector.broadcast %13 : vector<1x128xf32> to vector<32x128xf32>
    %88 = arith.mulf %86, %87 : vector<32x128xf32>
    %cst_27 = arith.constant 0.000000e+00 : f32
    %89 = vector.broadcast %cst_27 : f32 to vector<32x128xf32>
    %90 = arith.addf %89, %88 : vector<32x128xf32>
    %cst_28 = arith.constant 0.000000e+00 : f32
    %91 = vector.shape_cast %20 : vector<1x128xi1> to vector<1x128xi1>
    %92 = vector.broadcast %91 : vector<1x128xi1> to vector<32x128xi1>
    %93 = vector.broadcast %cst_28 : f32 to vector<32x128xf32>
    %94 = arith.select %92, %79, %93 : vector<32x128xi1>, vector<32x128xf32>
    %cst_29 = arith.constant dense<0.000000e+00> : vector<32xf32>
    %95 = vector.multi_reduction <add>, %94, %cst_29 [1] : vector<32x128xf32> to vector<32xf32>
    %96 = vector.shape_cast %95 : vector<32xf32> to vector<32x1xf32>
    %97 = vector.broadcast %96 : vector<32x1xf32> to vector<32x128xf32>
    %98 = vector.broadcast %14 : vector<1x128xf32> to vector<32x128xf32>
    %99 = arith.mulf %97, %98 : vector<32x128xf32>
    %100 = arith.addf %90, %99 : vector<32x128xf32>
    %cst_30 = arith.constant 0.000000e+00 : f32
    %101 = vector.shape_cast %22 : vector<1x128xi1> to vector<1x128xi1>
    %102 = vector.broadcast %101 : vector<1x128xi1> to vector<32x128xi1>
    %103 = vector.broadcast %cst_30 : f32 to vector<32x128xf32>
    %104 = arith.select %102, %79, %103 : vector<32x128xi1>, vector<32x128xf32>
    %cst_31 = arith.constant dense<0.000000e+00> : vector<32xf32>
    %105 = vector.multi_reduction <add>, %104, %cst_31 [1] : vector<32x128xf32> to vector<32xf32>
    %106 = vector.shape_cast %105 : vector<32xf32> to vector<32x1xf32>
    %107 = vector.broadcast %106 : vector<32x1xf32> to vector<32x128xf32>
    %108 = vector.broadcast %15 : vector<1x128xf32> to vector<32x128xf32>
    %109 = arith.mulf %107, %108 : vector<32x128xf32>
    %110 = arith.addf %100, %109 : vector<32x128xf32>
    %cst_32 = arith.constant 0.000000e+00 : f32
    %111 = vector.shape_cast %24 : vector<1x128xi1> to vector<1x128xi1>
    %112 = vector.broadcast %111 : vector<1x128xi1> to vector<32x128xi1>
    %113 = vector.broadcast %cst_32 : f32 to vector<32x128xf32>
    %114 = arith.select %112, %79, %113 : vector<32x128xi1>, vector<32x128xf32>
    %cst_33 = arith.constant dense<0.000000e+00> : vector<32xf32>
    %115 = vector.multi_reduction <add>, %114, %cst_33 [1] : vector<32x128xf32> to vector<32xf32>
    %116 = vector.shape_cast %115 : vector<32xf32> to vector<32x1xf32>
    %117 = vector.broadcast %116 : vector<32x1xf32> to vector<32x128xf32>
    %118 = vector.broadcast %16 : vector<1x128xf32> to vector<32x128xf32>
    %119 = arith.mulf %117, %118 : vector<32x128xf32>
    %120 = arith.addf %110, %119 : vector<32x128xf32>
    %121 = tpu.reciprocal %120 {approx = true} : vector<32x128xf32> -> vector<32x128xf32>
    %122 = arith.mulf %79, %121 : vector<32x128xf32>
    %123 = arith.truncf %122 : vector<32x128xf32> to vector<32x128xbf16>
    "tpu.trace_start"() <{level = 10 : i32, message = "rk,kc->rc"}> : () -> ()
    %cst_34 = arith.constant dense<0.000000e+00> : vector<32x32xf32>
    %124 = tpu.matmul %123, %33, %cst_34 {dimension_numbers = #tpu.dot_dimension_numbers<[1], [0], [0], [1], [0, 0, 1, 1], [], []>} : vector<32x128xbf16>, vector<128x32xbf16>, vector<32x32xf32> -> vector<32x32xf32>
    "tpu.trace_stop"() : () -> ()
    %125 = vector.extract_strided_slice %7 {offsets = [32, 0], sizes = [32, 32], strides = [1, 1]} : vector<128x32xf32> to vector<32x32xf32>
    %126 = vector.extract_strided_slice %8 {offsets = [32, 0], sizes = [32, 32], strides = [1, 1]} : vector<128x32xf32> to vector<32x32xf32>
    %127 = vector.extract_strided_slice %9 {offsets = [32, 0], sizes = [32, 32], strides = [1, 1]} : vector<128x32xf32> to vector<32x32xf32>
    %128 = tpu.concatenate %126, %126, %126, %126 in 0 : vector<32x32xf32>, vector<32x32xf32>, vector<32x32xf32>, vector<32x32xf32> -> vector<128x32xf32>
    %129 = arith.mulf %128, %11 : vector<128x32xf32>
    %130 = arith.truncf %129 : vector<128x32xf32> to vector<128x32xbf16>
    %131 = tpu.concatenate %127, %127, %127, %127 in 0 : vector<32x32xf32>, vector<32x32xf32>, vector<32x32xf32>, vector<32x32xf32> -> vector<128x32xf32>
    %132 = arith.mulf %131, %11 : vector<128x32xf32>
    %133 = arith.truncf %132 : vector<128x32xf32> to vector<128x32xbf16>
    %134 = arith.truncf %125 : vector<32x32xf32> to vector<32x32xbf16>
    "tpu.trace_start"() <{level = 10 : i32, message = "rc,kc->rk"}> : () -> ()
    %cst_35 = arith.constant dense<0.000000e+00> : vector<32x128xf32>
    %135 = tpu.matmul %134, %130, %cst_35 {dimension_numbers = #tpu.dot_dimension_numbers<[1], [1], [0], [0], [0, 0, 1, 0], [], []>} : vector<32x32xbf16>, vector<128x32xbf16>, vector<32x128xf32> -> vector<32x128xf32>
    "tpu.trace_stop"() : () -> ()
    %136 = arith.addf %135, %10 : vector<32x128xf32>
    %cst_36 = arith.constant -1.000000e+30 : f32
    %137 = vector.shape_cast %18 : vector<1x128xi1> to vector<1x128xi1>
    %138 = vector.broadcast %137 : vector<1x128xi1> to vector<32x128xi1>
    %139 = vector.broadcast %cst_36 : f32 to vector<32x128xf32>
    %140 = arith.select %138, %136, %139 : vector<32x128xi1>, vector<32x128xf32>
    %cst_37 = arith.constant dense<0xFF800000> : vector<32xf32>
    %141 = vector.multi_reduction <maximumf>, %140, %cst_37 [1] : vector<32x128xf32> to vector<32xf32>
    %142 = vector.shape_cast %141 : vector<32xf32> to vector<32x1xf32>
    %143 = vector.broadcast %142 : vector<32x1xf32> to vector<32x128xf32>
    %144 = vector.broadcast %13 : vector<1x128xf32> to vector<32x128xf32>
    %145 = arith.mulf %143, %144 : vector<32x128xf32>
    %cst_38 = arith.constant 0.000000e+00 : f32
    %146 = vector.broadcast %cst_38 : f32 to vector<32x128xf32>
    %147 = arith.addf %146, %145 : vector<32x128xf32>
    %cst_39 = arith.constant -1.000000e+30 : f32
    %148 = vector.shape_cast %20 : vector<1x128xi1> to vector<1x128xi1>
    %149 = vector.broadcast %148 : vector<1x128xi1> to vector<32x128xi1>
    %150 = vector.broadcast %cst_39 : f32 to vector<32x128xf32>
    %151 = arith.select %149, %136, %150 : vector<32x128xi1>, vector<32x128xf32>
    %cst_40 = arith.constant dense<0xFF800000> : vector<32xf32>
    %152 = vector.multi_reduction <maximumf>, %151, %cst_40 [1] : vector<32x128xf32> to vector<32xf32>
    %153 = vector.shape_cast %152 : vector<32xf32> to vector<32x1xf32>
    %154 = vector.broadcast %153 : vector<32x1xf32> to vector<32x128xf32>
    %155 = vector.broadcast %14 : vector<1x128xf32> to vector<32x128xf32>
    %156 = arith.mulf %154, %155 : vector<32x128xf32>
    %157 = arith.addf %147, %156 : vector<32x128xf32>
    %cst_41 = arith.constant -1.000000e+30 : f32
    %158 = vector.shape_cast %22 : vector<1x128xi1> to vector<1x128xi1>
    %159 = vector.broadcast %158 : vector<1x128xi1> to vector<32x128xi1>
    %160 = vector.broadcast %cst_41 : f32 to vector<32x128xf32>
    %161 = arith.select %159, %136, %160 : vector<32x128xi1>, vector<32x128xf32>
    %cst_42 = arith.constant dense<0xFF800000> : vector<32xf32>
    %162 = vector.multi_reduction <maximumf>, %161, %cst_42 [1] : vector<32x128xf32> to vector<32xf32>
    %163 = vector.shape_cast %162 : vector<32xf32> to vector<32x1xf32>
    %164 = vector.broadcast %163 : vector<32x1xf32> to vector<32x128xf32>
    %165 = vector.broadcast %15 : vector<1x128xf32> to vector<32x128xf32>
    %166 = arith.mulf %164, %165 : vector<32x128xf32>
    %167 = arith.addf %157, %166 : vector<32x128xf32>
    %cst_43 = arith.constant -1.000000e+30 : f32
    %168 = vector.shape_cast %24 : vector<1x128xi1> to vector<1x128xi1>
    %169 = vector.broadcast %168 : vector<1x128xi1> to vector<32x128xi1>
    %170 = vector.broadcast %cst_43 : f32 to vector<32x128xf32>
    %171 = arith.select %169, %136, %170 : vector<32x128xi1>, vector<32x128xf32>
    %cst_44 = arith.constant dense<0xFF800000> : vector<32xf32>
    %172 = vector.multi_reduction <maximumf>, %171, %cst_44 [1] : vector<32x128xf32> to vector<32xf32>
    %173 = vector.shape_cast %172 : vector<32xf32> to vector<32x1xf32>
    %174 = vector.broadcast %173 : vector<32x1xf32> to vector<32x128xf32>
    %175 = vector.broadcast %16 : vector<1x128xf32> to vector<32x128xf32>
    %176 = arith.mulf %174, %175 : vector<32x128xf32>
    %177 = arith.addf %167, %176 : vector<32x128xf32>
    %178 = arith.subf %136, %177 : vector<32x128xf32>
    %179 = math.exp %178 : vector<32x128xf32>
    %cst_45 = arith.constant 0.000000e+00 : f32
    %180 = vector.shape_cast %18 : vector<1x128xi1> to vector<1x128xi1>
    %181 = vector.broadcast %180 : vector<1x128xi1> to vector<32x128xi1>
    %182 = vector.broadcast %cst_45 : f32 to vector<32x128xf32>
    %183 = arith.select %181, %179, %182 : vector<32x128xi1>, vector<32x128xf32>
    %cst_46 = arith.constant dense<0.000000e+00> : vector<32xf32>
    %184 = vector.multi_reduction <add>, %183, %cst_46 [1] : vector<32x128xf32> to vector<32xf32>
    %185 = vector.shape_cast %184 : vector<32xf32> to vector<32x1xf32>
    %186 = vector.broadcast %185 : vector<32x1xf32> to vector<32x128xf32>
    %187 = vector.broadcast %13 : vector<1x128xf32> to vector<32x128xf32>
    %188 = arith.mulf %186, %187 : vector<32x128xf32>
    %cst_47 = arith.constant 0.000000e+00 : f32
    %189 = vector.broadcast %cst_47 : f32 to vector<32x128xf32>
    %190 = arith.addf %189, %188 : vector<32x128xf32>
    %cst_48 = arith.constant 0.000000e+00 : f32
    %191 = vector.shape_cast %20 : vector<1x128xi1> to vector<1x128xi1>
    %192 = vector.broadcast %191 : vector<1x128xi1> to vector<32x128xi1>
    %193 = vector.broadcast %cst_48 : f32 to vector<32x128xf32>
    %194 = arith.select %192, %179, %193 : vector<32x128xi1>, vector<32x128xf32>
    %cst_49 = arith.constant dense<0.000000e+00> : vector<32xf32>
    %195 = vector.multi_reduction <add>, %194, %cst_49 [1] : vector<32x128xf32> to vector<32xf32>
    %196 = vector.shape_cast %195 : vector<32xf32> to vector<32x1xf32>
    %197 = vector.broadcast %196 : vector<32x1xf32> to vector<32x128xf32>
    %198 = vector.broadcast %14 : vector<1x128xf32> to vector<32x128xf32>
    %199 = arith.mulf %197, %198 : vector<32x128xf32>
    %200 = arith.addf %190, %199 : vector<32x128xf32>
    %cst_50 = arith.constant 0.000000e+00 : f32
    %201 = vector.shape_cast %22 : vector<1x128xi1> to vector<1x128xi1>
    %202 = vector.broadcast %201 : vector<1x128xi1> to vector<32x128xi1>
    %203 = vector.broadcast %cst_50 : f32 to vector<32x128xf32>
    %204 = arith.select %202, %179, %203 : vector<32x128xi1>, vector<32x128xf32>
    %cst_51 = arith.constant dense<0.000000e+00> : vector<32xf32>
    %205 = vector.multi_reduction <add>, %204, %cst_51 [1] : vector<32x128xf32> to vector<32xf32>
    %206 = vector.shape_cast %205 : vector<32xf32> to vector<32x1xf32>
    %207 = vector.broadcast %206 : vector<32x1xf32> to vector<32x128xf32>
    %208 = vector.broadcast %15 : vector<1x128xf32> to vector<32x128xf32>
    %209 = arith.mulf %207, %208 : vector<32x128xf32>
    %210 = arith.addf %200, %209 : vector<32x128xf32>
    %cst_52 = arith.constant 0.000000e+00 : f32
    %211 = vector.shape_cast %24 : vector<1x128xi1> to vector<1x128xi1>
    %212 = vector.broadcast %211 : vector<1x128xi1> to vector<32x128xi1>
    %213 = vector.broadcast %cst_52 : f32 to vector<32x128xf32>
    %214 = arith.select %212, %179, %213 : vector<32x128xi1>, vector<32x128xf32>
    %cst_53 = arith.constant dense<0.000000e+00> : vector<32xf32>
    %215 = vector.multi_reduction <add>, %214, %cst_53 [1] : vector<32x128xf32> to vector<32xf32>
    %216 = vector.shape_cast %215 : vector<32xf32> to vector<32x1xf32>
    %217 = vector.broadcast %216 : vector<32x1xf32> to vector<32x128xf32>
    %218 = vector.broadcast %16 : vector<1x128xf32> to vector<32x128xf32>
    %219 = arith.mulf %217, %218 : vector<32x128xf32>
    %220 = arith.addf %210, %219 : vector<32x128xf32>
    %221 = tpu.reciprocal %220 {approx = true} : vector<32x128xf32> -> vector<32x128xf32>
    %222 = arith.mulf %179, %221 : vector<32x128xf32>
    %223 = arith.truncf %222 : vector<32x128xf32> to vector<32x128xbf16>
    "tpu.trace_start"() <{level = 10 : i32, message = "rk,kc->rc"}> : () -> ()
    %cst_54 = arith.constant dense<0.000000e+00> : vector<32x32xf32>
    %224 = tpu.matmul %223, %133, %cst_54 {dimension_numbers = #tpu.dot_dimension_numbers<[1], [0], [0], [1], [0, 0, 1, 1], [], []>} : vector<32x128xbf16>, vector<128x32xbf16>, vector<32x32xf32> -> vector<32x32xf32>
    "tpu.trace_stop"() : () -> ()
    %225 = vector.extract_strided_slice %7 {offsets = [64, 0], sizes = [32, 32], strides = [1, 1]} : vector<128x32xf32> to vector<32x32xf32>
    %226 = vector.extract_strided_slice %8 {offsets = [64, 0], sizes = [32, 32], strides = [1, 1]} : vector<128x32xf32> to vector<32x32xf32>
    %227 = vector.extract_strided_slice %9 {offsets = [64, 0], sizes = [32, 32], strides = [1, 1]} : vector<128x32xf32> to vector<32x32xf32>
    %228 = tpu.concatenate %226, %226, %226, %226 in 0 : vector<32x32xf32>, vector<32x32xf32>, vector<32x32xf32>, vector<32x32xf32> -> vector<128x32xf32>
    %229 = arith.mulf %228, %11 : vector<128x32xf32>
    %230 = arith.truncf %229 : vector<128x32xf32> to vector<128x32xbf16>
    %231 = tpu.concatenate %227, %227, %227, %227 in 0 : vector<32x32xf32>, vector<32x32xf32>, vector<32x32xf32>, vector<32x32xf32> -> vector<128x32xf32>
    %232 = arith.mulf %231, %11 : vector<128x32xf32>
    %233 = arith.truncf %232 : vector<128x32xf32> to vector<128x32xbf16>
    %234 = arith.truncf %225 : vector<32x32xf32> to vector<32x32xbf16>
    "tpu.trace_start"() <{level = 10 : i32, message = "rc,kc->rk"}> : () -> ()
    %cst_55 = arith.constant dense<0.000000e+00> : vector<32x128xf32>
    %235 = tpu.matmul %234, %230, %cst_55 {dimension_numbers = #tpu.dot_dimension_numbers<[1], [1], [0], [0], [0, 0, 1, 0], [], []>} : vector<32x32xbf16>, vector<128x32xbf16>, vector<32x128xf32> -> vector<32x128xf32>
    "tpu.trace_stop"() : () -> ()
    %236 = arith.addf %235, %10 : vector<32x128xf32>
    %cst_56 = arith.constant -1.000000e+30 : f32
    %237 = vector.shape_cast %18 : vector<1x128xi1> to vector<1x128xi1>
    %238 = vector.broadcast %237 : vector<1x128xi1> to vector<32x128xi1>
    %239 = vector.broadcast %cst_56 : f32 to vector<32x128xf32>
    %240 = arith.select %238, %236, %239 : vector<32x128xi1>, vector<32x128xf32>
    %cst_57 = arith.constant dense<0xFF800000> : vector<32xf32>
    %241 = vector.multi_reduction <maximumf>, %240, %cst_57 [1] : vector<32x128xf32> to vector<32xf32>
    %242 = vector.shape_cast %241 : vector<32xf32> to vector<32x1xf32>
    %243 = vector.broadcast %242 : vector<32x1xf32> to vector<32x128xf32>
    %244 = vector.broadcast %13 : vector<1x128xf32> to vector<32x128xf32>
    %245 = arith.mulf %243, %244 : vector<32x128xf32>
    %cst_58 = arith.constant 0.000000e+00 : f32
    %246 = vector.broadcast %cst_58 : f32 to vector<32x128xf32>
    %247 = arith.addf %246, %245 : vector<32x128xf32>
    %cst_59 = arith.constant -1.000000e+30 : f32
    %248 = vector.shape_cast %20 : vector<1x128xi1> to vector<1x128xi1>
    %249 = vector.broadcast %248 : vector<1x128xi1> to vector<32x128xi1>
    %250 = vector.broadcast %cst_59 : f32 to vector<32x128xf32>
    %251 = arith.select %249, %236, %250 : vector<32x128xi1>, vector<32x128xf32>
    %cst_60 = arith.constant dense<0xFF800000> : vector<32xf32>
    %252 = vector.multi_reduction <maximumf>, %251, %cst_60 [1] : vector<32x128xf32> to vector<32xf32>
    %253 = vector.shape_cast %252 : vector<32xf32> to vector<32x1xf32>
    %254 = vector.broadcast %253 : vector<32x1xf32> to vector<32x128xf32>
    %255 = vector.broadcast %14 : vector<1x128xf32> to vector<32x128xf32>
    %256 = arith.mulf %254, %255 : vector<32x128xf32>
    %257 = arith.addf %247, %256 : vector<32x128xf32>
    %cst_61 = arith.constant -1.000000e+30 : f32
    %258 = vector.shape_cast %22 : vector<1x128xi1> to vector<1x128xi1>
    %259 = vector.broadcast %258 : vector<1x128xi1> to vector<32x128xi1>
    %260 = vector.broadcast %cst_61 : f32 to vector<32x128xf32>
    %261 = arith.select %259, %236, %260 : vector<32x128xi1>, vector<32x128xf32>
    %cst_62 = arith.constant dense<0xFF800000> : vector<32xf32>
    %262 = vector.multi_reduction <maximumf>, %261, %cst_62 [1] : vector<32x128xf32> to vector<32xf32>
    %263 = vector.shape_cast %262 : vector<32xf32> to vector<32x1xf32>
    %264 = vector.broadcast %263 : vector<32x1xf32> to vector<32x128xf32>
    %265 = vector.broadcast %15 : vector<1x128xf32> to vector<32x128xf32>
    %266 = arith.mulf %264, %265 : vector<32x128xf32>
    %267 = arith.addf %257, %266 : vector<32x128xf32>
    %cst_63 = arith.constant -1.000000e+30 : f32
    %268 = vector.shape_cast %24 : vector<1x128xi1> to vector<1x128xi1>
    %269 = vector.broadcast %268 : vector<1x128xi1> to vector<32x128xi1>
    %270 = vector.broadcast %cst_63 : f32 to vector<32x128xf32>
    %271 = arith.select %269, %236, %270 : vector<32x128xi1>, vector<32x128xf32>
    %cst_64 = arith.constant dense<0xFF800000> : vector<32xf32>
    %272 = vector.multi_reduction <maximumf>, %271, %cst_64 [1] : vector<32x128xf32> to vector<32xf32>
    %273 = vector.shape_cast %272 : vector<32xf32> to vector<32x1xf32>
    %274 = vector.broadcast %273 : vector<32x1xf32> to vector<32x128xf32>
    %275 = vector.broadcast %16 : vector<1x128xf32> to vector<32x128xf32>
    %276 = arith.mulf %274, %275 : vector<32x128xf32>
    %277 = arith.addf %267, %276 : vector<32x128xf32>
    %278 = arith.subf %236, %277 : vector<32x128xf32>
    %279 = math.exp %278 : vector<32x128xf32>
    %cst_65 = arith.constant 0.000000e+00 : f32
    %280 = vector.shape_cast %18 : vector<1x128xi1> to vector<1x128xi1>
    %281 = vector.broadcast %280 : vector<1x128xi1> to vector<32x128xi1>
    %282 = vector.broadcast %cst_65 : f32 to vector<32x128xf32>
    %283 = arith.select %281, %279, %282 : vector<32x128xi1>, vector<32x128xf32>
    %cst_66 = arith.constant dense<0.000000e+00> : vector<32xf32>
    %284 = vector.multi_reduction <add>, %283, %cst_66 [1] : vector<32x128xf32> to vector<32xf32>
    %285 = vector.shape_cast %284 : vector<32xf32> to vector<32x1xf32>
    %286 = vector.broadcast %285 : vector<32x1xf32> to vector<32x128xf32>
    %287 = vector.broadcast %13 : vector<1x128xf32> to vector<32x128xf32>
    %288 = arith.mulf %286, %287 : vector<32x128xf32>
    %cst_67 = arith.constant 0.000000e+00 : f32
    %289 = vector.broadcast %cst_67 : f32 to vector<32x128xf32>
    %290 = arith.addf %289, %288 : vector<32x128xf32>
    %cst_68 = arith.constant 0.000000e+00 : f32
    %291 = vector.shape_cast %20 : vector<1x128xi1> to vector<1x128xi1>
    %292 = vector.broadcast %291 : vector<1x128xi1> to vector<32x128xi1>
    %293 = vector.broadcast %cst_68 : f32 to vector<32x128xf32>
    %294 = arith.select %292, %279, %293 : vector<32x128xi1>, vector<32x128xf32>
    %cst_69 = arith.constant dense<0.000000e+00> : vector<32xf32>
    %295 = vector.multi_reduction <add>, %294, %cst_69 [1] : vector<32x128xf32> to vector<32xf32>
    %296 = vector.shape_cast %295 : vector<32xf32> to vector<32x1xf32>
    %297 = vector.broadcast %296 : vector<32x1xf32> to vector<32x128xf32>
    %298 = vector.broadcast %14 : vector<1x128xf32> to vector<32x128xf32>
    %299 = arith.mulf %297, %298 : vector<32x128xf32>
    %300 = arith.addf %290, %299 : vector<32x128xf32>
    %cst_70 = arith.constant 0.000000e+00 : f32
    %301 = vector.shape_cast %22 : vector<1x128xi1> to vector<1x128xi1>
    %302 = vector.broadcast %301 : vector<1x128xi1> to vector<32x128xi1>
    %303 = vector.broadcast %cst_70 : f32 to vector<32x128xf32>
    %304 = arith.select %302, %279, %303 : vector<32x128xi1>, vector<32x128xf32>
    %cst_71 = arith.constant dense<0.000000e+00> : vector<32xf32>
    %305 = vector.multi_reduction <add>, %304, %cst_71 [1] : vector<32x128xf32> to vector<32xf32>
    %306 = vector.shape_cast %305 : vector<32xf32> to vector<32x1xf32>
    %307 = vector.broadcast %306 : vector<32x1xf32> to vector<32x128xf32>
    %308 = vector.broadcast %15 : vector<1x128xf32> to vector<32x128xf32>
    %309 = arith.mulf %307, %308 : vector<32x128xf32>
    %310 = arith.addf %300, %309 : vector<32x128xf32>
    %cst_72 = arith.constant 0.000000e+00 : f32
    %311 = vector.shape_cast %24 : vector<1x128xi1> to vector<1x128xi1>
    %312 = vector.broadcast %311 : vector<1x128xi1> to vector<32x128xi1>
    %313 = vector.broadcast %cst_72 : f32 to vector<32x128xf32>
    %314 = arith.select %312, %279, %313 : vector<32x128xi1>, vector<32x128xf32>
    %cst_73 = arith.constant dense<0.000000e+00> : vector<32xf32>
    %315 = vector.multi_reduction <add>, %314, %cst_73 [1] : vector<32x128xf32> to vector<32xf32>
    %316 = vector.shape_cast %315 : vector<32xf32> to vector<32x1xf32>
    %317 = vector.broadcast %316 : vector<32x1xf32> to vector<32x128xf32>
    %318 = vector.broadcast %16 : vector<1x128xf32> to vector<32x128xf32>
    %319 = arith.mulf %317, %318 : vector<32x128xf32>
    %320 = arith.addf %310, %319 : vector<32x128xf32>
    %321 = tpu.reciprocal %320 {approx = true} : vector<32x128xf32> -> vector<32x128xf32>
    %322 = arith.mulf %279, %321 : vector<32x128xf32>
    %323 = arith.truncf %322 : vector<32x128xf32> to vector<32x128xbf16>
    "tpu.trace_start"() <{level = 10 : i32, message = "rk,kc->rc"}> : () -> ()
    %cst_74 = arith.constant dense<0.000000e+00> : vector<32x32xf32>
    %324 = tpu.matmul %323, %233, %cst_74 {dimension_numbers = #tpu.dot_dimension_numbers<[1], [0], [0], [1], [0, 0, 1, 1], [], []>} : vector<32x128xbf16>, vector<128x32xbf16>, vector<32x32xf32> -> vector<32x32xf32>
    "tpu.trace_stop"() : () -> ()
    %325 = vector.extract_strided_slice %7 {offsets = [96, 0], sizes = [32, 32], strides = [1, 1]} : vector<128x32xf32> to vector<32x32xf32>
    %326 = vector.extract_strided_slice %8 {offsets = [96, 0], sizes = [32, 32], strides = [1, 1]} : vector<128x32xf32> to vector<32x32xf32>
    %327 = vector.extract_strided_slice %9 {offsets = [96, 0], sizes = [32, 32], strides = [1, 1]} : vector<128x32xf32> to vector<32x32xf32>
    %328 = tpu.concatenate %326, %326, %326, %326 in 0 : vector<32x32xf32>, vector<32x32xf32>, vector<32x32xf32>, vector<32x32xf32> -> vector<128x32xf32>
    %329 = arith.mulf %328, %11 : vector<128x32xf32>
    %330 = arith.truncf %329 : vector<128x32xf32> to vector<128x32xbf16>
    %331 = tpu.concatenate %327, %327, %327, %327 in 0 : vector<32x32xf32>, vector<32x32xf32>, vector<32x32xf32>, vector<32x32xf32> -> vector<128x32xf32>
    %332 = arith.mulf %331, %11 : vector<128x32xf32>
    %333 = arith.truncf %332 : vector<128x32xf32> to vector<128x32xbf16>
    %334 = arith.truncf %325 : vector<32x32xf32> to vector<32x32xbf16>
    "tpu.trace_start"() <{level = 10 : i32, message = "rc,kc->rk"}> : () -> ()
    %cst_75 = arith.constant dense<0.000000e+00> : vector<32x128xf32>
    %335 = tpu.matmul %334, %330, %cst_75 {dimension_numbers = #tpu.dot_dimension_numbers<[1], [1], [0], [0], [0, 0, 1, 0], [], []>} : vector<32x32xbf16>, vector<128x32xbf16>, vector<32x128xf32> -> vector<32x128xf32>
    "tpu.trace_stop"() : () -> ()
    %336 = arith.addf %335, %10 : vector<32x128xf32>
    %cst_76 = arith.constant -1.000000e+30 : f32
    %337 = vector.shape_cast %18 : vector<1x128xi1> to vector<1x128xi1>
    %338 = vector.broadcast %337 : vector<1x128xi1> to vector<32x128xi1>
    %339 = vector.broadcast %cst_76 : f32 to vector<32x128xf32>
    %340 = arith.select %338, %336, %339 : vector<32x128xi1>, vector<32x128xf32>
    %cst_77 = arith.constant dense<0xFF800000> : vector<32xf32>
    %341 = vector.multi_reduction <maximumf>, %340, %cst_77 [1] : vector<32x128xf32> to vector<32xf32>
    %342 = vector.shape_cast %341 : vector<32xf32> to vector<32x1xf32>
    %343 = vector.broadcast %342 : vector<32x1xf32> to vector<32x128xf32>
    %344 = vector.broadcast %13 : vector<1x128xf32> to vector<32x128xf32>
    %345 = arith.mulf %343, %344 : vector<32x128xf32>
    %cst_78 = arith.constant 0.000000e+00 : f32
    %346 = vector.broadcast %cst_78 : f32 to vector<32x128xf32>
    %347 = arith.addf %346, %345 : vector<32x128xf32>
    %cst_79 = arith.constant -1.000000e+30 : f32
    %348 = vector.shape_cast %20 : vector<1x128xi1> to vector<1x128xi1>
    %349 = vector.broadcast %348 : vector<1x128xi1> to vector<32x128xi1>
    %350 = vector.broadcast %cst_79 : f32 to vector<32x128xf32>
    %351 = arith.select %349, %336, %350 : vector<32x128xi1>, vector<32x128xf32>
    %cst_80 = arith.constant dense<0xFF800000> : vector<32xf32>
    %352 = vector.multi_reduction <maximumf>, %351, %cst_80 [1] : vector<32x128xf32> to vector<32xf32>
    %353 = vector.shape_cast %352 : vector<32xf32> to vector<32x1xf32>
    %354 = vector.broadcast %353 : vector<32x1xf32> to vector<32x128xf32>
    %355 = vector.broadcast %14 : vector<1x128xf32> to vector<32x128xf32>
    %356 = arith.mulf %354, %355 : vector<32x128xf32>
    %357 = arith.addf %347, %356 : vector<32x128xf32>
    %cst_81 = arith.constant -1.000000e+30 : f32
    %358 = vector.shape_cast %22 : vector<1x128xi1> to vector<1x128xi1>
    %359 = vector.broadcast %358 : vector<1x128xi1> to vector<32x128xi1>
    %360 = vector.broadcast %cst_81 : f32 to vector<32x128xf32>
    %361 = arith.select %359, %336, %360 : vector<32x128xi1>, vector<32x128xf32>
    %cst_82 = arith.constant dense<0xFF800000> : vector<32xf32>
    %362 = vector.multi_reduction <maximumf>, %361, %cst_82 [1] : vector<32x128xf32> to vector<32xf32>
    %363 = vector.shape_cast %362 : vector<32xf32> to vector<32x1xf32>
    %364 = vector.broadcast %363 : vector<32x1xf32> to vector<32x128xf32>
    %365 = vector.broadcast %15 : vector<1x128xf32> to vector<32x128xf32>
    %366 = arith.mulf %364, %365 : vector<32x128xf32>
    %367 = arith.addf %357, %366 : vector<32x128xf32>
    %cst_83 = arith.constant -1.000000e+30 : f32
    %368 = vector.shape_cast %24 : vector<1x128xi1> to vector<1x128xi1>
    %369 = vector.broadcast %368 : vector<1x128xi1> to vector<32x128xi1>
    %370 = vector.broadcast %cst_83 : f32 to vector<32x128xf32>
    %371 = arith.select %369, %336, %370 : vector<32x128xi1>, vector<32x128xf32>
    %cst_84 = arith.constant dense<0xFF800000> : vector<32xf32>
    %372 = vector.multi_reduction <maximumf>, %371, %cst_84 [1] : vector<32x128xf32> to vector<32xf32>
    %373 = vector.shape_cast %372 : vector<32xf32> to vector<32x1xf32>
    %374 = vector.broadcast %373 : vector<32x1xf32> to vector<32x128xf32>
    %375 = vector.broadcast %16 : vector<1x128xf32> to vector<32x128xf32>
    %376 = arith.mulf %374, %375 : vector<32x128xf32>
    %377 = arith.addf %367, %376 : vector<32x128xf32>
    %378 = arith.subf %336, %377 : vector<32x128xf32>
    %379 = math.exp %378 : vector<32x128xf32>
    %cst_85 = arith.constant 0.000000e+00 : f32
    %380 = vector.shape_cast %18 : vector<1x128xi1> to vector<1x128xi1>
    %381 = vector.broadcast %380 : vector<1x128xi1> to vector<32x128xi1>
    %382 = vector.broadcast %cst_85 : f32 to vector<32x128xf32>
    %383 = arith.select %381, %379, %382 : vector<32x128xi1>, vector<32x128xf32>
    %cst_86 = arith.constant dense<0.000000e+00> : vector<32xf32>
    %384 = vector.multi_reduction <add>, %383, %cst_86 [1] : vector<32x128xf32> to vector<32xf32>
    %385 = vector.shape_cast %384 : vector<32xf32> to vector<32x1xf32>
    %386 = vector.broadcast %385 : vector<32x1xf32> to vector<32x128xf32>
    %387 = vector.broadcast %13 : vector<1x128xf32> to vector<32x128xf32>
    %388 = arith.mulf %386, %387 : vector<32x128xf32>
    %cst_87 = arith.constant 0.000000e+00 : f32
    %389 = vector.broadcast %cst_87 : f32 to vector<32x128xf32>
    %390 = arith.addf %389, %388 : vector<32x128xf32>
    %cst_88 = arith.constant 0.000000e+00 : f32
    %391 = vector.shape_cast %20 : vector<1x128xi1> to vector<1x128xi1>
    %392 = vector.broadcast %391 : vector<1x128xi1> to vector<32x128xi1>
    %393 = vector.broadcast %cst_88 : f32 to vector<32x128xf32>
    %394 = arith.select %392, %379, %393 : vector<32x128xi1>, vector<32x128xf32>
    %cst_89 = arith.constant dense<0.000000e+00> : vector<32xf32>
    %395 = vector.multi_reduction <add>, %394, %cst_89 [1] : vector<32x128xf32> to vector<32xf32>
    %396 = vector.shape_cast %395 : vector<32xf32> to vector<32x1xf32>
    %397 = vector.broadcast %396 : vector<32x1xf32> to vector<32x128xf32>
    %398 = vector.broadcast %14 : vector<1x128xf32> to vector<32x128xf32>
    %399 = arith.mulf %397, %398 : vector<32x128xf32>
    %400 = arith.addf %390, %399 : vector<32x128xf32>
    %cst_90 = arith.constant 0.000000e+00 : f32
    %401 = vector.shape_cast %22 : vector<1x128xi1> to vector<1x128xi1>
    %402 = vector.broadcast %401 : vector<1x128xi1> to vector<32x128xi1>
    %403 = vector.broadcast %cst_90 : f32 to vector<32x128xf32>
    %404 = arith.select %402, %379, %403 : vector<32x128xi1>, vector<32x128xf32>
    %cst_91 = arith.constant dense<0.000000e+00> : vector<32xf32>
    %405 = vector.multi_reduction <add>, %404, %cst_91 [1] : vector<32x128xf32> to vector<32xf32>
    %406 = vector.shape_cast %405 : vector<32xf32> to vector<32x1xf32>
    %407 = vector.broadcast %406 : vector<32x1xf32> to vector<32x128xf32>
    %408 = vector.broadcast %15 : vector<1x128xf32> to vector<32x128xf32>
    %409 = arith.mulf %407, %408 : vector<32x128xf32>
    %410 = arith.addf %400, %409 : vector<32x128xf32>
    %cst_92 = arith.constant 0.000000e+00 : f32
    %411 = vector.shape_cast %24 : vector<1x128xi1> to vector<1x128xi1>
    %412 = vector.broadcast %411 : vector<1x128xi1> to vector<32x128xi1>
    %413 = vector.broadcast %cst_92 : f32 to vector<32x128xf32>
    %414 = arith.select %412, %379, %413 : vector<32x128xi1>, vector<32x128xf32>
    %cst_93 = arith.constant dense<0.000000e+00> : vector<32xf32>
    %415 = vector.multi_reduction <add>, %414, %cst_93 [1] : vector<32x128xf32> to vector<32xf32>
    %416 = vector.shape_cast %415 : vector<32xf32> to vector<32x1xf32>
    %417 = vector.broadcast %416 : vector<32x1xf32> to vector<32x128xf32>
    %418 = vector.broadcast %16 : vector<1x128xf32> to vector<32x128xf32>
    %419 = arith.mulf %417, %418 : vector<32x128xf32>
    %420 = arith.addf %410, %419 : vector<32x128xf32>
    %421 = tpu.reciprocal %420 {approx = true} : vector<32x128xf32> -> vector<32x128xf32>
    %422 = arith.mulf %379, %421 : vector<32x128xf32>
    %423 = arith.truncf %422 : vector<32x128xf32> to vector<32x128xbf16>
    "tpu.trace_start"() <{level = 10 : i32, message = "rk,kc->rc"}> : () -> ()
    %cst_94 = arith.constant dense<0.000000e+00> : vector<32x32xf32>
    %424 = tpu.matmul %423, %333, %cst_94 {dimension_numbers = #tpu.dot_dimension_numbers<[1], [0], [0], [1], [0, 0, 1, 1], [], []>} : vector<32x128xbf16>, vector<128x32xbf16>, vector<32x32xf32> -> vector<32x32xf32>
    "tpu.trace_stop"() : () -> ()
    %425 = tpu.concatenate %124, %224, %324, %424 in 0 : vector<32x32xf32>, vector<32x32xf32>, vector<32x32xf32>, vector<32x32xf32> -> vector<128x32xf32>
    %426 = arith.truncf %425 : vector<128x32xf32> to vector<128x32xbf16>
    %c0_95 = arith.constant 0 : index
    %c0_96 = arith.constant 0 : index
    %427 = vector.load %arg4[%c0_95, %c0_96] : memref<32x32xbf16, #tpu.memory_space<vmem>>, vector<32x32xbf16>
    %cst_97 = arith.constant dense<0.000000e+00> : vector<128x32xf32>
    %428 = tpu.matmul %426, %427, %cst_97 {dimension_numbers = #tpu.dot_dimension_numbers<[1], [0], [0], [1], [0, 0, 1, 1], [], []>} : vector<128x32xbf16>, vector<32x32xbf16>, vector<128x32xf32> -> vector<128x32xf32>
    %c0_98 = arith.constant 0 : index
    %c0_99 = arith.constant 0 : index
    %429 = vector.load %arg5[%c0_98, %c0_99] : memref<1x32xf32, #tpu.memory_space<vmem>>, vector<1x32xf32>
    %430 = vector.broadcast %429 : vector<1x32xf32> to vector<128x32xf32>
    %431 = arith.addf %428, %430 : vector<128x32xf32>
    %c0_100 = arith.constant 0 : index
    %c0_101 = arith.constant 0 : index
    %432 = vector.load %arg9[%c0_100, %c0_101] : memref<128x32xf32, #tpu.memory_space<vmem>>, vector<128x32xf32>
    tpu.vector_store %arg9[%c0_100, %c0_101], %431 {strides = array<i32>} : memref<128x32xf32, #tpu.memory_space<vmem>>, vector<128x32xf32>,
    return
  }
  func.func @transform_0(%arg0: i32) -> (i32, i32) {
    %c0_i32 = arith.constant 0 : i32
    %c0_i32_0 = arith.constant 0 : i32
    return %arg0, %c0_i32 : i32, i32
  }
  func.func @transform_1(%arg0: i32) -> (i32, i32) {
    %c0_i32 = arith.constant 0 : i32
    %c0_i32_0 = arith.constant 0 : i32
    %c0_i32_1 = arith.constant 0 : i32
    return %c0_i32, %c0_i32_0 : i32, i32
  }
  func.func @transform_2(%arg0: i32) -> (i32, i32) {
    %c0_i32 = arith.constant 0 : i32
    %c0_i32_0 = arith.constant 0 : i32
    %c0_i32_1 = arith.constant 0 : i32
    return %c0_i32, %c0_i32_0 : i32, i32
  }
  func.func @transform_3(%arg0: i32) -> (i32, i32) {
    %c0_i32 = arith.constant 0 : i32
    %c0_i32_0 = arith.constant 0 : i32
    %c0_i32_1 = arith.constant 0 : i32
    return %c0_i32, %c0_i32_0 : i32, i32
  }
  func.func @transform_4(%arg0: i32) -> (i32, i32) {
    %c0_i32 = arith.constant 0 : i32
    %c0_i32_0 = arith.constant 0 : i32
    %c0_i32_1 = arith.constant 0 : i32
    return %c0_i32, %c0_i32_0 : i32, i32
  }
  func.func @transform_5(%arg0: i32) -> (i32, i32) {
    %c0_i32 = arith.constant 0 : i32
    %c0_i32_0 = arith.constant 0 : i32
    %c0_i32_1 = arith.constant 0 : i32
    return %c0_i32, %c0_i32_0 : i32, i32
  }
  func.func @transform_6(%arg0: i32) -> (i32, i32) {
    %c0_i32 = arith.constant 0 : i32
    %c0_i32_0 = arith.constant 0 : i32
    %c0_i32_1 = arith.constant 0 : i32
    return %c0_i32, %c0_i32_0 : i32, i32
  }
  func.func @transform_7(%arg0: i32) -> (i32, i32) {
    %c0_i32 = arith.constant 0 : i32
    %c0_i32_0 = arith.constant 0 : i32
    %c0_i32_1 = arith.constant 0 : i32
    return %c0_i32, %c0_i32_0 : i32, i32
  }
  func.func @transform_8(%arg0: i32) -> (i32, i32) {
    %c0_i32 = arith.constant 0 : i32
    %c0_i32_0 = arith.constant 0 : i32
    return %arg0, %c0_i32 : i32, i32
  }
}

</mosaic_0001>

<bundles_post_ra>
// kernel: tpu_custom_call.1
= control target key start
LH: loop header
LB: loop body
LE: loop exit
PB: predicated region body
PF: predicated region fallthrough
CT: control target
= control target key end

     0   :  { %s3056_s27 = smov 0   ;;  %s4603_s0 = inlined_call_operand.vmem [shape: f32[256,32], index: 0, kind: input, shape index: {}]   ;;  %s4604_s1 = inlined_call_operand.vmem [shape: bf16[32,96], index: 1, kind: input, shape index: {}]   ;;  %s4605_s2 = inlined_call_operand.vmem [shape: f32[1,96], index: 2, kind: input, shape index: {}]   ;;  %s4606_s3 = inlined_call_operand.vmem [shape: bf16[32,32], index: 3, kind: input, shape index: {}]   ;;  %s4607_s4 = inlined_call_operand.vmem [shape: f32[1,32], index: 4, kind: input, shape index: {}]   ;;  %s4608_s5 = inlined_call_operand.vmem [shape: f32[32,128], index: 5, kind: input, shape index: {}]   ;;  %s4609_s6 = inlined_call_operand.vmem [shape: f32[128,32], index: 6, kind: input, shape index: {}]   ;;  %s4610_s7 = inlined_call_operand.vmem [shape: f32[4,128], index: 7, kind: input, shape index: {}]   ;;  %s4611_s8 = inlined_call_operand.vmem [shape: f32[256,32], index: 8, kind: output, shape index: {}]  }
   0x1 LB: > { %s2538_s28 = sadd.s32 4294967295, %s3005_s27   ;;  %p2542_p0 = scmp.ge.s32.totalorder %s3005_s27, 1  ;;  %s3005_s27 = sphi %s3056_s27, %s18_s27  }
   0x2   : > { %p263_p1 = scmp.lt.s32.totalorder %s3005_s27, 3 }
   0x4   : > { %p264_p2 = pnand %p2542_p0, %p263_p1 }
   0x6   : > { %267 = sbr.rel (%p264_p2) target bundleno = 3520 (0xdc0), region = 52 }
   0xd   : > { %v2927_v0 = vld [vmem:[%s4604_s1] sm:$0xff]   ;;  %s2543_s9 = sshll.u32 %s2538_s28, 4  ;;  %v2928_v1 = vld [vmem:[%s4604_s1 + $0x8] sm:$0xff]   ;;  %v3078_v3 = vld [vmem:[%s4609_s6 + $0x10] sm:$0xff]  ;;  %s3007_s16 = smov 32   ;;  %vm357_vm0 = vcmask 261120  }
   0xe   : > { %p298_p3 = scmp.lt.s32.totalorder %s2543_s9, 31  ;;  %2679 = vmatprep.subr.bf16.mxu0 %v2927_v0  ;;  %v3073_v2 = vld [vmem:[%s4609_s6] sm:$0xff]  ;;  %521 = vrot.lane.b32.xlu1 %v3078_v3, %s3007_s16  ;;  %v3089_v4 = vld [vmem:[%s4609_s6 + $0x8] sm:$0xff]  ;;  %v3095_v5 = vld [vmem:[%s4609_s6 + $0x18] sm:$0xff]  ;;  %s3008_s12 = smov 96  }
   0xf   : > { %2680 = vmatpush3.bf16.msra.mxu0 %v2927_v0  ;;  %517 = vrot.lane.b32.xlu0 %v3073_v2, %s3007_s16  ;;  %v3107_v6 = vld [vmem:[%s4609_s6 + $0x20] sm:$0xff]  ;;  %v3122_v16 = vld [vmem:[%s4609_s6 + $0x28] sm:$0xff]  ;;  %v3128_v17 = vld [vmem:[%s4609_s6 + $0x30] sm:$0xff]  ;;  %s3009_s13 = smov 64  }
  0x10   : > { %s4763_s9 = smov (!%p298_p3, %s2543_s9), 31  ;;  %2681 = vmatprep.subr.bf16.mxu0 %v2928_v1  ;;  %v3138_v20 = vld [vmem:[%s4609_s6 + $0x38] sm:$0xff]  ;;  %v3152_v25 = vld [vmem:[%s4609_s6 + $0x40] sm:$0xff]  ;;  %v3157_v26 = vld [vmem:[%s4609_s6 + $0x48] sm:$0xff] }
  0x11   : > { %s2544_s19 = sshll.u32 %s4763_s9, 3  ;;  %v3170_v29 = vld [vmem:[%s4609_s6 + $0x50] sm:$0xff]  ;;  %v3177_v32 = vld [vmem:[%s4609_s6 + $0x58] sm:$0xff]  ;;  %v3186_v35 = vld [vmem:[%s4609_s6 + $0x60] sm:$0xff] }
  0x12   : > { %s3102_s24 = scalar_lea.vmem %s4603_s0, %s2544_s19  ;;  %523 = vrot.lane.b32.xlu1 %v3095_v5, %s3007_s16  ;;  %v3191_v36 = vld [vmem:[%s4609_s6 + $0x68] sm:$0xff]  ;;  %v3204_v39 = vld [vmem:[%s4609_s6 + $0x70] sm:$0xff]  ;;  %v3209_v40 = vld [vmem:[%s4609_s6 + $0x78] sm:$0xff]  ;;  %s4350_s25 = scalar_lea.vmem %s4611_s8, %s2544_s19 }
  0x13   : > { %2682 = vmatpush3.bf16.msra.mxu0 %v2928_v1  ;;  %v310_v7 = vld [vmem:[%s3102_s24] sm:$0xff]  ;;  %v311_v8 = vld [vmem:[%s3102_s24 + $0x8] sm:$0xff]  ;;  %v312_v9 = vld [vmem:[%s3102_s24 + $0x10] sm:$0xff]  ;;  %519 = vrot.lane.b32.xlu0 %v3089_v4, %s3007_s16 }
  0x14   : > { %v326_v10 = vpack.c.bf16 %v311_v8, %v310_v7  ;;  %v313_v11 = vld [vmem:[%s3102_s24 + $0x18] sm:$0xff]  ;;  %v314_v12 = vld [vmem:[%s3102_s24 + $0x20] sm:$0xff]  ;;  %v315_v13 = vld [vmem:[%s3102_s24 + $0x28] sm:$0xff] }
  0x15   : > { %v327_v14 = vpack.c.bf16 %v313_v11, %v312_v9  ;;  %v328_v15 = vpack.c.bf16 %v315_v13, %v314_v12  ;;  %v316_v18 = vld [vmem:[%s3102_s24 + $0x30] sm:$0xff]  ;;  %v317_v19 = vld [vmem:[%s3102_s24 + $0x38] sm:$0xff]  ;;  %v318_v21 = vld [vmem:[%s3102_s24 + $0x40] sm:$0xff] }
  0x16   : > { %2683 = vmatprep.mubr.msk.bf16.mxu0 %vm357_vm0, %v326_v10  ;;  %v319_v22 = vld [vmem:[%s3102_s24 + $0x48] sm:$0xff]  ;;  %527 = vrot.lane.b32.xlu1 %v3122_v16, %s3007_s16  ;;  %v329_v23 = vpack.c.bf16 %v317_v19, %v316_v18  ;;  %v320_v27 = vld [vmem:[%s3102_s24 + $0x50] sm:$0xff]  ;;  %v321_v28 = vld [vmem:[%s3102_s24 + $0x58] sm:$0xff] }
  0x17   : > { %2684 = vmatmul.mubr.msk.bf16.vlgmr.msra.gmra.mrb[0].mxu0 %vm357_vm0, %v327_v14  ;;  %525 = vrot.lane.b32.xlu0 %v3107_v6, %s3007_s16  ;;  %v330_v24 = vpack.c.bf16 %v319_v22, %v318_v21  ;;  %v322_v30 = vld [vmem:[%s3102_s24 + $0x60] sm:$0xff]  ;;  %v323_v31 = vld [vmem:[%s3102_s24 + $0x68] sm:$0xff]  ;;  %v331_v33 = vpack.c.bf16 %v321_v28, %v320_v27  ;;  %v324_v37 = vld [vmem:[%s3102_s24 + $0x70] sm:$0xff] }
  0x18   : > { %2687 = vmatprep.mubr.msk.bf16.mxu0 %vm357_vm0, %v328_v15  ;;  %v332_v34 = vpack.c.bf16 %v323_v31, %v322_v30  ;;  %v325_v38 = vld [vmem:[%s3102_s24 + $0x78] sm:$0xff]  ;;  %v3239_v52 = vld [vmem:[%s4605_s2] ss:$0 sm:$0xff] }
  0x19   : > { %v333_v41 = vpack.c.bf16 %v325_v38, %v324_v37 }
  0x1a   : > { %531 = vrot.lane.b32.xlu1 %v3138_v20, %s3007_s16 }
  0x1b   : > { %529 = vrot.lane.b32.xlu0 %v3128_v17, %s3007_s16 }
  0x1e   : > { %535 = vrot.lane.b32.xlu1 %v3157_v26, %s3007_s16 }
  0x1f   : > { %2688 = vmatmul.mubr.msk.bf16.gmra.mrb[4].mxu0 %vm357_vm0, %v329_v23  ;;  %533 = vrot.lane.b32.xlu0 %v3152_v25, %s3007_s16 }
  0x20   : > { %2691 = vmatprep.mubr.msk.bf16.mxu0 %vm357_vm0, %v330_v24 }
  0x22   : > { %539 = vrot.lane.b32.xlu1 %v3177_v32, %s3007_s16 }
  0x23   : > { %537 = vrot.lane.b32.xlu0 %v3170_v29, %s3007_s16 }
  0x26   : > { %543 = vrot.lane.b32.xlu1 %v3191_v36, %s3007_s16 }
  0x27   : > { %2692 = vmatmul.mubr.msk.bf16.gmra.mrb[8].mxu0 %vm357_vm0, %v331_v33  ;;  %541 = vrot.lane.b32.xlu0 %v3186_v35, %s3007_s16 }
  0x28   : > { %2695 = vmatprep.mubr.msk.bf16.mxu0 %vm357_vm0, %v332_v34 }
  0x2a   : > { %547 = vrot.lane.b32.xlu1 %v3209_v40, %s3007_s16 }
  0x2b   : > { %545 = vrot.lane.b32.xlu0 %v3204_v39, %s3007_s16 }
  0x2f   : > { %2696 = vmatmul.mubr.msk.bf16.gmra.mrb[12].mxu0 %vm357_vm0, %v333_v41 }
  0x80   : > { %v3216_v42 = vpop.permute.xlu1 %521 }
  0x81   : > { %v3218_v43 = vpop.permute.xlu0 %517 }
  0x84   : > { %v3220_v44 = vpop.permute.xlu1 %523 }
  0x85   : > { %v3222_v45 = vpop.permute.xlu0 %519 }
  0x88   : > { %v3224_v46 = vpop.permute.xlu1 %527 }
  0x89   : > { %v3226_v47 = vpop.permute.xlu0 %525 }
  0x8c   : > { %v3228_v48 = vpop.permute.xlu1 %531 }
  0x8d   : > { %v3230_v49 = vpop.permute.xlu0 %529 }
  0x90   : > { %v3232_v50 = vpop.permute.xlu1 %535 }
  0x91   : > { %4669 = vst [vmem:[#allocation2_spill] sm:$0xff] %v3232_v50  ;;  %v3234_v51 = vpop.permute.xlu0 %533 }
  0x92   : > { %4670 = vst [vmem:[#allocation3_spill] sm:$0xff] %v3234_v51 }
  0x94   : > { %v3241_v53 = vpop.permute.xlu1 %539 }
  0x95   : > { %v3246_v57 = vpop.permute.xlu0 %537 }
  0x98   : > { %v3261_v1 = vpop.permute.xlu1 %543 }
  0x99   : > { %4671 = vst [vmem:[#allocation4_spill] sm:$0xff] %v3261_v1  ;;  %v3271_v12 = vpop.permute.xlu0 %541 }
  0x9a   : > { %4672 = vst [vmem:[#allocation5_spill] sm:$0xff] %v3271_v12 }
  0x9c   : > { %v3293_v33 = vpop.permute.xlu1 %547 }
  0x9d   : > { %4673 = vst [vmem:[#allocation6_spill] sm:$0xff] %v3293_v33 }
  0xea   : > { %v2685_v54 = vpop.f32.mrb[0].mxu0 }
  0xeb   : > { %v3244_v55 = vadd.f32 %v2685_v54, %v3239_v52  ;;  %v416_v56 = vpop.f32.mrb[1].mxu0  ;;  %v3303_v54 = vpop.permute.xlu0 %545 }
  0xec   : > { %v3249_v58 = vadd.f32 %v3239_v52, %v416_v56  ;;  %v2686_v59 = vpop.f32.mrb[2].mxu0 }
  0xed   : > { %v3252_v60 = vadd.f32 %v2686_v59, %v3239_v52  ;;  %v419_v61 = vpop.f32.mrb[3].mxu0  ;;  %v567_v63 = vmul.f32 %v3216_v42, %v3244_v55  ;;  %v571_v21 = vmul.f32 %v3230_v49, %v3244_v55  ;;  %v575_v41 = vmul.f32 %v3246_v57, %v3244_v55 }
  0xee   : > { %v3255_v62 = vadd.f32 %v3239_v52, %v419_v61  ;;  %v565_v8 = vmul.f32 %v3218_v43, %v3249_v58  ;;  %v569_v24 = vmul.f32 %v3226_v47, %v3249_v58  ;;  %v573_v56 = vmul.f32 %v3234_v51, %v3249_v58 }
  0xef   : > { %v568_v0 = vmul.f32 %v3220_v44, %v3252_v60  ;;  %v572_v11 = vmul.f32 %v3228_v48, %v3252_v60  ;;  %v576_v31 = vmul.f32 %v3241_v53, %v3252_v60  ;;  %v580_v61 = vmul.f32 %v3293_v33, %v3252_v60 }
  0xf0   : > { %v661_v7 = vpack.c.bf16 %v3255_v62, %v3249_v58  ;;  %v566_v9 = vmul.f32 %v3222_v45, %v3255_v62  ;;  %v570_v15 = vmul.f32 %v3224_v46, %v3255_v62  ;;  %v574_v38 = vmul.f32 %v3232_v50, %v3255_v62 }
  0xf1   : > { %v582_v10 = vpack.c.bf16 %v568_v0, %v567_v63  ;;  %v584_v30 = vpack.c.bf16 %v572_v11, %v571_v21  ;;  %v586_v59 = vpack.c.bf16 %v576_v31, %v575_v41 }
  0xf2   : > { %v2689_v13 = vpop.f32.mrb[4].mxu0  ;;  %2715 = vmatprep.mubr.msk.bf16.mxu1 %vm357_vm0, %v661_v7  ;;  %v581_v14 = vpack.c.bf16 %v566_v9, %v565_v8  ;;  %v583_v37 = vpack.c.bf16 %v570_v15, %v569_v24  ;;  %v585_v0 = vpack.c.bf16 %v574_v38, %v573_v56  ;;  %v578_v7 = vmul.f32 %v3261_v1, %v3255_v62 }
  0xf3   : > { %v3277_v18 = vadd.f32 %v2689_v13, %v3239_v52  ;;  %673 = vrot.lane.b32.xlu1 %v582_v10, %s3008_s12  ;;  %v432_v19 = vpop.f32.mrb[5].mxu0  ;;  %v579_v10 = vmul.f32 %v3303_v54, %v3244_v55 }
  0xf4   : > { %v3283_v22 = vadd.f32 %v3239_v52, %v432_v19  ;;  %v2690_v23 = vpop.f32.mrb[6].mxu0  ;;  %671 = vrot.lane.b32.xlu0 %v581_v14, %s3008_s12  ;;  %v577_v14 = vmul.f32 %v3271_v12, %v3249_v58 }
  0xf5   : > { %v3289_v27 = vadd.f32 %v2690_v23, %v3239_v52  ;;  %v435_v28 = vpop.f32.mrb[7].mxu0  ;;  %v588_v21 = vpack.c.bf16 %v580_v61, %v579_v10 }
  0xf6   : > { %v3296_v34 = vadd.f32 %v3239_v52, %v435_v28  ;;  %v587_v24 = vpack.c.bf16 %v578_v7, %v577_v14  ;;  %v767_v7 = vlaneseq }
  0xf7   : > { %677 = vrot.lane.b32.xlu1 %v584_v30, %s3008_s12 }
  0xf8   : > { %675 = vrot.lane.b32.xlu0 %v583_v37, %s3008_s12 }
  0xfa   : > { %v2693_v63 = vpop.f32.mrb[8].mxu0 }
  0xfb   : > { %v3313_v8 = vadd.f32 %v2693_v63, %v3239_v52  ;;  %681 = vrot.lane.b32.xlu1 %v586_v59, %s3008_s12  ;;  %v448_v9 = vpop.f32.mrb[9].mxu0 }
  0xfc   : > { %v3319_v11 = vadd.f32 %v3239_v52, %v448_v9  ;;  %v2694_v13 = vpop.f32.mrb[10].mxu0  ;;  %679 = vrot.lane.b32.xlu0 %v585_v0, %s3008_s12  ;;  %v662_v0 = vpack.c.bf16 %v3252_v60, %v3244_v55  ;;  %v768_v9 = vshrl.u32 %v767_v7, 7 }
  0xfd   : > { %4674 = vst [vmem:[#allocation7_spill] sm:$0xff] %v3313_v8  ;;  %v3325_v15 = vadd.f32 %v2694_v13, %v3239_v52  ;;  %v451_v19 = vpop.f32.mrb[11].mxu0  ;;  %v499_v13 = vld [vmem:[%s4610_s7] sm:$0xf] }
  0xfe   : > { %4675 = vst [vmem:[#allocation8_spill] sm:$0xff] %v3319_v11  ;;  %v3328_v23 = vadd.f32 %v3239_v52, %v451_v19  ;;  %v769_v10 = vsub.s32 0, %v768_v9  ;;  %v798_v14 = vsub.s32 1, %v768_v9  ;;  %vm500_vm1 = vcmp.gt.f32.partialorder %v499_v13, 0.5 }
  0xff   : > { %4676 = vst [vmem:[#allocation9_spill] sm:$0xff] %v3325_v15  ;;  %685 = vrot.lane.b32.xlu1 %v588_v21, %s3008_s12 }
 0x100   : > { %4677 = vst [vmem:[#allocation10_spill] sm:$0xff] %v3328_v23  ;;  %683 = vrot.lane.b32.xlu0 %v587_v24, %s3008_s12  ;;  %v3392_v19 = vrot.slane %v499_v13, %v769_v10  ;;  %v3394_v21 = vrot.slane %v499_v13, %v798_v14  ;;  %v827_v24 = vsub.s32 2, %v768_v9 }
 0x102   : > { %v2697_v28 = vpop.f32.mrb[12].mxu0 }
 0x103   : > { %v3333_v30 = vadd.f32 %v2697_v28, %v3239_v52  ;;  %589 = vrot.lane.b32.xlu1 %v3073_v2, %s3009_s13  ;;  %v464_v31 = vpop.f32.mrb[13].mxu0  ;;  %v3396_v28 = vrot.slane %v499_v13, %v827_v24 }
 0x104   : > { %v3338_v37 = vadd.f32 %v3239_v52, %v464_v31  ;;  %v2698_v38 = vpop.f32.mrb[14].mxu0  ;;  %591 = vrot.lane.b32.xlu0 %v3089_v4, %s3009_s13  ;;  %v856_v31 = vsub.s32 3, %v768_v9 }
 0x105   : > { %4678 = vst [vmem:[#allocation11_spill] sm:$0xff] %v3333_v30  ;;  %v3343_v41 = vadd.f32 %v2698_v38, %v3239_v52  ;;  %v467_v56 = vpop.f32.mrb[15].mxu0 }
 0x106   : > { %4679 = vst [vmem:[#allocation12_spill] sm:$0xff] %v3338_v37  ;;  %v3346_v59 = vadd.f32 %v3239_v52, %v467_v56  ;;  %v3398_v38 = vrot.slane %v499_v13, %v856_v31  ;;  %v3010_v56 = vmov 0  }
 0x107   : > { %4680 = vst [vmem:[#allocation13_spill] sm:$0xff] %v3343_v41  ;;  %593 = vrot.lane.b32.xlu1 %v3078_v3, %s3009_s13 }
 0x108   : > { %4681 = vst [vmem:[#allocation14_spill] sm:$0xff] %v3346_v59  ;;  %597 = vrot.lane.b32.xlu0 %v3107_v6, %s3009_s13 }
 0x10b   : > { %595 = vrot.lane.b32.xlu1 %v3095_v5, %s3009_s13 }
 0x10c   : > { %601 = vrot.lane.b32.xlu0 %v3128_v17, %s3009_s13 }
 0x10f   : > { %599 = vrot.lane.b32.xlu1 %v3122_v16, %s3009_s13 }
 0x110   : > { %605 = vrot.lane.b32.xlu0 %v3152_v25, %s3009_s13 }
 0x113   : > { %603 = vrot.lane.b32.xlu1 %v3138_v20, %s3009_s13 }
 0x114   : > { %609 = vrot.lane.b32.xlu0 %v3170_v29, %s3009_s13 }
 0x117   : > { %607 = vrot.lane.b32.xlu1 %v3157_v26, %s3009_s13 }
 0x118   : > { %613 = vrot.lane.b32.xlu0 %v3186_v35, %s3009_s13 }
 0x11b   : > { %611 = vrot.lane.b32.xlu1 %v3177_v32, %s3009_s13 }
 0x165   : > { %v674_v4 = vpop.permute.xlu1 %673 }
 0x166   : > { %v672_v2 = vpop.permute.xlu0 %671  ;;  %v697_v5 = vsel %vm357_vm0, %v674_v4, 0 }
 0x167   : > { %2883 = vmatprep.subr.msk.bf16.mxu1 %vm357_vm0, %v672_v2  ;;  %v694_v3 = vsel %vm357_vm0, %v672_v2, 0  ;;  %v766_v2 = vsel %vm500_vm1, 1, %v3010_v56  ;;  %v3466_v56 = vld [vmem:[%s4608_s5 + $0x8] sm:$0xff] }
 0x168   : > { %2700 = vmatpush3.bf16.xpose.msra.mxu1 %v694_v3  ;;  %v3400_v3 = vrot.slane %v766_v2, %v769_v10  ;;  %v3445_v9 = vrot.slane %v766_v2, %v856_v31  ;;  %4685 = vst [vmem:[#allocation18_spill] sm:$0xff] %v3466_v56 }
 0x169   : > { %2884 = vmatprep.subr.msk.bf16.mxu1 %vm357_vm0, %v674_v4  ;;  %v678_v17 = vpop.permute.xlu1 %677  ;;  %v3405_v4 = vld [vmem:[%s4608_s5 + $0x10] sm:$0xff] }
 0x16a   : > { %v676_v6 = vpop.permute.xlu0 %675  ;;  %v703_v20 = vsel %vm357_vm0, %v678_v17, 0  ;;  %4682 = vst [vmem:[#allocation15_spill] sm:$0xff] %v3405_v4  ;;  %vm771_vm2 = vcmp.eq.s32.totalorder %v3400_v3, 1  ;;  %vm858_vm5 = vcmp.eq.s32.totalorder %v3445_v9, 1 }
 0x16b   : > { %v700_v16 = vsel %vm357_vm0, %v676_v6, 0 }
 0x16d   : > { %v682_v29 = vpop.permute.xlu1 %681 }
 0x16e   : > { %v680_v25 = vpop.permute.xlu0 %679  ;;  %v709_v32 = vsel %vm357_vm0, %v682_v29, 0 }
 0x16f   : > { %v706_v26 = vsel %vm357_vm0, %v680_v25, 0 }
 0x170   : > { %2702 = vmatpush3.bf16.xpose.msra.mxu1 %v697_v5  ;;  %v3410_v5 = vld [vmem:[%s4608_s5] sm:$0xff] }
 0x171   : > { %2885 = vmatprep.subr.msk.bf16.mxu1 %vm357_vm0, %v676_v6  ;;  %v686_v61 = vpop.permute.xlu1 %685  ;;  %4683 = vst [vmem:[#allocation16_spill] sm:$0xff] %v3410_v5 }
 0x172   : > { %v684_v35 = vpop.permute.xlu0 %683  ;;  %v715_v63 = vsel %vm357_vm0, %v686_v61, 0 }
 0x173   : > { %v712_v52 = vsel %vm357_vm0, %v684_v35, 0 }
 0x178   : > { %2704 = vmatpush3.bf16.xpose.msra.mxu1 %v700_v16  ;;  %v3413_v16 = vrot.slane %v766_v2, %v798_v14 }
 0x179   : > { %2886 = vmatprep.subr.msk.bf16.mxu1 %vm357_vm0, %v678_v17 }
 0x17a   : > { %vm800_vm3 = vcmp.eq.s32.totalorder %v3413_v16, 1 }
 0x180   : > { %2706 = vmatpush3.bf16.xpose.msra.mxu1 %v703_v20 }
 0x181   : > { %2887 = vmatprep.subr.msk.bf16.mxu1 %vm357_vm0, %v680_v25 }
 0x188   : > { %2708 = vmatpush3.bf16.xpose.msra.mxu1 %v706_v26 }
 0x189   : > { %2888 = vmatprep.subr.msk.bf16.mxu1 %vm357_vm0, %v682_v29 }
 0x190   : > { %2710 = vmatpush3.bf16.xpose.msra.mxu1 %v709_v32 }
 0x191   : > { %2889 = vmatprep.subr.msk.bf16.mxu1 %vm357_vm0, %v684_v35 }
 0x198   : > { %2712 = vmatpush3.bf16.xpose.msra.mxu1 %v712_v52  ;;  %v3428_v52 = vrot.slane %v766_v2, %v827_v24 }
 0x199   : > { %2890 = vmatprep.subr.msk.bf16.mxu1 %vm357_vm0, %v686_v61  ;;  %v3433_v61 = vld [vmem:[%s4608_s5 + $0x18] sm:$0xff] }
 0x19a   : > { %4684 = vst [vmem:[#allocation17_spill] sm:$0xff] %v3433_v61  ;;  %vm829_vm4 = vcmp.eq.s32.totalorder %v3428_v52, 1 }
 0x1a0   : > { %2714 = vmatpush3.bf16.xpose.msra.mxu1 %v715_v63 }
 0x1a7   : > { %2716 = vmatmul.mubr.msk.bf16.vlgmr.msra.gmra.mrb[0].mxu1 %vm357_vm0, %v662_v0 }
 0x27a   : > { %v2717_v6 = vpop.f32.mrb[0].mxu1 }
 0x27b   : > { %v3416_v17 = vadd.f32 %v2717_v6, %v3405_v4  ;;  %v751_v20 = vpop.f32.mrb[1].mxu1 }
 0x27c   : > { %v3419_v25 = vadd.f32 %v751_v20, %v3410_v5  ;;  %v2718_v26 = vpop.f32.mrb[2].mxu1 }
 0x27d   : > { %v754_v29 = vpop.f32.mrb[3].mxu1  ;;  %v774_v32 = vsel %vm771_vm2, %v3416_v17, -1e+30  ;;  %v803_v63 = vsel %vm800_vm3, %v3416_v17, -1e+30  ;;  %v3439_v0 = vadd.f32 %v2718_v26, %v3433_v61 }
 0x27e   : > { %780 = vmax.xlane.f32.xlu1 %v774_v32  ;;  %v772_v35 = vsel %vm771_vm2, %v3419_v25, -1e+30  ;;  %v801_v7 = vsel %vm800_vm3, %v3419_v25, -1e+30  ;;  %v832_v10 = vsel %vm829_vm4, %v3416_v17, -1e+30  ;;  %v3472_v6 = vadd.f32 %v754_v29, %v3466_v56 }
 0x27f   : > { %776 = vmax.xlane.f32.xlu0 %v772_v35  ;;  %v775_v13 = vsel %vm771_vm2, %v3439_v0, -1e+30  ;;  %v861_v14 = vsel %vm858_vm5, %v3416_v17, -1e+30  ;;  %v804_v24 = vsel %vm800_vm3, %v3439_v0, -1e+30  ;;  %v3483_v35 = vpop.permute.xlu1 %589 }
 0x280   : > { %v830_v31 = vsel %vm829_vm4, %v3419_v25, -1e+30  ;;  %v833_v2 = vsel %vm829_vm4, %v3439_v0, -1e+30  ;;  %v859_v20 = vsel %vm858_vm5, %v3419_v25, -1e+30 }
 0x281   : > { %v862_v26 = vsel %vm858_vm5, %v3439_v0, -1e+30  ;;  %v773_v32 = vsel %vm771_vm2, %v3472_v6, -1e+30  ;;  %4686 = vst [vmem:[#allocation19_spill] sm:$0xff] %v3483_v35 }
 0x282   : > { %809 = vmax.xlane.f32.xlu1 %v803_v63  ;;  %v802_v30 = vsel %vm800_vm3, %v3472_v6, -1e+30 }
 0x283   : > { %805 = vmax.xlane.f32.xlu0 %v801_v7  ;;  %v3485_v63 = vpop.permute.xlu1 %593  ;;  %v3489_v7 = vpop.permute.xlu0 %591 }
 0x284   : > { %4687 = vst [vmem:[#allocation20_spill] sm:$0xff] %v3485_v63  ;;  %4689 = vst [vmem:[#allocation22_spill] sm:$0xff] %v3489_v7 }
 0x286   : > { %838 = vmax.xlane.f32.xlu1 %v832_v10 }
 0x287   : > { %782 = vmax.xlane.f32.xlu0 %v775_v13  ;;  %v3487_v29 = vpop.permute.xlu1 %595 }
 0x288   : > { %4688 = vst [vmem:[#allocation21_spill] sm:$0xff] %v3487_v29  ;;  %v640_v10 = vmul.f32 %v3487_v29, %v3252_v60 }
 0x28a   : > { %867 = vmax.xlane.f32.xlu1 %v861_v14  ;;  %v639_v14 = vmul.f32 %v3485_v63, %v3244_v55 }
 0x28b   : > { %811 = vmax.xlane.f32.xlu0 %v804_v24  ;;  %v3495_v13 = vpop.permute.xlu1 %599  ;;  %v637_v24 = vmul.f32 %v3483_v35, %v3249_v58 }
 0x28c   : > { %4690 = vst [vmem:[#allocation23_spill] sm:$0xff] %v3495_v13 }
 0x28e   : > { %834 = vmax.xlane.f32.xlu1 %v830_v31  ;;  %v638_v31 = vmul.f32 %v3489_v7, %v3255_v62 }
 0x28f   : > { %840 = vmax.xlane.f32.xlu0 %v833_v2  ;;  %v3505_v2 = vpop.permute.xlu0 %597 }
 0x290   : > { %4691 = vst [vmem:[#allocation24_spill] sm:$0xff] %v3505_v2 }
 0x292   : > { %863 = vmax.xlane.f32.xlu1 %v859_v20  ;;  %v642_v20 = vmul.f32 %v3495_v13, %v3255_v62 }
 0x293   : > { %869 = vmax.xlane.f32.xlu0 %v862_v26  ;;  %v641_v26 = vmul.f32 %v3505_v2, %v3249_v58 }
 0x296   : > { %778 = vmax.xlane.f32.xlu1 %v773_v32  ;;  %v655_v32 = vpack.c.bf16 %v642_v20, %v641_v26 }
 0x2a7   : > { %615 = vrot.lane.b32.xlu1 %v3191_v36, %s3009_s13  ;;  %v654_v36 = vpack.c.bf16 %v640_v10, %v639_v14  ;;  %v860_v10 = vsel %vm858_vm5, %v3472_v6, -1e+30  ;;  %v3525_v14 = vpop.permute.xlu0 %601 }
 0x2a8   : > { %4692 = vst [vmem:[#allocation25_spill] sm:$0xff] %v3525_v14 }
 0x2a9   : > { %617 = vrot.lane.b32.xlu0 %v3204_v39, %s3009_s13  ;;  %v653_v39 = vpack.c.bf16 %v638_v31, %v637_v24  ;;  %v3527_v24 = vpop.permute.xlu1 %603 }
 0x2aa   : > { %4693 = vst [vmem:[#allocation26_spill] sm:$0xff] %v3527_v24 }
 0x2ab   : > { %619 = vrot.lane.b32.xlu1 %v3209_v40, %s3009_s13  ;;  %v831_v40 = vsel %vm829_vm4, %v3472_v6, -1e+30  ;;  %v3529_v31 = vpop.permute.xlu0 %605 }
 0x2ac   : > { %4694 = vst [vmem:[#allocation27_spill] sm:$0xff] %v3529_v31 }
 0x2ad   : > { %995 = vrot.lane.b32.xlu0 %v654_v36, %s3009_s13  ;;  %v3531_v36 = vpop.permute.xlu1 %607 }
 0x2ae   : > { %4695 = vst [vmem:[#allocation28_spill] sm:$0xff] %v3531_v36 }
 0x2af   : > { %993 = vrot.lane.b32.xlu1 %v653_v39, %s3009_s13  ;;  %v3533_v20 = vpop.permute.xlu0 %609 }
 0x2b0   : > { %4696 = vst [vmem:[#allocation29_spill] sm:$0xff] %v3533_v20 }
 0x2b1   : > { %997 = vrot.lane.b32.xlu0 %v655_v32, %s3009_s13 }
 0x2b3   : > { %v3537_v39 = vpop.permute.xlu0 %613 }
 0x2d0   : > { %807 = vmax.xlane.f32.xlu0 %v802_v30  ;;  %v3535_v30 = vpop.permute.xlu1 %611 }
 0x2d1   : > { %4697 = vst [vmem:[#allocation30_spill] sm:$0xff] %v3535_v30 }
 0x2d4   : > { %836 = vmax.xlane.f32.xlu0 %v831_v40 }
 0x2d8   : > { %865 = vmax.xlane.f32.xlu0 %v860_v10 }
 0x30b   : > { %v781_v26 = vpop.xlane.xlu1 %780 }
 0x30c   : > { %v777_v32 = vpop.xlane.xlu0 %776  ;;  %v790_v59 = vmul.f32 %v3392_v19, %v781_v26 }
 0x30f   : > { %v810_v40 = vpop.xlane.xlu1 %809 }
 0x310   : > { %v806_v41 = vpop.xlane.xlu0 %805  ;;  %v819_v10 = vmul.f32 %v3394_v21, %v810_v40  ;;  %v788_v40 = vmul.f32 %v3392_v19, %v777_v32 }
 0x311   : > { %v817_v35 = vmul.f32 %v3394_v21, %v806_v41 }
 0x312   : > { %v823_v11 = vadd.f32 %v819_v10, %v790_v59 }
 0x313   : > { %v839_v37 = vpop.xlane.xlu1 %838 }
 0x314   : > { %v848_v8 = vmul.f32 %v3396_v28, %v839_v37  ;;  %v783_v15 = vpop.xlane.xlu0 %782 }
 0x315   : > { %v791_v59 = vmul.f32 %v3392_v19, %v783_v15 }
 0x316   : > { %v852_v13 = vadd.f32 %v848_v8, %v823_v11  ;;  %v821_v11 = vadd.f32 %v817_v35, %v788_v40 }
 0x317   : > { %v868_v23 = vpop.xlane.xlu1 %867 }
 0x318   : > { %v877_v2 = vmul.f32 %v3398_v38, %v868_v23  ;;  %v812_v7 = vpop.xlane.xlu0 %811 }
 0x319   : > { %v820_v63 = vmul.f32 %v3394_v21, %v812_v7 }
 0x31a   : > { %v881_v29 = vadd.f32 %v877_v2, %v852_v13 }
 0x31b   : > { %v835_v56 = vpop.xlane.xlu1 %834  ;;  %v824_v10 = vadd.f32 %v820_v63, %v791_v59 }
 0x31c   : > { %v885_v61 = vsub.f32 %v3416_v17, %v881_v29  ;;  %v846_v26 = vmul.f32 %v3396_v28, %v835_v56  ;;  %v841_v37 = vpop.xlane.xlu0 %840 }
 0x31d   : > { %v849_v8 = vmul.f32 %v3396_v28, %v841_v37 }
 0x31e   : > { %v891_v23 = vmul.f32 1.442695, %v885_v61  ;;  %v850_v41 = vadd.f32 %v846_v26, %v821_v11 }
 0x31f   : > { %v864_v5 = vpop.xlane.xlu1 %863  ;;  %v853_v2 = vadd.f32 %v849_v8, %v824_v10 }
 0x320   : > { %2931 = vpow2.f32 %v891_v23  ;;  %v875_v7 = vmul.f32 %v3398_v38, %v864_v5  ;;  %v870_v13 = vpop.xlane.xlu0 %869 }
 0x321   : > { %v878_v32 = vmul.f32 %v3398_v38, %v870_v13 }
 0x322   : > { %v879_v17 = vadd.f32 %v875_v7, %v850_v41 }
 0x323   : > { %v882_v29 = vadd.f32 %v878_v32, %v853_v2  ;;  %v779_v56 = vpop.xlane.xlu1 %778 }
 0x324   : > { %v883_v4 = vsub.f32 %v3419_v25, %v879_v17  ;;  %v3556_v63 = vpop.permute.xlu0 %617 }
 0x325   : > { %v886_v15 = vsub.f32 %v3439_v0, %v882_v29  ;;  %4698 = vst [vmem:[#allocation31_spill] sm:$0xff] %v3556_v63 }
 0x326   : > { %v887_v37 = vmul.f32 1.442695, %v883_v4 }
 0x327   : > { %v893_v35 = vmul.f32 1.442695, %v886_v15  ;;  %v3554_v61 = vpop.permute.xlu1 %615 }
 0x328   : > { %2933 = vpow2.f32 %v887_v37  ;;  %v996_v4 = vpop.permute.xlu0 %995  ;;  %v646_v37 = vmul.f32 %v3531_v36, %v3255_v62 }
 0x329   : > { %2935 = vpow2.f32 %v893_v35 }
 0x32a   : > { %v3558_v40 = vpop.eup %2931 }
 0x32b   : > { %v3560_v5 = vpop.permute.xlu1 %619  ;;  %v957_v26 = vsel %vm858_vm5, %v3558_v40, 0.0  ;;  %v897_v25 = vsel %vm771_vm2, %v3558_v40, 0.0  ;;  %v917_v59 = vsel %vm800_vm3, %v3558_v40, 0.0  ;;  %v937_v11 = vsel %vm829_vm4, %v3558_v40, 0.0 }
 0x32c   : > { %4699 = vst [vmem:[#allocation32_spill] sm:$0xff] %v3560_v5  ;;  %963 = vadd.xlane.f32.xlu1 %v957_v26  ;;  %903 = vadd.xlane.f32.xlu0 %v897_v25  ;;  %v998_v41 = vpop.permute.xlu0 %997  ;;  %v645_v26 = vmul.f32 %v3529_v31, %v3249_v58 }
 0x32f   : > { %v994_v0 = vpop.permute.xlu1 %993 }
 0x330   : > { %2719 = vmatprep.subr.bf16.mxu0 %v994_v0  ;;  %923 = vadd.xlane.f32.xlu0 %v917_v59 }
 0x331   : > { %2720 = vmatpush3.bf16.msra.mxu0 %v994_v0  ;;  %v648_v0 = vmul.f32 %v3535_v30, %v3252_v60 }
 0x332   : > { %v3571_v8 = vpop.eup %2933  ;;  %2721 = vmatprep.subr.bf16.mxu0 %v996_v4 }
 0x333   : > { %v935_v23 = vsel %vm829_vm4, %v3571_v8, 0.0  ;;  %v3579_v10 = vpop.eup %2935  ;;  %v895_v7 = vsel %vm771_vm2, %v3571_v8, 0.0  ;;  %v915_v2 = vsel %vm800_vm3, %v3571_v8, 0.0  ;;  %v955_v32 = vsel %vm858_vm5, %v3571_v8, 0.0 }
 0x334   : > { %943 = vadd.xlane.f32.xlu0 %v937_v11  ;;  %939 = vadd.xlane.f32.xlu1 %v935_v23  ;;  %v958_v13 = vsel %vm858_vm5, %v3579_v10, 0.0  ;;  %v898_v17 = vsel %vm771_vm2, %v3579_v10, 0.0  ;;  %v918_v29 = vsel %vm800_vm3, %v3579_v10, 0.0  ;;  %v938_v15 = vsel %vm829_vm4, %v3579_v10, 0.0 }
 0x335   : > { %2722 = vmatpush3.bf16.msra.mxu0 %v996_v4  ;;  %v657_v4 = vpack.c.bf16 %v646_v37, %v645_v26  ;;  %v789_v11 = vmul.f32 %v3392_v19, %v779_v56  ;;  %v649_v56 = vmul.f32 %v3537_v39, %v3249_v58  ;;  %v643_v58 = vmul.f32 %v3525_v14, %v3244_v55 }
 0x336   : > { %2723 = vmatprep.subr.bf16.mxu0 %v998_v41 }
 0x338   : > { %899 = vadd.xlane.f32.xlu0 %v895_v7  ;;  %965 = vadd.xlane.f32.xlu1 %v958_v13 }
 0x339   : > { %2724 = vmatpush3.bf16.msra.mxu0 %v998_v41  ;;  %v647_v41 = vmul.f32 %v3533_v20, %v3244_v55 }
 0x33b   : > { %v658_v13 = vpack.c.bf16 %v648_v0, %v647_v41 }
 0x33c   : > { %919 = vadd.xlane.f32.xlu0 %v915_v2  ;;  %v650_v2 = vmul.f32 %v3554_v61, %v3255_v62 }
 0x33e   : > { %v659_v37 = vpack.c.bf16 %v650_v2, %v649_v56 }
 0x340   : > { %959 = vadd.xlane.f32.xlu0 %v955_v32 }
 0x344   : > { %905 = vadd.xlane.f32.xlu0 %v898_v17 }
 0x348   : > { %925 = vadd.xlane.f32.xlu0 %v918_v29 }
 0x34c   : > { %945 = vadd.xlane.f32.xlu0 %v938_v15 }
 0x35d   : > { %v808_v35 = vpop.xlane.xlu0 %807 }
 0x35e   : > { %v818_v25 = vmul.f32 %v3394_v21, %v808_v35 }
 0x360   : > { %v822_v7 = vadd.f32 %v818_v25, %v789_v11  ;;  %v1066_v11 = vmul.f32 %v3218_v43, %v3283_v22 }
 0x361   : > { %v837_v59 = vpop.xlane.xlu0 %836 }
 0x362   : > { %v847_v23 = vmul.f32 %v3396_v28, %v837_v59  ;;  %1001 = vrot.lane.b32.xlu0 %v657_v4, %s3009_s13  ;;  %v644_v4 = vmul.f32 %v3527_v24, %v3252_v60  ;;  %v1067_v59 = vmul.f32 %v3222_v45, %v3296_v34 }
 0x364   : > { %v851_v17 = vadd.f32 %v847_v23, %v822_v7  ;;  %v656_v0 = vpack.c.bf16 %v644_v4, %v643_v58  ;;  %v1082_v41 = vpack.c.bf16 %v1067_v59, %v1066_v11  ;;  %v1070_v7 = vmul.f32 %v3226_v47, %v3283_v22 }
 0x365   : > { %v866_v32 = vpop.xlane.xlu0 %865  ;;  %v1069_v58 = vmul.f32 %v3220_v44, %v3289_v27  ;;  %v1072_v59 = vmul.f32 %v3230_v49, %v3277_v18  ;;  %v1073_v11 = vmul.f32 %v3228_v48, %v3289_v27 }
 0x366   : > { %v876_v29 = vmul.f32 %v3398_v38, %v866_v32  ;;  %1003 = vrot.lane.b32.xlu0 %v658_v13, %s3009_s13  ;;  %v1071_v13 = vmul.f32 %v3224_v46, %v3296_v34 }
 0x368   : > { %v880_v15 = vadd.f32 %v876_v29, %v851_v17  ;;  %v1084_v32 = vpack.c.bf16 %v1071_v13, %v1070_v7  ;;  %v1074_v17 = vmul.f32 %v3234_v51, %v3283_v22  ;;  %v1075_v29 = vmul.f32 %v3232_v50, %v3296_v34 }
 0x369   : > { %v1080_v7 = vmul.f32 %v3303_v54, %v3277_v18  ;;  %v1081_v13 = vmul.f32 %v3293_v33, %v3289_v27 }
 0x36a   : > { %v884_v35 = vsub.f32 %v3472_v6, %v880_v15  ;;  %1005 = vrot.lane.b32.xlu0 %v659_v37, %s3009_s13  ;;  %v1086_v56 = vpack.c.bf16 %v1075_v29, %v1074_v17  ;;  %v1078_v15 = vmul.f32 %v3271_v12, %v3283_v22  ;;  %v1079_v37 = vmul.f32 %v3261_v1, %v3296_v34 }
 0x36c   : > { %v889_v26 = vmul.f32 1.442695, %v884_v35  ;;  %v1088_v35 = vpack.c.bf16 %v1079_v37, %v1078_v15 }
 0x36e   : > { %2937 = vpow2.f32 %v889_v26  ;;  %v652_v26 = vmul.f32 %v3560_v5, %v3252_v60  ;;  %v1085_v60 = vpack.c.bf16 %v1073_v11, %v1072_v59 }
 0x378   : > { %v3622_v25 = vpop.eup %2937 }
 0x379   : > { %v896_v62 = vsel %vm771_vm2, %v3622_v25, 0.0  ;;  %v916_v6 = vsel %vm800_vm3, %v3622_v25, 0.0  ;;  %v936_v23 = vsel %vm829_vm4, %v3622_v25, 0.0  ;;  %v956_v2 = vsel %vm858_vm5, %v3622_v25, 0.0 }
 0x37a   : > { %901 = vadd.xlane.f32.xlu1 %v896_v62  ;;  %v651_v62 = vmul.f32 %v3556_v63, %v3244_v55  ;;  %v1076_v55 = vmul.f32 %v3246_v57, %v3277_v18 }
 0x37c   : > { %v660_v4 = vpack.c.bf16 %v652_v26, %v651_v62 }
 0x389   : > { %921 = vadd.xlane.f32.xlu0 %v916_v6  ;;  %v1068_v6 = vmul.f32 %v3216_v42, %v3277_v18 }
 0x38b   : > { %999 = vrot.lane.b32.xlu1 %v656_v0, %s3009_s13  ;;  %v1083_v0 = vpack.c.bf16 %v1069_v58, %v1068_v6 }
 0x38d   : > { %941 = vadd.xlane.f32.xlu0 %v936_v23  ;;  %v1077_v23 = vmul.f32 %v3241_v53, %v3289_v27 }
 0x38f   : > { %1124 = vrot.lane.b32.xlu1 %v1082_v41, %s3008_s12  ;;  %v1087_v41 = vpack.c.bf16 %v1077_v23, %v1076_v55 }
 0x391   : > { %961 = vadd.xlane.f32.xlu0 %v956_v2  ;;  %v1089_v2 = vpack.c.bf16 %v1081_v13, %v1080_v7 }
 0x393   : > { %1128 = vrot.lane.b32.xlu1 %v1084_v32, %s3008_s12 }
 0x397   : > { %1132 = vrot.lane.b32.xlu1 %v1086_v56, %s3008_s12 }
 0x39b   : > { %1136 = vrot.lane.b32.xlu1 %v1088_v35, %s3008_s12 }
 0x3a7   : > { %1007 = vrot.lane.b32.xlu0 %v660_v4, %s3009_s13 }
 0x3ab   : > { %1126 = vrot.lane.b32.xlu0 %v1083_v0, %s3008_s12 }
 0x3af   : > { %1130 = vrot.lane.b32.xlu0 %v1085_v60, %s3008_s12 }
 0x3b3   : > { %1134 = vrot.lane.b32.xlu0 %v1087_v41, %s3008_s12 }
 0x3b7   : > { %1138 = vrot.lane.b32.xlu0 %v1089_v2, %s3008_s12 }
 0x3b9   : > { %v904_v32 = vpop.xlane.xlu0 %903  ;;  %v964_v26 = vpop.xlane.xlu1 %963 }
 0x3bd   : > { %v924_v17 = vpop.xlane.xlu0 %923 }
 0x3be   : > { %v929_v13 = vmul.f32 %v924_v17, %v3394_v21 }
 0x3c1   : > { %v944_v29 = vpop.xlane.xlu0 %943  ;;  %v940_v4 = vpop.xlane.xlu1 %939 }
 0x3c2   : > { %v949_v50 = vmul.f32 %v944_v29, %v3396_v28 }
 0x3c5   : > { %v900_v56 = vpop.xlane.xlu0 %899  ;;  %v966_v6 = vpop.xlane.xlu1 %965 }
 0x3c6   : > { %v907_v7 = vmul.f32 %v900_v56, %v3392_v19 }
 0x3c9   : > { %v920_v15 = vpop.xlane.xlu0 %919 }
 0x3ca   : > { %v927_v55 = vmul.f32 %v920_v15, %v3394_v21 }
 0x3cc   : > { %v931_v12 = vadd.f32 %v927_v55, %v907_v7 }
 0x3cd   : > { %v960_v37 = vpop.xlane.xlu0 %959 }
 0x3ce   : > { %v967_v17 = vmul.f32 %v960_v37, %v3398_v38 }
 0x3d1   : > { %v906_v35 = vpop.xlane.xlu0 %905 }
 0x3d2   : > { %v910_v2 = vmul.f32 %v906_v35, %v3392_v19 }
 0x3d5   : > { %v926_v62 = vpop.xlane.xlu0 %925 }
 0x3d6   : > { %v930_v23 = vmul.f32 %v926_v62, %v3394_v21  ;;  %v947_v62 = vmul.f32 %v940_v4, %v3396_v28 }
 0x3d8   : > { %v934_v15 = vadd.f32 %v930_v23, %v910_v2  ;;  %v951_v56 = vadd.f32 %v947_v62, %v931_v12  ;;  %v969_v23 = vmul.f32 %v964_v26, %v3398_v38 }
 0x3d9   : > { %v946_v58 = vpop.xlane.xlu0 %945 }
 0x3da   : > { %v950_v1 = vmul.f32 %v946_v58, %v3396_v28  ;;  %v971_v4 = vadd.f32 %v967_v17, %v951_v56 }
 0x3dc   : > { %v954_v63 = vadd.f32 %v950_v1, %v934_v15 }
 0x3dd   : > { %v1002_v0 = vpop.permute.xlu0 %1001 }
 0x3e1   : > { %v1004_v60 = vpop.permute.xlu0 %1003 }
 0x3e5   : > { %v1006_v41 = vpop.permute.xlu0 %1005 }
 0x407   : > { %v902_v59 = vpop.xlane.xlu1 %901 }
 0x40b   : > { %v1000_v11 = vpop.permute.xlu1 %999 }
 0x40c   : > { %2725 = vmatprep.subr.bf16.mxu0 %v1000_v11 }
 0x40d   : > { %2726 = vmatpush3.bf16.msra.mxu0 %v1000_v11  ;;  %v909_v11 = vmul.f32 %v904_v32, %v3392_v19  ;;  %v908_v32 = vmul.f32 %v902_v59, %v3392_v19 }
 0x40e   : > { %2727 = vmatprep.subr.bf16.mxu0 %v1002_v0 }
 0x40f   : > { %v933_v51 = vadd.f32 %v929_v13, %v909_v11 }
 0x411   : > { %2728 = vmatpush3.bf16.msra.mxu0 %v1002_v0  ;;  %v953_v58 = vadd.f32 %v949_v50, %v933_v51 }
 0x412   : > { %2729 = vmatprep.subr.bf16.mxu0 %v1004_v60 }
 0x413   : > { %v973_v1 = vadd.f32 %v969_v23, %v953_v58 }
 0x415   : > { %2730 = vmatpush3.bf16.msra.mxu0 %v1004_v60  ;;  %v970_v60 = vmul.f32 %v966_v6, %v3398_v38  ;;  %v1125_v6 = vpop.permute.xlu1 %1124 }
 0x416   : > { %2731 = vmatprep.subr.bf16.mxu0 %v1006_v41  ;;  %v922_v0 = vpop.xlane.xlu0 %921  ;;  %v1147_v58 = vsel %vm357_vm0, %v1125_v6, 0 }
 0x417   : > { %v928_v35 = vmul.f32 %v922_v0, %v3394_v21  ;;  %v974_v7 = vadd.f32 %v970_v60, %v954_v63 }
 0x419   : > { %2732 = vmatpush3.bf16.msra.mxu0 %v1006_v41  ;;  %v932_v13 = vadd.f32 %v928_v35, %v908_v32  ;;  %2939 = vrcp.f32 %v974_v7  ;;  %v1114_v35 = vpack.c.bf16 %v3296_v34, %v3283_v22 }
 0x41a   : > { %v942_v55 = vpop.xlane.xlu0 %941  ;;  %2941 = vrcp.f32 %v971_v4 }
 0x41b   : > { %v948_v29 = vmul.f32 %v942_v55, %v3396_v28  ;;  %2943 = vrcp.f32 %v973_v1 }
 0x41d   : > { %v952_v2 = vadd.f32 %v948_v29, %v932_v13 }
 0x41e   : > { %v962_v12 = vpop.xlane.xlu0 %961 }
 0x41f   : > { %v968_v37 = vmul.f32 %v962_v12, %v3398_v38 }
 0x421   : > { %v972_v50 = vadd.f32 %v968_v37, %v952_v2  ;;  %v1115_v2 = vpack.c.bf16 %v3289_v27, %v3277_v18 }
 0x422   : > { %v1008_v51 = vpop.permute.xlu0 %1007 }
 0x423   : > { %2945 = vrcp.f32 %v972_v50  ;;  %2733 = vmatprep.subr.bf16.mxu0 %v1008_v51  ;;  %v2940_v26 = vpop.eup %2939 }
 0x424   : > { %2734 = vmatpush3.bf16.msra.mxu0 %v1008_v51  ;;  %v2942_v63 = vpop.eup %2941  ;;  %v982_v11 = vmul.f32 %v2940_v26, %v3579_v10  ;;  %v1129_v10 = vpop.permute.xlu1 %1128 }
 0x425   : > { %2891 = vmatprep.subr.msk.bf16.mxu0 %vm357_vm0, %v1125_v6  ;;  %v2944_v59 = vpop.eup %2943  ;;  %v979_v15 = vmul.f32 %v2942_v63, %v3571_v8 }
 0x426   : > { %v981_v62 = vmul.f32 %v2944_v59, %v3558_v40  ;;  %v1127_v60 = vpop.permute.xlu0 %1126  ;;  %v1153_v40 = vsel %vm357_vm0, %v1129_v10, 0 }
 0x427   : > { %v1150_v8 = vsel %vm357_vm0, %v1127_v60, 0 }
 0x428   : > { %v984_v17 = vpack.c.bf16 %v982_v11, %v981_v62  ;;  %v1133_v32 = vpop.permute.xlu1 %1132 }
 0x429   : > { %v1159_v29 = vsel %vm357_vm0, %v1133_v32, 0 }
 0x42c   : > { %v1137_v4 = vpop.permute.xlu1 %1136 }
 0x42d   : > { %v2946_v41 = vpop.eup %2945  ;;  %v1165_v13 = vsel %vm357_vm0, %v1137_v4, 0 }
 0x42e   : > { %v980_v0 = vmul.f32 %v2946_v41, %v3622_v25  ;;  %v1131_v25 = vpop.permute.xlu0 %1130  ;;  %v4704_v41 = vld [vmem:[#allocation15_spill] sm:$0xff] }
 0x42f   : > { %v1156_v55 = vsel %vm357_vm0, %v1131_v25, 0 }
 0x430   : > { %v983_v56 = vpack.c.bf16 %v980_v0, %v979_v15  ;;  %v4705_v0 = vld [vmem:[#allocation16_spill] sm:$0xff] }
 0x432   : > { %2735 = vmatprep.mubr.bf16.mxu0 %v983_v56  ;;  %v1135_v23 = vpop.permute.xlu0 %1134 }
 0x433   : > { %2736 = vmatmul.mubr.bf16.vlgmr.msra.gmra.mrb[16].mxu0 %v984_v17  ;;  %v1162_v7 = vsel %vm357_vm0, %v1135_v23, 0 }
 0x434   : > { %2740 = vmatpush3.bf16.xpose.msra.mxu0 %v1147_v58  ;;  %2755 = vmatprep.mubr.msk.bf16.mxu0 %vm357_vm0, %v1114_v35  ;;  %v4706_v58 = vld [vmem:[#allocation17_spill] sm:$0xff] }
 0x435   : > { %2892 = vmatprep.subr.msk.bf16.mxu0 %vm357_vm0, %v1127_v60 }
 0x436   : > { %v1139_v1 = vpop.permute.xlu0 %1138 }
 0x437   : > { %v1168_v12 = vsel %vm357_vm0, %v1139_v1, 0 }
 0x43c   : > { %2742 = vmatpush3.bf16.xpose.msra.mxu0 %v1150_v8 }
 0x43d   : > { %2893 = vmatprep.subr.msk.bf16.mxu0 %vm357_vm0, %v1129_v10 }
 0x444   : > { %2744 = vmatpush3.bf16.xpose.msra.mxu0 %v1153_v40 }
 0x445   : > { %2894 = vmatprep.subr.msk.bf16.mxu0 %vm357_vm0, %v1131_v25 }
 0x44c   : > { %2746 = vmatpush3.bf16.xpose.msra.mxu0 %v1156_v55 }
 0x44d   : > { %2895 = vmatprep.subr.msk.bf16.mxu0 %vm357_vm0, %v1133_v32 }
 0x454   : > { %2748 = vmatpush3.bf16.xpose.msra.mxu0 %v1159_v29 }
 0x455   : > { %2896 = vmatprep.subr.msk.bf16.mxu0 %vm357_vm0, %v1135_v23  ;;  %v4707_v23 = vld [vmem:[#allocation18_spill] sm:$0xff] }
 0x45c   : > { %2750 = vmatpush3.bf16.xpose.msra.mxu0 %v1162_v7 }
 0x45d   : > { %2897 = vmatprep.subr.msk.bf16.mxu0 %vm357_vm0, %v1137_v4 }
 0x464   : > { %2752 = vmatpush3.bf16.xpose.msra.mxu0 %v1165_v13 }
 0x465   : > { %2898 = vmatprep.subr.msk.bf16.mxu0 %vm357_vm0, %v1139_v1 }
 0x46c   : > { %2754 = vmatpush3.bf16.xpose.msra.mxu0 %v1168_v12 }
 0x473   : > { %2756 = vmatmul.mubr.msk.bf16.vlgmr.msra.gmra.mrb[20].mxu0 %vm357_vm0, %v1115_v2 }
 0x506   : > { %v3728_v37 = vpop.f32.mrb[16].mxu0 }
 0x507   : > { %4700 = vst [vmem:[#allocation33_spill] sm:$0xff] %v3728_v37  ;;  %v3730_v50 = vpop.f32.mrb[17].mxu0 }
 0x508   : > { %4701 = vst [vmem:[#allocation34_spill] sm:$0xff] %v3730_v50  ;;  %v3732_v51 = vpop.f32.mrb[18].mxu0 }
 0x509   : > { %4702 = vst [vmem:[#allocation35_spill] sm:$0xff] %v3732_v51  ;;  %v3736_v26 = vpop.f32.mrb[19].mxu0 }
 0x50a   : > { %4703 = vst [vmem:[#allocation36_spill] sm:$0xff] %v3736_v26 }
 0x546   : > { %v2757_v59 = vpop.f32.mrb[20].mxu0 }
 0x547   : > { %v3741_v11 = vadd.f32 %v2757_v59, %v4704_v41  ;;  %v1204_v15 = vpop.f32.mrb[21].mxu0 }
 0x548   : > { %v3744_v62 = vadd.f32 %v1204_v15, %v4705_v0  ;;  %v2758_v56 = vpop.f32.mrb[22].mxu0  ;;  %v4708_v0 = vld [vmem:[#allocation20_spill] sm:$0xff] }
 0x549   : > { %v1207_v17 = vpop.f32.mrb[23].mxu0  ;;  %v1221_v35 = vsel %vm771_vm2, %v3741_v11, -1e+30  ;;  %v3750_v60 = vadd.f32 %v2758_v56, %v4706_v58  ;;  %v1241_v10 = vsel %vm800_vm3, %v3741_v11, -1e+30  ;;  %v1092_v56 = vmul.f32 %v4708_v0, %v3277_v18  ;;  %v4710_v58 = vld [vmem:[#allocation19_spill] sm:$0xff] }
 0x54a   : > { %1227 = vmax.xlane.f32.xlu0 %v1221_v35  ;;  %v1219_v8 = vsel %vm771_vm2, %v3744_v62, -1e+30  ;;  %v1261_v25 = vsel %vm829_vm4, %v3741_v11, -1e+30  ;;  %v1239_v32 = vsel %vm800_vm3, %v3744_v62, -1e+30  ;;  %v3774_v7 = vadd.f32 %v1207_v17, %v4707_v23 }
 0x54b   : > { %1223 = vmax.xlane.f32.xlu1 %v1219_v8  ;;  %v1222_v40 = vsel %vm771_vm2, %v3750_v60, -1e+30  ;;  %v1242_v55 = vsel %vm800_vm3, %v3750_v60, -1e+30  ;;  %v1262_v29 = vsel %vm829_vm4, %v3750_v60, -1e+30  ;;  %v1090_v8 = vmul.f32 %v4710_v58, %v3283_v22 }
 0x54c   : > { %v1259_v4 = vsel %vm829_vm4, %v3744_v62, -1e+30  ;;  %v1282_v13 = vsel %vm858_vm5, %v3750_v60, -1e+30  ;;  %v1220_v1 = vsel %vm771_vm2, %v3774_v7, -1e+30 }
 0x54d   : > { %v1240_v12 = vsel %vm800_vm3, %v3774_v7, -1e+30  ;;  %v1279_v2 = vsel %vm858_vm5, %v3744_v62, -1e+30  ;;  %v1260_v59 = vsel %vm829_vm4, %v3774_v7, -1e+30 }
 0x54e   : > { %1247 = vmax.xlane.f32.xlu0 %v1241_v10  ;;  %v1281_v41 = vsel %vm858_vm5, %v3741_v11, -1e+30  ;;  %v1280_v15 = vsel %vm858_vm5, %v3774_v7, -1e+30  ;;  %v4709_v17 = vld [vmem:[#allocation21_spill] sm:$0xff]  ;;  %v4711_v10 = vld [vmem:[#allocation22_spill] sm:$0xff] }
 0x54f   : > { %1229 = vmax.xlane.f32.xlu1 %v1222_v40  ;;  %v1093_v35 = vmul.f32 %v4709_v17, %v3289_v27  ;;  %v1091_v40 = vmul.f32 %v4711_v10, %v3296_v34 }
 0x552   : > { %1267 = vmax.xlane.f32.xlu0 %v1261_v25  ;;  %v1107_v25 = vpack.c.bf16 %v1093_v35, %v1092_v56  ;;  %v1101_v56 = vmul.f32 %v3535_v30, %v3289_v27 }
 0x553   : > { %1249 = vmax.xlane.f32.xlu1 %v1242_v55  ;;  %v4712_v55 = vld [vmem:[#allocation24_spill] sm:$0xff] }
 0x556   : > { %1243 = vmax.xlane.f32.xlu0 %v1239_v32  ;;  %v1094_v32 = vmul.f32 %v4712_v55, %v3283_v22 }
 0x557   : > { %1269 = vmax.xlane.f32.xlu1 %v1262_v29  ;;  %v4713_v29 = vld [vmem:[#allocation23_spill] sm:$0xff] }
 0x558   : > { %v1095_v23 = vmul.f32 %v4713_v29, %v3296_v34 }
 0x55a   : > { %1263 = vmax.xlane.f32.xlu0 %v1259_v4  ;;  %v1106_v4 = vpack.c.bf16 %v1091_v40, %v1090_v8 }
 0x55b   : > { %1289 = vmax.xlane.f32.xlu1 %v1282_v13  ;;  %v1096_v13 = vmul.f32 %v3525_v14, %v3277_v18 }
 0x55e   : > { %1225 = vmax.xlane.f32.xlu0 %v1220_v1  ;;  %v1097_v1 = vmul.f32 %v3527_v24, %v3289_v27 }
 0x55f   : > { %1245 = vmax.xlane.f32.xlu1 %v1240_v12  ;;  %v1108_v12 = vpack.c.bf16 %v1095_v23, %v1094_v32 }
 0x562   : > { %1283 = vmax.xlane.f32.xlu0 %v1279_v2  ;;  %v1098_v2 = vmul.f32 %v3529_v31, %v3283_v22 }
 0x563   : > { %1265 = vmax.xlane.f32.xlu1 %v1260_v59  ;;  %v1099_v59 = vmul.f32 %v3531_v36, %v3296_v34 }
 0x565   : > { %v1110_v35 = vpack.c.bf16 %v1099_v59, %v1098_v2 }
 0x566   : > { %1287 = vmax.xlane.f32.xlu0 %v1281_v41  ;;  %v1109_v41 = vpack.c.bf16 %v1097_v1, %v1096_v13 }
 0x567   : > { %1285 = vmax.xlane.f32.xlu1 %v1280_v15  ;;  %v1100_v15 = vmul.f32 %v3533_v20, %v3277_v18 }
 0x569   : > { %v1111_v8 = vpack.c.bf16 %v1101_v56, %v1100_v15 }
 0x578   : > { %1411 = vrot.lane.b32.xlu1 %v1107_v25, %s3009_s13 }
 0x57c   : > { %1409 = vrot.lane.b32.xlu0 %v1106_v4, %s3009_s13 }
 0x580   : > { %1413 = vrot.lane.b32.xlu0 %v1108_v12, %s3009_s13 }
 0x584   : > { %1415 = vrot.lane.b32.xlu0 %v1109_v41, %s3009_s13 }
 0x588   : > { %1417 = vrot.lane.b32.xlu0 %v1110_v35, %s3009_s13 }
 0x58c   : > { %1419 = vrot.lane.b32.xlu0 %v1111_v8, %s3009_s13 }
 0x5d7   : > { %v1228_v40 = vpop.xlane.xlu0 %1227 }
 0x5d8   : > { %v1224_v25 = vpop.xlane.xlu1 %1223  ;;  %v1233_v51 = vmul.f32 %v1228_v40, %v3392_v19 }
 0x5d9   : > { %v1231_v2 = vmul.f32 %v1224_v25, %v3392_v19 }
 0x5db   : > { %v1248_v32 = vpop.xlane.xlu0 %1247 }
 0x5dc   : > { %v1230_v23 = vpop.xlane.xlu1 %1229  ;;  %v1253_v56 = vmul.f32 %v1248_v32, %v3394_v21 }
 0x5de   : > { %v1257_v36 = vadd.f32 %v1253_v56, %v1233_v51  ;;  %v1234_v56 = vmul.f32 %v1230_v23, %v3392_v19 }
 0x5df   : > { %v1268_v4 = vpop.xlane.xlu0 %1267 }
 0x5e0   : > { %v1250_v13 = vpop.xlane.xlu1 %1249  ;;  %v1273_v50 = vmul.f32 %v1268_v4, %v3396_v28 }
 0x5e2   : > { %v1277_v24 = vadd.f32 %v1273_v50, %v1257_v36  ;;  %v1254_v36 = vmul.f32 %v1250_v13, %v3394_v21 }
 0x5e3   : > { %v1244_v1 = vpop.xlane.xlu0 %1243 }
 0x5e4   : > { %v1270_v12 = vpop.xlane.xlu1 %1269  ;;  %v1251_v63 = vmul.f32 %v1244_v1, %v3394_v21 }
 0x5e6   : > { %v1255_v35 = vadd.f32 %v1251_v63, %v1231_v2 }
 0x5e7   : > { %v1264_v41 = vpop.xlane.xlu0 %1263 }
 0x5e8   : > { %v1290_v6 = vpop.xlane.xlu1 %1289  ;;  %v1271_v59 = vmul.f32 %v1264_v41, %v3396_v28 }
 0x5ea   : > { %v1275_v26 = vadd.f32 %v1271_v59, %v1255_v35 }
 0x5eb   : > { %v1226_v37 = vpop.xlane.xlu0 %1225 }
 0x5ec   : > { %v1246_v15 = vpop.xlane.xlu1 %1245  ;;  %v1232_v1 = vmul.f32 %v1226_v37, %v3392_v19 }
 0x5ed   : > { %v1252_v25 = vmul.f32 %v1246_v15, %v3394_v21 }
 0x5ef   : > { %v1284_v8 = vpop.xlane.xlu0 %1283  ;;  %v1256_v40 = vadd.f32 %v1252_v25, %v1232_v1 }
 0x5f0   : > { %v1291_v30 = vmul.f32 %v1284_v8, %v3398_v38  ;;  %v1266_v20 = vpop.xlane.xlu1 %1265 }
 0x5f1   : > { %v1272_v32 = vmul.f32 %v1266_v20, %v3396_v28 }
 0x5f2   : > { %v1295_v31 = vadd.f32 %v1291_v30, %v1275_v26 }
 0x5f3   : > { %v1288_v41 = vpop.xlane.xlu0 %1287  ;;  %v1276_v51 = vadd.f32 %v1272_v32, %v1256_v40 }
 0x5f4   : > { %v1293_v63 = vmul.f32 %v1288_v41, %v3398_v38  ;;  %v1286_v2 = vpop.xlane.xlu1 %1285  ;;  %v1299_v4 = vsub.f32 %v3744_v62, %v1295_v31  ;;  %v1258_v31 = vadd.f32 %v1254_v36, %v1234_v56  ;;  %v1294_v62 = vmul.f32 %v1290_v6, %v3398_v38 }
 0x5f5   : > { %v1292_v35 = vmul.f32 %v1286_v2, %v3398_v38  ;;  %v1102_v56 = vmul.f32 %v3537_v39, %v3283_v22 }
 0x5f6   : > { %v1297_v59 = vadd.f32 %v1293_v63, %v1277_v24  ;;  %v1303_v30 = vmul.f32 1.442695, %v1299_v4  ;;  %v1274_v24 = vmul.f32 %v1270_v12, %v3396_v28 }
 0x5f7   : > { %v1410_v8 = vpop.permute.xlu0 %1409  ;;  %v1296_v50 = vadd.f32 %v1292_v35, %v1276_v51 }
 0x5f8   : > { %v1301_v37 = vsub.f32 %v3741_v11, %v1297_v59  ;;  %2759 = vmatprep.subr.bf16.mxu1 %v1410_v8  ;;  %v1412_v15 = vpop.permute.xlu1 %1411  ;;  %v1278_v13 = vadd.f32 %v1274_v24, %v1258_v31 }
 0x5f9   : > { %2760 = vmatpush3.bf16.msra.mxu1 %v1410_v8  ;;  %v1300_v11 = vsub.f32 %v3774_v7, %v1296_v50 }
 0x5fa   : > { %v1307_v20 = vmul.f32 1.442695, %v1301_v37  ;;  %2761 = vmatprep.subr.bf16.mxu1 %v1412_v15  ;;  %v1298_v25 = vadd.f32 %v1294_v62, %v1278_v13  ;;  %v4714_v62 = vld [vmem:[#allocation10_spill] sm:$0xff] }
 0x5fb   : > { %v1414_v26 = vpop.permute.xlu0 %1413  ;;  %v1305_v41 = vmul.f32 1.442695, %v1300_v11  ;;  %v1483_v11 = vmul.f32 %v3222_v45, %v4714_v62 }
 0x5fc   : > { %2947 = vpow2.f32 %v1307_v20  ;;  %v1302_v12 = vsub.f32 %v3750_v60, %v1298_v25  ;;  %v4716_v25 = vld [vmem:[#allocation9_spill] sm:$0xff] }
 0x5fd   : > { %2762 = vmatpush3.bf16.msra.mxu1 %v1412_v15  ;;  %2949 = vpow2.f32 %v1303_v30 }
 0x5fe   : > { %2763 = vmatprep.subr.bf16.mxu1 %v1414_v26  ;;  %2951 = vpow2.f32 %v1305_v41  ;;  %v1309_v40 = vmul.f32 1.442695, %v1302_v12  ;;  %v1485_v41 = vmul.f32 %v3220_v44, %v4716_v25 }
 0x5ff   : > { %v1416_v1 = vpop.permute.xlu0 %1415 }
 0x600   : > { %2953 = vpow2.f32 %v1309_v40  ;;  %v1487_v40 = vmul.f32 %v3224_v46, %v4714_v62 }
 0x601   : > { %2764 = vmatpush3.bf16.msra.mxu1 %v1414_v26  ;;  %v1103_v26 = vmul.f32 %v3554_v61, %v3296_v34 }
 0x602   : > { %2765 = vmatprep.subr.bf16.mxu1 %v1416_v1 }
 0x603   : > { %v1418_v32 = vpop.permute.xlu0 %1417  ;;  %v1112_v31 = vpack.c.bf16 %v1103_v26, %v1102_v56  ;;  %v1105_v26 = vmul.f32 %v3560_v5, %v3289_v27  ;;  %v4722_v27 = vld [vmem:[#allocation4_spill] sm:$0xff] }
 0x605   : > { %2766 = vmatpush3.bf16.msra.mxu1 %v1416_v1  ;;  %v4715_v1 = vld [vmem:[#allocation8_spill] sm:$0xff] }
 0x606   : > { %v3849_v23 = vpop.eup %2947  ;;  %2767 = vmatprep.subr.bf16.mxu1 %v1418_v32  ;;  %v1482_v13 = vmul.f32 %v3218_v43, %v4715_v1 }
 0x607   : > { %v1373_v6 = vsel %vm858_vm5, %v3849_v23, 0.0  ;;  %v1313_v7 = vsel %vm771_vm2, %v3849_v23, 0.0  ;;  %v3858_v63 = vpop.eup %2949  ;;  %v1420_v2 = vpop.permute.xlu0 %1419  ;;  %v1333_v60 = vsel %vm800_vm3, %v3849_v23, 0.0  ;;  %v1353_v59 = vsel %vm829_vm4, %v3849_v23, 0.0 }
 0x608   : > { %1379 = vadd.xlane.f32.xlu0 %v1373_v6  ;;  %1319 = vadd.xlane.f32.xlu1 %v1313_v7  ;;  %v1311_v4 = vsel %vm771_vm2, %v3858_v63, 0.0  ;;  %v1331_v35 = vsel %vm800_vm3, %v3858_v63, 0.0  ;;  %v3872_v8 = vpop.eup %2951  ;;  %v1351_v51 = vsel %vm829_vm4, %v3858_v63, 0.0  ;;  %v1371_v15 = vsel %vm858_vm5, %v3858_v63, 0.0 }
 0x609   : > { %2768 = vmatpush3.bf16.msra.mxu1 %v1418_v32  ;;  %v1352_v37 = vsel %vm829_vm4, %v3872_v8, 0.0  ;;  %v1312_v34 = vsel %vm771_vm2, %v3872_v8, 0.0  ;;  %v1498_v22 = vpack.c.bf16 %v1483_v11, %v1482_v13  ;;  %v4717_v32 = vld [vmem:[#allocation7_spill] sm:$0xff]  ;;  %v1332_v6 = vsel %vm800_vm3, %v3872_v8, 0.0 }
 0x60a   : > { %2769 = vmatprep.subr.bf16.mxu1 %v1420_v2  ;;  %v3883_v36 = vpop.eup %2953  ;;  %v1484_v12 = vmul.f32 %v3216_v42, %v4717_v32  ;;  %v4719_v13 = vld [vmem:[#allocation3_spill] sm:$0xff] }
 0x60b   : > { %v1314_v30 = vsel %vm771_vm2, %v3883_v36, 0.0  ;;  %v1334_v20 = vsel %vm800_vm3, %v3883_v36, 0.0  ;;  %v1354_v50 = vsel %vm829_vm4, %v3883_v36, 0.0  ;;  %v1374_v24 = vsel %vm858_vm5, %v3883_v36, 0.0 }
 0x60c   : > { %1339 = vadd.xlane.f32.xlu1 %v1333_v60  ;;  %1315 = vadd.xlane.f32.xlu0 %v1311_v4  ;;  %v1499_v7 = vpack.c.bf16 %v1485_v41, %v1484_v12  ;;  %v1372_v60 = vsel %vm858_vm5, %v3872_v8, 0.0 }
 0x60d   : > { %2770 = vmatpush3.bf16.msra.mxu1 %v1420_v2  ;;  %v1486_v2 = vmul.f32 %v3226_v47, %v4715_v1 }
 0x60f   : > { %v1500_v4 = vpack.c.bf16 %v1487_v40, %v1486_v2  ;;  %v1495_v2 = vmul.f32 %v4722_v27, %v4714_v62 }
 0x610   : > { %1359 = vadd.xlane.f32.xlu1 %v1353_v59  ;;  %1335 = vadd.xlane.f32.xlu0 %v1331_v35  ;;  %v1488_v59 = vmul.f32 %v3230_v49, %v4717_v32  ;;  %v1489_v35 = vmul.f32 %v3228_v48, %v4716_v25 }
 0x614   : > { %1355 = vadd.xlane.f32.xlu1 %v1351_v51  ;;  %1357 = vadd.xlane.f32.xlu0 %v1352_v37  ;;  %v1501_v51 = vpack.c.bf16 %v1489_v35, %v1488_v59  ;;  %v1492_v37 = vmul.f32 %v3246_v57, %v4717_v32 }
 0x618   : > { %1375 = vadd.xlane.f32.xlu1 %v1371_v15  ;;  %v1493_v15 = vmul.f32 %v3241_v53, %v4716_v25 }
 0x61c   : > { %1321 = vadd.xlane.f32.xlu1 %v1314_v30  ;;  %v1503_v30 = vpack.c.bf16 %v1493_v15, %v1492_v37 }
 0x620   : > { %1341 = vadd.xlane.f32.xlu1 %v1334_v20  ;;  %v1496_v20 = vmul.f32 %v3303_v54, %v4717_v32 }
 0x624   : > { %1361 = vadd.xlane.f32.xlu1 %v1354_v50  ;;  %v1497_v50 = vmul.f32 %v3293_v33, %v4716_v25 }
 0x626   : > { %v1505_v56 = vpack.c.bf16 %v1497_v50, %v1496_v20 }
 0x628   : > { %1381 = vadd.xlane.f32.xlu1 %v1374_v24  ;;  %v4718_v24 = vld [vmem:[#allocation31_spill] sm:$0xff] }
 0x62a   : > { %1421 = vrot.lane.b32.xlu0 %v1112_v31, %s3009_s13  ;;  %v1104_v31 = vmul.f32 %v4718_v24, %v3277_v18 }
 0x62c   : > { %1317 = vadd.xlane.f32.xlu1 %v1312_v34  ;;  %v1113_v11 = vpack.c.bf16 %v1105_v26, %v1104_v31  ;;  %v1490_v34 = vmul.f32 %v4719_v13, %v4715_v1 }
 0x62e   : > { %1540 = vrot.lane.b32.xlu0 %v1498_v22, %s3008_s12  ;;  %v4720_v22 = vld [vmem:[#allocation2_spill] sm:$0xff] }
 0x62f   : > { %v1491_v41 = vmul.f32 %v4720_v22, %v4714_v62 }
 0x630   : > { %1337 = vadd.xlane.f32.xlu1 %v1332_v6  ;;  %v4721_v6 = vld [vmem:[#allocation5_spill] sm:$0xff] }
 0x631   : > { %v1502_v12 = vpack.c.bf16 %v1491_v41, %v1490_v34 }
 0x632   : > { %1542 = vrot.lane.b32.xlu0 %v1499_v7, %s3008_s12  ;;  %v1494_v7 = vmul.f32 %v4721_v6, %v4715_v1 }
 0x634   : > { %1377 = vadd.xlane.f32.xlu1 %v1372_v60  ;;  %v1504_v18 = vpack.c.bf16 %v1495_v2, %v1494_v7 }
 0x636   : > { %1544 = vrot.lane.b32.xlu0 %v1500_v4, %s3008_s12 }
 0x63a   : > { %1546 = vrot.lane.b32.xlu0 %v1501_v51, %s3008_s12 }
 0x63e   : > { %1550 = vrot.lane.b32.xlu0 %v1503_v30, %s3008_s12 }
 0x642   : > { %1554 = vrot.lane.b32.xlu0 %v1505_v56, %s3008_s12 }
 0x645   : > { %1423 = vrot.lane.b32.xlu1 %v1113_v11, %s3009_s13 }
 0x649   : > { %1548 = vrot.lane.b32.xlu1 %v1502_v12, %s3008_s12 }
 0x64d   : > { %1552 = vrot.lane.b32.xlu1 %v1504_v18, %s3008_s12 }
 0x695   : > { %v1380_v40 = vpop.xlane.xlu0 %1379  ;;  %v1320_v60 = vpop.xlane.xlu1 %1319 }
 0x696   : > { %v1325_v12 = vmul.f32 %v1320_v60, %v3392_v19  ;;  %v1385_v33 = vmul.f32 %v1380_v40, %v3398_v38 }
 0x699   : > { %v1316_v4 = vpop.xlane.xlu0 %1315  ;;  %v1340_v59 = vpop.xlane.xlu1 %1339 }
 0x69a   : > { %v1345_v11 = vmul.f32 %v1340_v59, %v3394_v21 }
 0x69c   : > { %v1349_v22 = vadd.f32 %v1345_v11, %v1325_v12 }
 0x69d   : > { %v1336_v35 = vpop.xlane.xlu0 %1335  ;;  %v1360_v51 = vpop.xlane.xlu1 %1359 }
 0x69e   : > { %v1343_v41 = vmul.f32 %v1336_v35, %v3394_v21  ;;  %v1365_v7 = vmul.f32 %v1360_v51, %v3396_v28 }
 0x6a0   : > { %v1369_v24 = vadd.f32 %v1365_v7, %v1349_v22 }
 0x6a1   : > { %v1358_v37 = vpop.xlane.xlu0 %1357  ;;  %v1356_v15 = vpop.xlane.xlu1 %1355 }
 0x6a2   : > { %v1363_v6 = vmul.f32 %v1356_v15, %v3396_v28  ;;  %v1364_v15 = vmul.f32 %v1358_v37, %v3396_v28  ;;  %v1389_v12 = vadd.f32 %v1385_v33, %v1369_v24 }
 0x6a5   : > { %v1422_v30 = vpop.permute.xlu0 %1421  ;;  %v1376_v20 = vpop.xlane.xlu1 %1375 }
 0x6a6   : > { %2771 = vmatprep.subr.bf16.mxu1 %v1422_v30  ;;  %v1383_v35 = vmul.f32 %v1376_v20, %v3398_v38 }
 0x6a7   : > { %2772 = vmatpush3.bf16.msra.mxu1 %v1422_v30  ;;  %v1323_v30 = vmul.f32 %v1316_v4, %v3392_v19 }
 0x6a9   : > { %v1322_v50 = vpop.xlane.xlu1 %1321 }
 0x6aa   : > { %v1326_v2 = vmul.f32 %v1322_v50, %v3392_v19 }
 0x6ad   : > { %v1342_v26 = vpop.xlane.xlu1 %1341 }
 0x6ae   : > { %v1346_v34 = vmul.f32 %v1342_v26, %v3394_v21  ;;  %v1347_v26 = vadd.f32 %v1343_v41, %v1323_v30 }
 0x6b0   : > { %v1350_v13 = vadd.f32 %v1346_v34, %v1326_v2  ;;  %v1367_v51 = vadd.f32 %v1363_v6, %v1347_v26 }
 0x6b1   : > { %v1362_v56 = vpop.xlane.xlu1 %1361 }
 0x6b2   : > { %v1366_v18 = vmul.f32 %v1362_v56, %v3396_v28  ;;  %v1387_v11 = vadd.f32 %v1383_v35, %v1367_v51 }
 0x6b4   : > { %v1370_v60 = vadd.f32 %v1366_v18, %v1350_v13 }
 0x6b5   : > { %v1382_v31 = vpop.xlane.xlu1 %1381 }
 0x6b6   : > { %v1386_v59 = vmul.f32 %v1382_v31, %v3398_v38 }
 0x6b8   : > { %v1390_v4 = vadd.f32 %v1386_v59, %v1370_v60  ;;  %v1530_v59 = vpack.c.bf16 %v4714_v62, %v4715_v1 }
 0x6b9   : > { %v1318_v27 = vpop.xlane.xlu1 %1317 }
 0x6ba   : > { %v1324_v50 = vmul.f32 %v1318_v27, %v3392_v19  ;;  %2955 = vrcp.f32 %v1390_v4 }
 0x6bb   : > { %2957 = vrcp.f32 %v1387_v11 }
 0x6bc   : > { %2959 = vrcp.f32 %v1389_v12 }
 0x6bd   : > { %v1338_v5 = vpop.xlane.xlu1 %1337 }
 0x6be   : > { %v1344_v56 = vmul.f32 %v1338_v5, %v3394_v21  ;;  %v1541_v5 = vpop.permute.xlu0 %1540 }
 0x6bf   : > { %v1563_v26 = vsel %vm357_vm0, %v1541_v5, 0 }
 0x6c0   : > { %v1348_v34 = vadd.f32 %v1344_v56, %v1324_v50 }
 0x6c1   : > { %v1378_v31 = vpop.xlane.xlu1 %1377 }
 0x6c2   : > { %v1368_v41 = vadd.f32 %v1364_v15, %v1348_v34  ;;  %v1384_v20 = vmul.f32 %v1378_v31, %v3398_v38  ;;  %v1543_v35 = vpop.permute.xlu0 %1542  ;;  %v1531_v31 = vpack.c.bf16 %v4716_v25, %v4717_v32 }
 0x6c4   : > { %v1388_v13 = vadd.f32 %v1384_v20, %v1368_v41  ;;  %v2956_v6 = vpop.eup %2955 }
 0x6c5   : > { %v1424_v22 = vpop.permute.xlu1 %1423  ;;  %v2958_v27 = vpop.eup %2957  ;;  %v1398_v33 = vmul.f32 %v2956_v6, %v3883_v36 }
 0x6c6   : > { %2961 = vrcp.f32 %v1388_v13  ;;  %2773 = vmatprep.subr.bf16.mxu1 %v1424_v22  ;;  %v2960_v40 = vpop.eup %2959  ;;  %v1395_v24 = vmul.f32 %v2958_v27, %v3858_v63  ;;  %v1566_v63 = vsel %vm357_vm0, %v1543_v35, 0 }
 0x6c7   : > { %2774 = vmatpush3.bf16.msra.mxu1 %v1424_v22  ;;  %v1397_v2 = vmul.f32 %v2960_v40, %v3849_v23  ;;  %v4013_v40 = vld [vmem:[%s4608_s5 + $0x10] sm:$0xff] }
 0x6c8   : > { %2899 = vmatprep.subr.msk.bf16.mxu1 %vm357_vm0, %v1541_v5 }
 0x6c9   : > { %v1400_v30 = vpack.c.bf16 %v1398_v33, %v1397_v2  ;;  %v1549_v51 = vpop.permute.xlu1 %1548 }
 0x6ca   : > { %v1575_v50 = vsel %vm357_vm0, %v1549_v51, 0 }
 0x6cd   : > { %v1553_v15 = vpop.permute.xlu1 %1552 }
 0x6ce   : > { %v1581_v11 = vsel %vm357_vm0, %v1553_v15, 0 }
 0x6d0   : > { %v2962_v37 = vpop.eup %2961 }
 0x6d1   : > { %v1396_v7 = vmul.f32 %v2962_v37, %v3872_v8  ;;  %v1545_v8 = vpop.permute.xlu0 %1544 }
 0x6d2   : > { %v1569_v23 = vsel %vm357_vm0, %v1545_v8, 0 }
 0x6d3   : > { %v1399_v18 = vpack.c.bf16 %v1396_v7, %v1395_v24  ;;  %v4021_v24 = vld [vmem:[%s4608_s5] sm:$0xff] }
 0x6d5   : > { %2775 = vmatprep.mubr.bf16.mxu1 %v1399_v18  ;;  %v1547_v36 = vpop.permute.xlu0 %1546 }
 0x6d6   : > { %2776 = vmatmul.mubr.bf16.vlgmr.msra.gmra.mrb[4].mxu1 %v1400_v30  ;;  %v1572_v60 = vsel %vm357_vm0, %v1547_v36, 0 }
 0x6d7   : > { %2780 = vmatpush3.bf16.xpose.msra.mxu1 %v1563_v26  ;;  %2795 = vmatprep.mubr.msk.bf16.mxu1 %vm357_vm0, %v1530_v59  ;;  %v4032_v59 = vld [vmem:[%s4608_s5 + $0x18] sm:$0xff] }
 0x6d8   : > { %2900 = vmatprep.subr.msk.bf16.mxu1 %vm357_vm0, %v1543_v35 }
 0x6d9   : > { %v1551_v56 = vpop.permute.xlu0 %1550 }
 0x6da   : > { %v1578_v4 = vsel %vm357_vm0, %v1551_v56, 0 }
 0x6dd   : > { %v1555_v34 = vpop.permute.xlu0 %1554 }
 0x6de   : > { %v1584_v12 = vsel %vm357_vm0, %v1555_v34, 0 }
 0x6df   : > { %2782 = vmatpush3.bf16.xpose.msra.mxu1 %v1566_v63 }
 0x6e0   : > { %2901 = vmatprep.subr.msk.bf16.mxu1 %vm357_vm0, %v1545_v8 }
 0x6e7   : > { %2784 = vmatpush3.bf16.xpose.msra.mxu1 %v1569_v23 }
 0x6e8   : > { %2902 = vmatprep.subr.msk.bf16.mxu1 %vm357_vm0, %v1547_v36 }
 0x6ef   : > { %2786 = vmatpush3.bf16.xpose.msra.mxu1 %v1572_v60 }
 0x6f0   : > { %2903 = vmatprep.subr.msk.bf16.mxu1 %vm357_vm0, %v1549_v51 }
 0x6f7   : > { %2788 = vmatpush3.bf16.xpose.msra.mxu1 %v1575_v50  ;;  %v4061_v50 = vld [vmem:[%s4608_s5 + $0x8] sm:$0xff] }
 0x6f8   : > { %2904 = vmatprep.subr.msk.bf16.mxu1 %vm357_vm0, %v1551_v56 }
 0x6ff   : > { %2790 = vmatpush3.bf16.xpose.msra.mxu1 %v1578_v4 }
 0x700   : > { %2905 = vmatprep.subr.msk.bf16.mxu1 %vm357_vm0, %v1553_v15 }
 0x707   : > { %2792 = vmatpush3.bf16.xpose.msra.mxu1 %v1581_v11 }
 0x708   : > { %2906 = vmatprep.subr.msk.bf16.mxu1 %vm357_vm0, %v1555_v34 }
 0x70f   : > { %2794 = vmatpush3.bf16.xpose.msra.mxu1 %v1584_v12 }
 0x716   : > { %2796 = vmatmul.mubr.msk.bf16.vlgmr.msra.gmra.mrb[8].mxu1 %vm357_vm0, %v1531_v31 }
 0x7a9   : > { %v3998_v41 = vpop.f32.mrb[4].mxu1 }
 0x7aa   : > { %4723 = vst [vmem:[#allocation15_spill] sm:$0xff] %v3998_v41  ;;  %v4000_v20 = vpop.f32.mrb[5].mxu1 }
 0x7ab   : > { %4724 = vst [vmem:[#allocation16_spill] sm:$0xff] %v4000_v20  ;;  %v4002_v13 = vpop.f32.mrb[6].mxu1 }
 0x7ac   : > { %4725 = vst [vmem:[#allocation17_spill] sm:$0xff] %v4002_v13  ;;  %v4006_v5 = vpop.f32.mrb[7].mxu1 }
 0x7ad   : > { %4726 = vst [vmem:[#allocation18_spill] sm:$0xff] %v4006_v5 }
 0x7e9   : > { %v2797_v27 = vpop.f32.mrb[8].mxu1 }
 0x7ea   : > { %v4016_v37 = vadd.f32 %v4013_v40, %v2797_v27  ;;  %v1620_v33 = vpop.f32.mrb[9].mxu1 }
 0x7eb   : > { %v4024_v7 = vadd.f32 %v4021_v24, %v1620_v33  ;;  %v2798_v2 = vpop.f32.mrb[10].mxu1 }
 0x7ec   : > { %v1623_v18 = vpop.f32.mrb[11].mxu1  ;;  %v1637_v30 = vsel %vm771_vm2, %v4016_v37, -1e+30  ;;  %v4035_v26 = vadd.f32 %v4032_v59, %v2798_v2  ;;  %v1657_v63 = vsel %vm800_vm3, %v4016_v37, -1e+30  ;;  %v1508_v2 = vmul.f32 %v4708_v0, %v4717_v32 }
 0x7ed   : > { %1643 = vmax.xlane.f32.xlu0 %v1637_v30  ;;  %v1635_v35 = vsel %vm771_vm2, %v4024_v7, -1e+30  ;;  %v1677_v23 = vsel %vm829_vm4, %v4016_v37, -1e+30  ;;  %v1655_v60 = vsel %vm800_vm3, %v4024_v7, -1e+30  ;;  %v4064_v56 = vadd.f32 %v4061_v50, %v1623_v18 }
 0x7ee   : > { %1639 = vmax.xlane.f32.xlu1 %v1635_v35  ;;  %v1638_v8 = vsel %vm771_vm2, %v4035_v26, -1e+30  ;;  %v1658_v36 = vsel %vm800_vm3, %v4035_v26, -1e+30  ;;  %v1678_v51 = vsel %vm829_vm4, %v4035_v26, -1e+30  ;;  %v1509_v18 = vmul.f32 %v4709_v17, %v4716_v25 }
 0x7ef   : > { %v1675_v4 = vsel %vm829_vm4, %v4024_v7, -1e+30  ;;  %v1698_v15 = vsel %vm858_vm5, %v4035_v26, -1e+30  ;;  %v1636_v11 = vsel %vm771_vm2, %v4064_v56, -1e+30  ;;  %v1506_v30 = vmul.f32 %v4710_v58, %v4715_v1 }
 0x7f0   : > { %v1656_v34 = vsel %vm800_vm3, %v4064_v56, -1e+30  ;;  %v1695_v12 = vsel %vm858_vm5, %v4024_v7, -1e+30  ;;  %v1676_v31 = vsel %vm829_vm4, %v4064_v56, -1e+30  ;;  %v1507_v35 = vmul.f32 %v4711_v10, %v4714_v62 }
 0x7f1   : > { %1663 = vmax.xlane.f32.xlu0 %v1657_v63  ;;  %v1697_v27 = vsel %vm858_vm5, %v4016_v37, -1e+30  ;;  %v1696_v33 = vsel %vm858_vm5, %v4064_v56, -1e+30  ;;  %v1523_v63 = vpack.c.bf16 %v1509_v18, %v1508_v2  ;;  %v4731_v18 = vld [vmem:[#allocation30_spill] sm:$0xff] }
 0x7f2   : > { %1645 = vmax.xlane.f32.xlu1 %v1638_v8  ;;  %v1510_v8 = vmul.f32 %v4712_v55, %v4715_v1 }
 0x7f5   : > { %1683 = vmax.xlane.f32.xlu0 %v1677_v23  ;;  %v1511_v23 = vmul.f32 %v4713_v29, %v4714_v62 }
 0x7f6   : > { %1665 = vmax.xlane.f32.xlu1 %v1658_v36  ;;  %v1522_v36 = vpack.c.bf16 %v1507_v35, %v1506_v30  ;;  %v1517_v30 = vmul.f32 %v4731_v18, %v4716_v25 }
 0x7f9   : > { %1659 = vmax.xlane.f32.xlu0 %v1655_v60  ;;  %v1512_v60 = vmul.f32 %v3525_v14, %v4717_v32 }
 0x7fa   : > { %1685 = vmax.xlane.f32.xlu1 %v1678_v51  ;;  %v4727_v51 = vld [vmem:[#allocation26_spill] sm:$0xff] }
 0x7fd   : > { %1679 = vmax.xlane.f32.xlu0 %v1675_v4  ;;  %v1513_v4 = vmul.f32 %v4727_v51, %v4716_v25 }
 0x7fe   : > { %1705 = vmax.xlane.f32.xlu1 %v1698_v15  ;;  %v1524_v15 = vpack.c.bf16 %v1511_v23, %v1510_v8 }
 0x801   : > { %1641 = vmax.xlane.f32.xlu0 %v1636_v11  ;;  %v4728_v11 = vld [vmem:[#allocation27_spill] sm:$0xff] }
 0x802   : > { %1661 = vmax.xlane.f32.xlu1 %v1656_v34  ;;  %v1514_v34 = vmul.f32 %v4728_v11, %v4715_v1 }
 0x805   : > { %1699 = vmax.xlane.f32.xlu0 %v1695_v12  ;;  %v4729_v12 = vld [vmem:[#allocation28_spill] sm:$0xff] }
 0x806   : > { %1681 = vmax.xlane.f32.xlu1 %v1676_v31  ;;  %v1515_v31 = vmul.f32 %v4729_v12, %v4714_v62 }
 0x808   : > { %v1526_v35 = vpack.c.bf16 %v1515_v31, %v1514_v34 }
 0x809   : > { %1703 = vmax.xlane.f32.xlu0 %v1697_v27  ;;  %v1525_v27 = vpack.c.bf16 %v1513_v4, %v1512_v60 }
 0x80a   : > { %1701 = vmax.xlane.f32.xlu1 %v1696_v33  ;;  %v4730_v33 = vld [vmem:[#allocation29_spill] sm:$0xff] }
 0x80b   : > { %v1516_v2 = vmul.f32 %v4730_v33, %v4717_v32 }
 0x81b   : > { %1827 = vrot.lane.b32.xlu1 %v1523_v63, %s3009_s13  ;;  %v1527_v63 = vpack.c.bf16 %v1517_v30, %v1516_v2 }
 0x81f   : > { %1825 = vrot.lane.b32.xlu0 %v1522_v36, %s3009_s13 }
 0x823   : > { %1829 = vrot.lane.b32.xlu0 %v1524_v15, %s3009_s13 }
 0x827   : > { %1831 = vrot.lane.b32.xlu0 %v1525_v27, %s3009_s13 }
 0x82b   : > { %1833 = vrot.lane.b32.xlu0 %v1526_v35, %s3009_s13 }
 0x82f   : > { %1835 = vrot.lane.b32.xlu0 %v1527_v63, %s3009_s13 }
 0x87a   : > { %v1644_v8 = vpop.xlane.xlu0 %1643 }
 0x87b   : > { %v1640_v23 = vpop.xlane.xlu1 %1639  ;;  %v1649_v5 = vmul.f32 %v1644_v8, %v3392_v19 }
 0x87c   : > { %v1647_v34 = vmul.f32 %v1640_v23, %v3392_v19 }
 0x87e   : > { %v1664_v36 = vpop.xlane.xlu0 %1663 }
 0x87f   : > { %v1646_v15 = vpop.xlane.xlu1 %1645  ;;  %v1669_v30 = vmul.f32 %v1664_v36, %v3394_v21 }
 0x881   : > { %v1673_v11 = vadd.f32 %v1669_v30, %v1649_v5  ;;  %v1650_v30 = vmul.f32 %v1646_v15, %v3392_v19 }
 0x882   : > { %v1684_v22 = vpop.xlane.xlu0 %1683 }
 0x883   : > { %v1666_v60 = vpop.xlane.xlu1 %1665  ;;  %v1689_v18 = vmul.f32 %v1684_v22, %v3396_v28 }
 0x885   : > { %v1693_v29 = vadd.f32 %v1689_v18, %v1673_v11  ;;  %v1670_v11 = vmul.f32 %v1666_v60, %v3394_v21 }
 0x886   : > { %v1660_v4 = vpop.xlane.xlu0 %1659 }
 0x887   : > { %v1686_v27 = vpop.xlane.xlu1 %1685  ;;  %v1667_v13 = vmul.f32 %v1660_v4, %v3394_v21 }
 0x889   : > { %v1671_v35 = vadd.f32 %v1667_v13, %v1647_v34 }
 0x88a   : > { %v1680_v6 = vpop.xlane.xlu0 %1679 }
 0x88b   : > { %v1706_v41 = vpop.xlane.xlu1 %1705  ;;  %v1687_v31 = vmul.f32 %v1680_v6, %v3396_v28 }
 0x88d   : > { %v1691_v33 = vadd.f32 %v1687_v31, %v1671_v35 }
 0x88e   : > { %v1642_v20 = vpop.xlane.xlu0 %1641 }
 0x88f   : > { %v1662_v2 = vpop.xlane.xlu1 %1661  ;;  %v1648_v4 = vmul.f32 %v1642_v20, %v3392_v19 }
 0x890   : > { %v1668_v23 = vmul.f32 %v1662_v2, %v3394_v21 }
 0x892   : > { %v1700_v63 = vpop.xlane.xlu0 %1699  ;;  %v1672_v8 = vadd.f32 %v1668_v23, %v1648_v4 }
 0x893   : > { %v1707_v12 = vmul.f32 %v1700_v63, %v3398_v38  ;;  %v1682_v51 = vpop.xlane.xlu1 %1681 }
 0x894   : > { %v1688_v36 = vmul.f32 %v1682_v51, %v3396_v28 }
 0x895   : > { %v1711_v14 = vadd.f32 %v1707_v12, %v1691_v33 }
 0x896   : > { %v1704_v6 = vpop.xlane.xlu0 %1703  ;;  %v1692_v5 = vadd.f32 %v1688_v36, %v1672_v8 }
 0x897   : > { %v1709_v13 = vmul.f32 %v1704_v6, %v3398_v38  ;;  %v1702_v34 = vpop.xlane.xlu1 %1701  ;;  %v1715_v22 = vsub.f32 %v4024_v7, %v1711_v14  ;;  %v1690_v14 = vmul.f32 %v1686_v27, %v3396_v28  ;;  %v1710_v7 = vmul.f32 %v1706_v41, %v3398_v38 }
 0x898   : > { %v1708_v35 = vmul.f32 %v1702_v34, %v3398_v38 }
 0x899   : > { %v1713_v31 = vadd.f32 %v1709_v13, %v1693_v29  ;;  %v1719_v12 = vmul.f32 1.442695, %v1715_v22  ;;  %v1674_v29 = vadd.f32 %v1670_v11, %v1650_v30  ;;  %v1518_v30 = vmul.f32 %v3537_v39, %v4715_v1 }
 0x89a   : > { %v1826_v63 = vpop.permute.xlu0 %1825  ;;  %v1712_v33 = vadd.f32 %v1708_v35, %v1692_v5 }
 0x89b   : > { %v1717_v20 = vsub.f32 %v4016_v37, %v1713_v31  ;;  %2799 = vmatprep.subr.bf16.mxu0 %v1826_v63  ;;  %v1828_v2 = vpop.permute.xlu1 %1827  ;;  %v1694_v60 = vadd.f32 %v1690_v14, %v1674_v29 }
 0x89c   : > { %2800 = vmatpush3.bf16.msra.mxu0 %v1826_v63  ;;  %v1716_v37 = vsub.f32 %v4064_v56, %v1712_v33 }
 0x89d   : > { %v1723_v51 = vmul.f32 1.442695, %v1717_v20  ;;  %2801 = vmatprep.subr.bf16.mxu0 %v1828_v2  ;;  %v1714_v23 = vadd.f32 %v1710_v7, %v1694_v60  ;;  %v4732_v7 = vld [vmem:[#allocation14_spill] sm:$0xff] }
 0x89e   : > { %v1830_v18 = vpop.permute.xlu0 %1829  ;;  %v1721_v6 = vmul.f32 1.442695, %v1716_v37  ;;  %v1899_v37 = vmul.f32 %v3222_v45, %v4732_v7 }
 0x89f   : > { %2963 = vpow2.f32 %v1723_v51  ;;  %v1718_v27 = vsub.f32 %v4035_v26, %v1714_v23  ;;  %v4734_v23 = vld [vmem:[#allocation13_spill] sm:$0xff] }
 0x8a0   : > { %2802 = vmatpush3.bf16.msra.mxu0 %v1828_v2  ;;  %2965 = vpow2.f32 %v1719_v12 }
 0x8a1   : > { %2803 = vmatprep.subr.bf16.mxu0 %v1830_v18  ;;  %2967 = vpow2.f32 %v1721_v6  ;;  %v1725_v8 = vmul.f32 1.442695, %v1718_v27  ;;  %v1901_v6 = vmul.f32 %v3220_v44, %v4734_v23 }
 0x8a2   : > { %v1832_v4 = vpop.permute.xlu0 %1831 }
 0x8a3   : > { %2969 = vpow2.f32 %v1725_v8  ;;  %v1905_v8 = vmul.f32 %v3228_v48, %v4734_v23  ;;  %v4737_v48 = vld [vmem:[#allocation32_spill] sm:$0xff] }
 0x8a4   : > { %2804 = vmatpush3.bf16.msra.mxu0 %v1830_v18  ;;  %v1519_v18 = vmul.f32 %v3554_v61, %v4714_v62  ;;  %v1937_v16 = vmul.f32 %v4737_v48, %v4734_v23 }
 0x8a5   : > { %2805 = vmatprep.subr.bf16.mxu0 %v1832_v4 }
 0x8a6   : > { %v1834_v36 = vpop.permute.xlu0 %1833  ;;  %v1528_v29 = vpack.c.bf16 %v1519_v18, %v1518_v30  ;;  %v4741_v30 = vld [vmem:[#allocation5_spill] sm:$0xff] }
 0x8a8   : > { %2806 = vmatpush3.bf16.msra.mxu0 %v1832_v4  ;;  %v4733_v4 = vld [vmem:[#allocation12_spill] sm:$0xff] }
 0x8a9   : > { %v4139_v15 = vpop.eup %2963  ;;  %2807 = vmatprep.subr.bf16.mxu0 %v1834_v36  ;;  %v1898_v60 = vmul.f32 %v3218_v43, %v4733_v4 }
 0x8aa   : > { %v1789_v41 = vsel %vm858_vm5, %v4139_v15, 0.0  ;;  %v1729_v56 = vsel %vm771_vm2, %v4139_v15, 0.0  ;;  %v4148_v13 = vpop.eup %2965  ;;  %v1836_v34 = vpop.permute.xlu0 %1835  ;;  %v1749_v26 = vsel %vm800_vm3, %v4139_v15, 0.0  ;;  %v1769_v31 = vsel %vm829_vm4, %v4139_v15, 0.0 }
 0x8ab   : > { %1795 = vadd.xlane.f32.xlu0 %v1789_v41  ;;  %1735 = vadd.xlane.f32.xlu1 %v1729_v56  ;;  %v1727_v22 = vsel %vm771_vm2, %v4148_v13, 0.0  ;;  %v1747_v35 = vsel %vm800_vm3, %v4148_v13, 0.0  ;;  %v4162_v63 = vpop.eup %2967  ;;  %v1767_v5 = vsel %vm829_vm4, %v4148_v13, 0.0  ;;  %v1787_v2 = vsel %vm858_vm5, %v4148_v13, 0.0 }
 0x8ac   : > { %2808 = vmatpush3.bf16.msra.mxu0 %v1834_v36  ;;  %v1768_v20 = vsel %vm829_vm4, %v4162_v63, 0.0  ;;  %v1728_v62 = vsel %vm771_vm2, %v4162_v63, 0.0  ;;  %v1914_v1 = vpack.c.bf16 %v1899_v37, %v1898_v60  ;;  %v4735_v36 = vld [vmem:[#allocation11_spill] sm:$0xff]  ;;  %v1748_v45 = vsel %vm800_vm3, %v4162_v63, 0.0 }
 0x8ad   : > { %2809 = vmatprep.subr.bf16.mxu0 %v1836_v34  ;;  %v4173_v11 = vpop.eup %2969  ;;  %v1900_v27 = vmul.f32 %v3216_v42, %v4735_v36  ;;  %v1903_v41 = vmul.f32 %v3224_v46, %v4732_v7  ;;  %v1902_v56 = vmul.f32 %v3226_v47, %v4733_v4  ;;  %v1788_v44 = vsel %vm858_vm5, %v4162_v63, 0.0 }
 0x8ae   : > { %v1730_v12 = vsel %vm771_vm2, %v4173_v11, 0.0  ;;  %v1750_v51 = vsel %vm800_vm3, %v4173_v11, 0.0  ;;  %v1770_v33 = vsel %vm829_vm4, %v4173_v11, 0.0  ;;  %v1790_v14 = vsel %vm858_vm5, %v4173_v11, 0.0 }
 0x8af   : > { %1755 = vadd.xlane.f32.xlu1 %v1749_v26  ;;  %1731 = vadd.xlane.f32.xlu0 %v1727_v22  ;;  %v1915_v43 = vpack.c.bf16 %v1901_v6, %v1900_v27  ;;  %v1916_v42 = vpack.c.bf16 %v1903_v41, %v1902_v56  ;;  %v1908_v26 = vmul.f32 %v3246_v57, %v4735_v36  ;;  %v4738_v57 = vld [vmem:[#allocation31_spill] sm:$0xff] }
 0x8b0   : > { %2810 = vmatpush3.bf16.msra.mxu0 %v1836_v34  ;;  %v1904_v34 = vmul.f32 %v3230_v49, %v4735_v36  ;;  %v1909_v47 = vmul.f32 %v3241_v53, %v4734_v23  ;;  %v4736_v49 = vld [vmem:[#allocation6_spill] sm:$0xff]  ;;  %v1936_v52 = vmul.f32 %v4738_v57, %v4735_v36 }
 0x8b2   : > { %v1917_v46 = vpack.c.bf16 %v1905_v8, %v1904_v34  ;;  %v1919_v22 = vpack.c.bf16 %v1909_v47, %v1908_v26 }
 0x8b3   : > { %1775 = vadd.xlane.f32.xlu1 %v1769_v31  ;;  %1751 = vadd.xlane.f32.xlu0 %v1747_v35  ;;  %v1912_v31 = vmul.f32 %v3303_v54, %v4735_v36  ;;  %v1913_v35 = vmul.f32 %v4736_v49, %v4734_v23  ;;  %v4740_v54 = vld [vmem:[#allocation2_spill] sm:$0xff] }
 0x8b7   : > { %1771 = vadd.xlane.f32.xlu1 %v1767_v5  ;;  %1773 = vadd.xlane.f32.xlu0 %v1768_v20  ;;  %v1521_v5 = vmul.f32 %v4737_v48, %v4716_v25  ;;  %v1921_v20 = vpack.c.bf16 %v1913_v35, %v1912_v31  ;;  %v4742_v25 = vld [vmem:[#allocation4_spill] sm:$0xff] }
 0x8bb   : > { %1791 = vadd.xlane.f32.xlu1 %v1787_v2  ;;  %v1520_v2 = vmul.f32 %v4738_v57, %v4717_v32 }
 0x8bd   : > { %v1529_v53 = vpack.c.bf16 %v1521_v5, %v1520_v2 }
 0x8bf   : > { %1737 = vadd.xlane.f32.xlu1 %v1730_v12  ;;  %v4739_v12 = vld [vmem:[#allocation3_spill] sm:$0xff] }
 0x8c3   : > { %1757 = vadd.xlane.f32.xlu1 %v1750_v51  ;;  %v1906_v51 = vmul.f32 %v4739_v12, %v4733_v4 }
 0x8c7   : > { %1777 = vadd.xlane.f32.xlu1 %v1770_v33  ;;  %v1907_v33 = vmul.f32 %v4740_v54, %v4732_v7 }
 0x8c9   : > { %v1918_v18 = vpack.c.bf16 %v1907_v33, %v1906_v51 }
 0x8cb   : > { %1797 = vadd.xlane.f32.xlu1 %v1790_v14  ;;  %v1910_v14 = vmul.f32 %v4741_v30, %v4733_v4 }
 0x8cd   : > { %1837 = vrot.lane.b32.xlu0 %v1528_v29, %s3009_s13  ;;  %v1911_v29 = vmul.f32 %v4742_v25, %v4732_v7 }
 0x8cf   : > { %1733 = vadd.xlane.f32.xlu1 %v1728_v62  ;;  %v1920_v32 = vpack.c.bf16 %v1911_v29, %v1910_v14 }
 0x8d1   : > { %1956 = vrot.lane.b32.xlu0 %v1914_v1, %s3008_s12 }
 0x8d3   : > { %1753 = vadd.xlane.f32.xlu1 %v1748_v45 }
 0x8d5   : > { %1958 = vrot.lane.b32.xlu0 %v1915_v43, %s3008_s12 }
 0x8d7   : > { %1793 = vadd.xlane.f32.xlu1 %v1788_v44 }
 0x8d9   : > { %1960 = vrot.lane.b32.xlu0 %v1916_v42, %s3008_s12 }
 0x8dd   : > { %1962 = vrot.lane.b32.xlu0 %v1917_v46, %s3008_s12 }
 0x8e1   : > { %1966 = vrot.lane.b32.xlu0 %v1919_v22, %s3008_s12 }
 0x8e5   : > { %1970 = vrot.lane.b32.xlu0 %v1921_v20, %s3008_s12 }
 0x8e8   : > { %1839 = vrot.lane.b32.xlu1 %v1529_v53, %s3009_s13 }
 0x8ec   : > { %1964 = vrot.lane.b32.xlu1 %v1918_v18, %s3008_s12 }
 0x8f0   : > { %1968 = vrot.lane.b32.xlu1 %v1920_v32, %s3008_s12 }
 0x938   : > { %v1796_v37 = vpop.xlane.xlu0 %1795  ;;  %v1736_v60 = vpop.xlane.xlu1 %1735 }
 0x939   : > { %v1741_v22 = vmul.f32 %v1736_v60, %v3392_v19  ;;  %v1801_v60 = vmul.f32 %v1796_v37, %v3398_v38 }
 0x93c   : > { %v1732_v62 = vpop.xlane.xlu0 %1731  ;;  %v1756_v1 = vpop.xlane.xlu1 %1755 }
 0x93d   : > { %v1761_v46 = vmul.f32 %v1756_v1, %v3394_v21  ;;  %v1739_v20 = vmul.f32 %v1732_v62, %v3392_v19 }
 0x93f   : > { %v1765_v53 = vadd.f32 %v1761_v46, %v1741_v22 }
 0x940   : > { %v1752_v6 = vpop.xlane.xlu0 %1751  ;;  %v1776_v27 = vpop.xlane.xlu1 %1775 }
 0x941   : > { %v1759_v47 = vmul.f32 %v1752_v6, %v3394_v21  ;;  %v1781_v31 = vmul.f32 %v1776_v27, %v3396_v28 }
 0x943   : > { %v1763_v54 = vadd.f32 %v1759_v47, %v1739_v20  ;;  %v1785_v18 = vadd.f32 %v1781_v31, %v1765_v53  ;;  %v1946_v20 = vpack.c.bf16 %v4732_v7, %v4733_v4 }
 0x944   : > { %v1774_v45 = vpop.xlane.xlu0 %1773  ;;  %v1772_v43 = vpop.xlane.xlu1 %1771 }
 0x945   : > { %v1779_v2 = vmul.f32 %v1772_v43, %v3396_v28  ;;  %v1780_v1 = vmul.f32 %v1774_v45, %v3396_v28  ;;  %v1805_v43 = vadd.f32 %v1801_v60, %v1785_v18  ;;  %v1947_v60 = vpack.c.bf16 %v4734_v23, %v4735_v36 }
 0x947   : > { %v1783_v25 = vadd.f32 %v1779_v2, %v1763_v54 }
 0x948   : > { %v1838_v41 = vpop.permute.xlu0 %1837  ;;  %v1792_v56 = vpop.xlane.xlu1 %1791 }
 0x949   : > { %2811 = vmatprep.subr.bf16.mxu0 %v1838_v41  ;;  %v1799_v33 = vmul.f32 %v1792_v56, %v3398_v38 }
 0x94a   : > { %2812 = vmatpush3.bf16.msra.mxu0 %v1838_v41 }
 0x94b   : > { %v1803_v6 = vadd.f32 %v1799_v33, %v1783_v25 }
 0x94c   : > { %v1738_v44 = vpop.xlane.xlu1 %1737 }
 0x94d   : > { %v1742_v49 = vmul.f32 %v1738_v44, %v3392_v19 }
 0x950   : > { %v1758_v42 = vpop.xlane.xlu1 %1757 }
 0x951   : > { %v1762_v26 = vmul.f32 %v1758_v42, %v3394_v21 }
 0x953   : > { %v1766_v12 = vadd.f32 %v1762_v26, %v1742_v49 }
 0x954   : > { %v1778_v34 = vpop.xlane.xlu1 %1777 }
 0x955   : > { %v1782_v35 = vmul.f32 %v1778_v34, %v3396_v28 }
 0x957   : > { %v1786_v30 = vadd.f32 %v1782_v35, %v1766_v12 }
 0x958   : > { %v1798_v8 = vpop.xlane.xlu1 %1797 }
 0x959   : > { %v1802_v51 = vmul.f32 %v1798_v8, %v3398_v38  ;;  %v1957_v8 = vpop.permute.xlu0 %1956 }
 0x95a   : > { %v1979_v2 = vsel %vm357_vm0, %v1957_v8, 0 }
 0x95b   : > { %v1806_v62 = vadd.f32 %v1802_v51, %v1786_v30 }
 0x95c   : > { %v1734_v5 = vpop.xlane.xlu1 %1733 }
 0x95d   : > { %v1740_v29 = vmul.f32 %v1734_v5, %v3392_v19  ;;  %2971 = vrcp.f32 %v1806_v62  ;;  %v1959_v53 = vpop.permute.xlu0 %1958  ;;  %v4296_v62 = vld [vmem:[%s4606_s3 + $0x8] sm:$0xff]  }
 0x95e   : > { %2973 = vrcp.f32 %v1803_v6  ;;  %v4744_v6 = vld [vmem:[#allocation34_spill] sm:$0xff] }
 0x95f   : > { %2975 = vrcp.f32 %v1805_v43  ;;  %v4746_v43 = vld [vmem:[#allocation35_spill] sm:$0xff] }
 0x960   : > { %v1754_v14 = vpop.xlane.xlu1 %1753 }
 0x961   : > { %v1760_v32 = vmul.f32 %v1754_v14, %v3394_v21 }
 0x963   : > { %v1764_v27 = vadd.f32 %v1760_v32, %v1740_v29  ;;  %v4287_v29 = vld [vmem:[%s4606_s3] sm:$0xff]  }
 0x964   : > { %v1794_v41 = vpop.xlane.xlu1 %1793 }
 0x965   : > { %v1784_v44 = vadd.f32 %v1780_v1, %v1764_v27  ;;  %v1800_v56 = vmul.f32 %v1794_v41, %v3398_v38  ;;  %v4743_v1 = vld [vmem:[#allocation36_spill] sm:$0xff]  ;;  %v4747_v41 = vld [vmem:[#allocation33_spill] sm:$0xff] }
 0x966   : > { %v4745_v27 = vpack.c.bf16 %v4743_v1, %v4744_v6 }
 0x967   : > { %v1804_v42 = vadd.f32 %v1800_v56, %v1784_v44  ;;  %v2972_v37 = vpop.eup %2971  ;;  %v4748_v44 = vpack.c.bf16 %v4746_v43, %v4747_v41  ;;  %v1924_v41 = vmul.f32 %v4708_v0, %v4735_v36  ;;  %v4750_v0 = vld [vmem:[#allocation25_spill] sm:$0xff] }
 0x968   : > { %v1840_v34 = vpop.permute.xlu1 %1839  ;;  %v2974_v45 = vpop.eup %2973  ;;  %v1814_v47 = vmul.f32 %v2972_v37, %v4173_v11 }
 0x969   : > { %2977 = vrcp.f32 %v1804_v42  ;;  %2813 = vmatprep.subr.bf16.mxu0 %v1840_v34  ;;  %v2976_v46 = vpop.eup %2975  ;;  %v1811_v22 = vmul.f32 %v2974_v45, %v4148_v13  ;;  %v1982_v13 = vsel %vm357_vm0, %v1959_v53, 0 }
 0x96a   : > { %2814 = vmatpush3.bf16.msra.mxu0 %v1840_v34  ;;  %v1813_v49 = vmul.f32 %v2976_v46, %v4139_v15 }
 0x96b   : > { %2907 = vmatprep.subr.msk.bf16.mxu0 %vm357_vm0, %v1957_v8 }
 0x96c   : > { %v1816_v5 = vpack.c.bf16 %v1814_v47, %v1813_v49  ;;  %v1965_v51 = vpop.permute.xlu1 %1964 }
 0x96d   : > { %v1991_v54 = vsel %vm357_vm0, %v1965_v51, 0 }
 0x970   : > { %v1969_v30 = vpop.permute.xlu1 %1968 }
 0x971   : > { %v1997_v14 = vsel %vm357_vm0, %v1969_v30, 0 }
 0x973   : > { %v2978_v26 = vpop.eup %2977 }
 0x974   : > { %v1812_v31 = vmul.f32 %v2978_v26, %v4162_v63  ;;  %v1961_v63 = vpop.permute.xlu0 %1960 }
 0x975   : > { %v1985_v15 = vsel %vm357_vm0, %v1961_v63, 0 }
 0x976   : > { %v1815_v35 = vpack.c.bf16 %v1812_v31, %v1811_v22 }
 0x978   : > { %2815 = vmatprep.mubr.bf16.mxu0 %v1815_v35  ;;  %v1963_v11 = vpop.permute.xlu0 %1962 }
 0x979   : > { %2816 = vmatmul.mubr.bf16.vlgmr.msra.gmra.mrb[24].mxu0 %v1816_v5  ;;  %v1988_v12 = vsel %vm357_vm0, %v1963_v11, 0 }
 0x97a   : > { %2820 = vmatpush3.bf16.xpose.msra.mxu0 %v1979_v2  ;;  %2835 = vmatprep.mubr.msk.bf16.mxu0 %vm357_vm0, %v1946_v20 }
 0x97b   : > { %2908 = vmatprep.subr.msk.bf16.mxu0 %vm357_vm0, %v1959_v53 }
 0x97c   : > { %v1967_v33 = vpop.permute.xlu0 %1966 }
 0x97d   : > { %v1994_v18 = vsel %vm357_vm0, %v1967_v33, 0 }
 0x980   : > { %v1971_v25 = vpop.permute.xlu0 %1970 }
 0x981   : > { %v2000_v32 = vsel %vm357_vm0, %v1971_v25, 0 }
 0x982   : > { %2822 = vmatpush3.bf16.xpose.msra.mxu0 %v1982_v13 }
 0x983   : > { %2909 = vmatprep.subr.msk.bf16.mxu0 %vm357_vm0, %v1961_v63 }
 0x98a   : > { %2824 = vmatpush3.bf16.xpose.msra.mxu0 %v1985_v15 }
 0x98b   : > { %2910 = vmatprep.subr.msk.bf16.mxu0 %vm357_vm0, %v1963_v11 }
 0x992   : > { %2826 = vmatpush3.bf16.xpose.msra.mxu0 %v1988_v12 }
 0x993   : > { %2911 = vmatprep.subr.msk.bf16.mxu0 %vm357_vm0, %v1965_v51 }
 0x99a   : > { %2828 = vmatpush3.bf16.xpose.msra.mxu0 %v1991_v54 }
 0x99b   : > { %2912 = vmatprep.subr.msk.bf16.mxu0 %vm357_vm0, %v1967_v33 }
 0x9a2   : > { %2830 = vmatpush3.bf16.xpose.msra.mxu0 %v1994_v18 }
 0x9a3   : > { %2913 = vmatprep.subr.msk.bf16.mxu0 %vm357_vm0, %v1969_v30 }
 0x9aa   : > { %2832 = vmatpush3.bf16.xpose.msra.mxu0 %v1997_v14 }
 0x9ab   : > { %2914 = vmatprep.subr.msk.bf16.mxu0 %vm357_vm0, %v1971_v25 }
 0x9b2   : > { %2834 = vmatpush3.bf16.xpose.msra.mxu0 %v2000_v32 }
 0x9b3   : > { %2859 = vmatprep.subr.bf16.mxu0 %v4287_v29 }
 0x9b9   : > { %2836 = vmatmul.mubr.msk.bf16.vlgmr.msra.gmra.mrb[28].mxu0 %vm357_vm0, %v1947_v60 }
 0x9ba   : > { %2860 = vmatpush3.bf16.msra.mxu0 %v4287_v29  ;;  %2863 = vmatprep.mubr.msk.bf16.mxu0 %vm357_vm0, %v4745_v27 }
 0x9bb   : > { %2861 = vmatprep.subr.bf16.mxu0 %v4296_v62 }
 0x9be   : > { %2862 = vmatpush3.bf16.msra.mxu0 %v4296_v62 }
 0x9c1   : > { %2864 = vmatmul.mubr.msk.bf16.vlgmr.msra.gmra.mrb[32].mxu0 %vm357_vm0, %v4748_v44  ;;  %v1925_v44 = vmul.f32 %v4709_v17, %v4734_v23  ;;  %v4751_v17 = vld [vmem:[#allocation27_spill] sm:$0xff] }
 0xa4c   : > { %v4310_v56 = vpop.f32.mrb[24].mxu0 }
 0xa4d   : > { %v4312_v42 = vpop.f32.mrb[25].mxu0 }
 0xa4e   : > { %v4314_v34 = vpop.f32.mrb[26].mxu0 }
 0xa4f   : > { %v2319_v8 = vpack.c.bf16 %v4314_v34, %v4310_v56  ;;  %v4318_v37 = vpop.f32.mrb[27].mxu0 }
 0xa50   : > { %v2318_v45 = vpack.c.bf16 %v4318_v37, %v4312_v42 }
 0xa8c   : > { %v2837_v46 = vpop.f32.mrb[28].mxu0 }
 0xa8d   : > { %v4323_v26 = vadd.f32 %v4013_v40, %v2837_v46  ;;  %v2036_v47 = vpop.f32.mrb[29].mxu0  ;;  %v4340_v40 = vld [vmem:[%s4607_s4] ss:$0 sm:$0xff]  ;;  %v1922_v46 = vmul.f32 %v4710_v58, %v4733_v4 }
 0xa8e   : > { %v4326_v22 = vadd.f32 %v4021_v24, %v2036_v47  ;;  %v2838_v31 = vpop.f32.mrb[30].mxu0  ;;  %v1923_v47 = vmul.f32 %v4711_v10, %v4732_v7  ;;  %v4752_v58 = vld [vmem:[#allocation26_spill] sm:$0xff]  ;;  %v4753_v10 = vld [vmem:[#allocation28_spill] sm:$0xff] }
 0xa8f   : > { %v2039_v49 = vpop.f32.mrb[31].mxu0  ;;  %v2053_v35 = vsel %vm771_vm2, %v4323_v26, -1e+30  ;;  %v4332_v5 = vadd.f32 %v4032_v59, %v2838_v31  ;;  %v2073_v24 = vsel %vm800_vm3, %v4323_v26, -1e+30  ;;  %v1926_v31 = vmul.f32 %v4712_v55, %v4733_v4 }
 0xa90   : > { %2059 = vmax.xlane.f32.xlu0 %v2053_v35  ;;  %v2051_v20 = vsel %vm771_vm2, %v4326_v22, -1e+30  ;;  %v2093_v51 = vsel %vm829_vm4, %v4323_v26, -1e+30  ;;  %v2071_v18 = vsel %vm800_vm3, %v4326_v22, -1e+30  ;;  %v4380_v14 = vadd.f32 %v4061_v50, %v2039_v49 }
 0xa91   : > { %2055 = vmax.xlane.f32.xlu1 %v2051_v20  ;;  %v2054_v2 = vsel %vm771_vm2, %v4332_v5, -1e+30  ;;  %v2074_v33 = vsel %vm800_vm3, %v4332_v5, -1e+30  ;;  %v2094_v30 = vsel %vm829_vm4, %v4332_v5, -1e+30  ;;  %v1939_v20 = vpack.c.bf16 %v1925_v44, %v1924_v41 }
 0xa92   : > { %v2091_v25 = vsel %vm829_vm4, %v4326_v22, -1e+30  ;;  %v2114_v32 = vsel %vm858_vm5, %v4332_v5, -1e+30  ;;  %v2052_v60 = vsel %vm771_vm2, %v4380_v14, -1e+30 }
 0xa93   : > { %v2072_v50 = vsel %vm800_vm3, %v4380_v14, -1e+30  ;;  %v2111_v1 = vsel %vm858_vm5, %v4326_v22, -1e+30  ;;  %v2092_v6 = vsel %vm829_vm4, %v4380_v14, -1e+30 }
 0xa94   : > { %2079 = vmax.xlane.f32.xlu0 %v2073_v24  ;;  %v2865_v59 = vpop.f32.mrb[32].mxu0  ;;  %v2113_v27 = vsel %vm858_vm5, %v4323_v26, -1e+30  ;;  %v2112_v43 = vsel %vm858_vm5, %v4380_v14, -1e+30  ;;  %v4749_v49 = vld [vmem:[#allocation23_spill] sm:$0xff]  ;;  %v1928_v24 = vmul.f32 %v4750_v0, %v4735_v36 }
 0xa95   : > { %v2412_v53 = vadd.f32 %v2865_v59, %v4340_v40  ;;  %v2403_v13 = vpop.f32.mrb[33].mxu0  ;;  %2061 = vmax.xlane.f32.xlu1 %v2054_v2  ;;  %v1927_v35 = vmul.f32 %v4749_v49, %v4732_v7  ;;  %v1930_v59 = vmul.f32 %v4751_v17, %v4733_v4  ;;  %v1929_v2 = vmul.f32 %v4752_v58, %v4734_v23 }
 0xa96   : > { %v2404_v63 = vadd.f32 %v4340_v40, %v2403_v13  ;;  %v2866_v15 = vpop.f32.mrb[34].mxu0  ;;  %v1938_v13 = vpack.c.bf16 %v1923_v47, %v1922_v46 }
 0xa97   : > { %2468 = vst.msk [vmem:[%s4350_s25 + $0x10] sm:$0xff] %vm357_vm0, %v2412_v53  ;;  %v2415_v11 = vadd.f32 %v2866_v15, %v4340_v40  ;;  %v2406_v12 = vpop.f32.mrb[35].mxu0  ;;  %v1931_v53 = vmul.f32 %v4753_v10, %v4732_v7  ;;  %v1940_v55 = vpack.c.bf16 %v1927_v35, %v1926_v31 }
 0xa98   : > { %2466 = vst.msk [vmem:[%s4350_s25] sm:$0xff] %vm357_vm0, %v2404_v63  ;;  %v2407_v54 = vadd.f32 %v4340_v40, %v2406_v12  ;;  %2099 = vmax.xlane.f32.xlu0 %v2093_v51  ;;  %v4754_v63 = vld [vmem:[#allocation29_spill] sm:$0xff]  ;;  %v1941_v51 = vpack.c.bf16 %v1929_v2, %v1928_v24 }
 0xa99   : > { %2469 = vst.msk [vmem:[%s4350_s25 + $0x18] sm:$0xff] %vm357_vm0, %v2415_v11  ;;  %2081 = vmax.xlane.f32.xlu1 %v2074_v33  ;;  %v1932_v15 = vmul.f32 %v4754_v63, %v4735_v36  ;;  %v4755_v11 = vld [vmem:[#allocation30_spill] sm:$0xff] }
 0xa9a   : > { %2467 = vst.msk [vmem:[%s4350_s25 + $0x8] sm:$0xff] %vm357_vm0, %v2407_v54  ;;  %v1933_v12 = vmul.f32 %v4755_v11, %v4734_v23  ;;  %v1942_v54 = vpack.c.bf16 %v1931_v53, %v1930_v59 }
 0xa9c   : > { %2075 = vmax.xlane.f32.xlu0 %v2071_v18  ;;  %v1943_v33 = vpack.c.bf16 %v1933_v12, %v1932_v15 }
 0xa9d   : > { %2101 = vmax.xlane.f32.xlu1 %v2094_v30 }
 0xaa0   : > { %2095 = vmax.xlane.f32.xlu0 %v2091_v25 }
 0xaa1   : > { %2121 = vmax.xlane.f32.xlu1 %v2114_v32 }
 0xaa4   : > { %2057 = vmax.xlane.f32.xlu0 %v2052_v60 }
 0xaa5   : > { %2077 = vmax.xlane.f32.xlu1 %v2072_v50 }
 0xaa8   : > { %2115 = vmax.xlane.f32.xlu0 %v2111_v1 }
 0xaa9   : > { %2097 = vmax.xlane.f32.xlu1 %v2092_v6 }
 0xaac   : > { %2119 = vmax.xlane.f32.xlu0 %v2113_v27 }
 0xaad   : > { %2117 = vmax.xlane.f32.xlu1 %v2112_v43 }
 0xabe   : > { %2243 = vrot.lane.b32.xlu1 %v1939_v20, %s3009_s13 }
 0xac2   : > { %2241 = vrot.lane.b32.xlu0 %v1938_v13, %s3009_s13  ;;  %2245 = vrot.lane.b32.xlu1 %v1940_v55, %s3009_s13 }
 0xac6   : > { %2247 = vrot.lane.b32.xlu0 %v1941_v51, %s3009_s13  ;;  %2249 = vrot.lane.b32.xlu1 %v1942_v54, %s3009_s13 }
 0xaca   : > { %2251 = vrot.lane.b32.xlu0 %v1943_v33, %s3009_s13 }
 0xb1d   : > { %v2060_v18 = vpop.xlane.xlu0 %2059 }
 0xb1e   : > { %v2056_v30 = vpop.xlane.xlu1 %2055  ;;  %v2065_v53 = vmul.f32 %v2060_v18, %v3392_v19 }
 0xb21   : > { %v2080_v25 = vpop.xlane.xlu0 %2079 }
 0xb22   : > { %v2062_v32 = vpop.xlane.xlu1 %2061  ;;  %v2085_v17 = vmul.f32 %v2080_v25, %v3394_v21 }
 0xb23   : > { %v2066_v43 = vmul.f32 %v2062_v32, %v3392_v19 }
 0xb24   : > { %v2089_v15 = vadd.f32 %v2085_v17, %v2065_v53 }
 0xb25   : > { %v2100_v60 = vpop.xlane.xlu0 %2099 }
 0xb26   : > { %v2082_v50 = vpop.xlane.xlu1 %2081  ;;  %v2105_v13 = vmul.f32 %v2100_v60, %v3396_v28  ;;  %v2063_v60 = vmul.f32 %v2056_v30, %v3392_v19 }
 0xb27   : > { %v2086_v1 = vmul.f32 %v2082_v50, %v3394_v21 }
 0xb29   : > { %v2076_v6 = vpop.xlane.xlu0 %2075  ;;  %v2090_v44 = vadd.f32 %v2086_v1, %v2066_v43 }
 0xb2a   : > { %v2102_v27 = vpop.xlane.xlu1 %2101  ;;  %v2083_v32 = vmul.f32 %v2076_v6, %v3394_v21 }
 0xb2b   : > { %v2106_v41 = vmul.f32 %v2102_v27, %v3396_v28 }
 0xb2d   : > { %v2096_v46 = vpop.xlane.xlu0 %2095  ;;  %v2110_v31 = vadd.f32 %v2106_v41, %v2090_v44 }
 0xb2e   : > { %v2122_v47 = vpop.xlane.xlu1 %2121  ;;  %v2103_v27 = vmul.f32 %v2096_v46, %v3396_v28 }
 0xb2f   : > { %v2126_v49 = vmul.f32 %v2122_v47, %v3398_v38  ;;  %v2087_v47 = vadd.f32 %v2083_v32, %v2063_v60  ;;  %v1945_v60 = vpack.c.bf16 %v1937_v16, %v1936_v52 }
 0xb31   : > { %v2130_v35 = vadd.f32 %v2126_v49, %v2110_v31  ;;  %v2058_v20 = vpop.xlane.xlu0 %2057 }
 0xb32   : > { %v2078_v0 = vpop.xlane.xlu1 %2077  ;;  %v2064_v58 = vmul.f32 %v2058_v20, %v3392_v19  ;;  %v2107_v20 = vadd.f32 %v2103_v27, %v2087_v47 }
 0xb33   : > { %v2134_v24 = vsub.f32 %v4332_v5, %v2130_v35  ;;  %v2084_v2 = vmul.f32 %v2078_v0, %v3394_v21  ;;  %v2109_v5 = vadd.f32 %v2105_v13, %v2089_v15 }
 0xb35   : > { %v2141_v59 = vmul.f32 1.442695, %v2134_v24  ;;  %v2116_v10 = vpop.xlane.xlu0 %2115  ;;  %v2088_v11 = vadd.f32 %v2084_v2, %v2064_v58 }
 0xb36   : > { %v2098_v55 = vpop.xlane.xlu1 %2097  ;;  %v2123_v31 = vmul.f32 %v2116_v10, %v3398_v38 }
 0xb37   : > { %2979 = vpow2.f32 %v2141_v59  ;;  %v2104_v63 = vmul.f32 %v2098_v55, %v3396_v28 }
 0xb38   : > { %v2127_v46 = vadd.f32 %v2123_v31, %v2107_v20 }
 0xb39   : > { %v2120_v12 = vpop.xlane.xlu0 %2119  ;;  %v2108_v33 = vadd.f32 %v2104_v63, %v2088_v11 }
 0xb3a   : > { %v2125_v51 = vmul.f32 %v2120_v12, %v3398_v38  ;;  %v2118_v54 = vpop.xlane.xlu1 %2117  ;;  %v2131_v24 = vsub.f32 %v4326_v22, %v2127_v46 }
 0xb3b   : > { %v2124_v25 = vmul.f32 %v2118_v54, %v3398_v38 }
 0xb3c   : > { %v2129_v50 = vadd.f32 %v2125_v51, %v2109_v5  ;;  %v2135_v2 = vmul.f32 1.442695, %v2131_v24 }
 0xb3d   : > { %v2128_v18 = vadd.f32 %v2124_v25, %v2108_v33  ;;  %v2242_v1 = vpop.permute.xlu0 %2241 }
 0xb3e   : > { %v2133_v43 = vsub.f32 %v4323_v26, %v2129_v50  ;;  %2839 = vmatprep.subr.bf16.mxu1 %v2242_v1  ;;  %v2244_v41 = vpop.permute.xlu1 %2243  ;;  %v1935_v50 = vmul.f32 %v3554_v61, %v4732_v7 }
 0xb3f   : > { %v2132_v44 = vsub.f32 %v4380_v14, %v2128_v18  ;;  %2840 = vmatpush3.bf16.msra.mxu1 %v2242_v1  ;;  %v1934_v18 = vmul.f32 %v3537_v39, %v4733_v4 }
 0xb40   : > { %v2139_v49 = vmul.f32 1.442695, %v2133_v43  ;;  %2841 = vmatprep.subr.bf16.mxu1 %v2244_v41 }
 0xb41   : > { %v4455_v6 = vpop.eup %2979  ;;  %v2137_v35 = vmul.f32 1.442695, %v2132_v44  ;;  %v2248_v0 = vpop.permute.xlu0 %2247  ;;  %v1944_v1 = vpack.c.bf16 %v1935_v50, %v1934_v18 }
 0xb42   : > { %2981 = vpow2.f32 %v2139_v49  ;;  %v2246_v30 = vpop.permute.xlu1 %2245  ;;  %v2146_v26 = vsel %vm771_vm2, %v4455_v6, 0.0  ;;  %v2166_v14 = vsel %vm800_vm3, %v4455_v6, 0.0  ;;  %v2186_v17 = vsel %vm829_vm4, %v4455_v6, 0.0 }
 0xb43   : > { %2153 = vadd.xlane.f32.xlu1 %v2146_v26  ;;  %2842 = vmatpush3.bf16.msra.mxu1 %v2244_v41  ;;  %2983 = vpow2.f32 %v2137_v35  ;;  %v2206_v22 = vsel %vm858_vm5, %v4455_v6, 0.0 }
 0xb44   : > { %2843 = vmatprep.subr.bf16.mxu1 %v2246_v30  ;;  %2985 = vpow2.f32 %v2135_v2 }
 0xb45   : > { %v2252_v13 = vpop.permute.xlu0 %2251 }
 0xb46   : > { %v2250_v59 = vpop.permute.xlu1 %2249 }
 0xb47   : > { %2173 = vadd.xlane.f32.xlu1 %v2166_v14  ;;  %2844 = vmatpush3.bf16.msra.mxu1 %v2246_v30 }
 0xb48   : > { %2845 = vmatprep.subr.bf16.mxu1 %v2248_v0 }
 0xb4b   : > { %2193 = vadd.xlane.f32.xlu1 %v2186_v17  ;;  %2846 = vmatpush3.bf16.msra.mxu1 %v2248_v0 }
 0xb4c   : > { %v4467_v58 = vpop.eup %2981  ;;  %2847 = vmatprep.subr.bf16.mxu1 %v2250_v59 }
 0xb4d   : > { %v2145_v10 = vsel %vm771_vm2, %v4467_v58, 0.0  ;;  %v4475_v53 = vpop.eup %2983  ;;  %v2165_v55 = vsel %vm800_vm3, %v4467_v58, 0.0  ;;  %v2185_v15 = vsel %vm829_vm4, %v4467_v58, 0.0  ;;  %v2205_v12 = vsel %vm858_vm5, %v4467_v58, 0.0 }
 0xb4e   : > { %2151 = vadd.xlane.f32.xlu0 %v2145_v10  ;;  %v2144_v63 = vsel %vm771_vm2, %v4475_v53, 0.0  ;;  %v2164_v11 = vsel %vm800_vm3, %v4475_v53, 0.0  ;;  %v4492_v5 = vpop.eup %2985  ;;  %v2184_v51 = vsel %vm829_vm4, %v4475_v53, 0.0  ;;  %v2204_v33 = vsel %vm858_vm5, %v4475_v53, 0.0 }
 0xb4f   : > { %2213 = vadd.xlane.f32.xlu1 %v2206_v22  ;;  %2848 = vmatpush3.bf16.msra.mxu1 %v2250_v59  ;;  %v2143_v54 = vsel %vm771_vm2, %v4492_v5, 0.0  ;;  %v2163_v25 = vsel %vm800_vm3, %v4492_v5, 0.0  ;;  %v2183_v32 = vsel %vm829_vm4, %v4492_v5, 0.0  ;;  %v2203_v3 = vsel %vm858_vm5, %v4492_v5, 0.0 }
 0xb50   : > { %2849 = vmatprep.subr.bf16.mxu1 %v2252_v13 }
 0xb52   : > { %2171 = vadd.xlane.f32.xlu0 %v2165_v55 }
 0xb53   : > { %2149 = vadd.xlane.f32.xlu1 %v2144_v63  ;;  %2850 = vmatpush3.bf16.msra.mxu1 %v2252_v13 }
 0xb56   : > { %2191 = vadd.xlane.f32.xlu0 %v2185_v15 }
 0xb57   : > { %2169 = vadd.xlane.f32.xlu1 %v2164_v11 }
 0xb5a   : > { %2211 = vadd.xlane.f32.xlu0 %v2205_v12 }
 0xb5b   : > { %2189 = vadd.xlane.f32.xlu1 %v2184_v51 }
 0xb5e   : > { %2147 = vadd.xlane.f32.xlu0 %v2143_v54 }
 0xb5f   : > { %2209 = vadd.xlane.f32.xlu1 %v2204_v33 }
 0xb62   : > { %2167 = vadd.xlane.f32.xlu0 %v2163_v25 }
 0xb66   : > { %2187 = vadd.xlane.f32.xlu0 %v2183_v32 }
 0xb6a   : > { %2207 = vadd.xlane.f32.xlu0 %v2203_v3 }
 0xb70   : > { %2253 = vrot.lane.b32.xlu1 %v1944_v1, %s3009_s13 }
 0xb80   : > { %2255 = vrot.lane.b32.xlu0 %v1945_v60, %s3009_s13 }
 0xbd0   : > { %v2154_v9 = vpop.xlane.xlu1 %2153 }
 0xbd1   : > { %v2158_v0 = vmul.f32 %v2154_v9, %v3392_v19 }
 0xbd4   : > { %v2174_v27 = vpop.xlane.xlu1 %2173 }
 0xbd5   : > { %v2178_v48 = vmul.f32 %v2174_v27, %v3394_v21 }
 0xbd7   : > { %v2182_v13 = vadd.f32 %v2178_v48, %v2158_v0 }
 0xbd8   : > { %v2194_v43 = vpop.xlane.xlu1 %2193 }
 0xbd9   : > { %v2198_v24 = vmul.f32 %v2194_v43, %v3396_v28 }
 0xbdb   : > { %v2152_v61 = vpop.xlane.xlu0 %2151  ;;  %v2202_v54 = vadd.f32 %v2198_v24, %v2182_v13 }
 0xbdc   : > { %v2214_v7 = vpop.xlane.xlu1 %2213  ;;  %v2157_v57 = vmul.f32 %v2152_v61, %v3392_v19 }
 0xbdd   : > { %v2218_v55 = vmul.f32 %v2214_v7, %v3398_v38 }
 0xbdf   : > { %v2172_v41 = vpop.xlane.xlu0 %2171  ;;  %v2222_v3 = vadd.f32 %v2218_v55, %v2202_v54 }
 0xbe0   : > { %v2150_v44 = vpop.xlane.xlu1 %2149  ;;  %v2177_v23 = vmul.f32 %v2172_v41, %v3394_v21  ;;  %v4756_v41 = vld [vmem:[#allocation18_spill] sm:$0xff] }
 0xbe1   : > { %v2156_v26 = vmul.f32 %v2150_v44, %v3392_v19  ;;  %v4757_v44 = vld [vmem:[#allocation16_spill] sm:$0xff] }
 0xbe2   : > { %v2181_v17 = vadd.f32 %v2177_v23, %v2157_v57 }
 0xbe3   : > { %v2192_v39 = vpop.xlane.xlu0 %2191 }
 0xbe4   : > { %v2170_v4 = vpop.xlane.xlu1 %2169  ;;  %v2197_v20 = vmul.f32 %v2192_v39, %v3396_v28  ;;  %v4758_v39 = vpack.c.bf16 %v4756_v41, %v4757_v44 }
 0xbe5   : > { %v2176_v36 = vmul.f32 %v2170_v4, %v3394_v21 }
 0xbe6   : > { %v2201_v63 = vadd.f32 %v2197_v20, %v2181_v17 }
 0xbe7   : > { %v2212_v47 = vpop.xlane.xlu0 %2211  ;;  %v2180_v2 = vadd.f32 %v2176_v36, %v2156_v26 }
 0xbe8   : > { %v2190_v31 = vpop.xlane.xlu1 %2189  ;;  %v2217_v59 = vmul.f32 %v2212_v47, %v3398_v38 }
 0xbe9   : > { %v2196_v46 = vmul.f32 %v2190_v31, %v3396_v28 }
 0xbea   : > { %v2221_v33 = vadd.f32 %v2217_v59, %v2201_v63 }
 0xbeb   : > { %v2148_v49 = vpop.xlane.xlu0 %2147  ;;  %v2200_v11 = vadd.f32 %v2196_v46, %v2180_v2 }
 0xbec   : > { %v2210_v35 = vpop.xlane.xlu1 %2209  ;;  %v2155_v12 = vmul.f32 %v2148_v49, %v3392_v19  ;;  %2987 = vrcp.f32 %v2221_v33 }
 0xbed   : > { %v2216_v10 = vmul.f32 %v2210_v35, %v3398_v38 }
 0xbef   : > { %v2168_v30 = vpop.xlane.xlu0 %2167  ;;  %v2220_v25 = vadd.f32 %v2216_v10, %v2200_v11 }
 0xbf0   : > { %v2254_v14 = vpop.permute.xlu1 %2253  ;;  %v2175_v22 = vmul.f32 %v2168_v30, %v3394_v21 }
 0xbf1   : > { %2851 = vmatprep.subr.bf16.mxu1 %v2254_v14  ;;  %2989 = vrcp.f32 %v2220_v25 }
 0xbf2   : > { %2852 = vmatpush3.bf16.msra.mxu1 %v2254_v14  ;;  %v2179_v32 = vadd.f32 %v2175_v22, %v2155_v12  ;;  %2991 = vrcp.f32 %v2222_v3 }
 0xbf3   : > { %v2188_v15 = vpop.xlane.xlu0 %2187 }
 0xbf4   : > { %v2195_v51 = vmul.f32 %v2188_v15, %v3396_v28 }
 0xbf6   : > { %v2199_v18 = vadd.f32 %v2195_v51, %v2179_v32  ;;  %v2988_v19 = vpop.eup %2987 }
 0xbf7   : > { %v2208_v50 = vpop.xlane.xlu0 %2207  ;;  %v2229_v9 = vmul.f32 %v2988_v19, %v4467_v58  ;;  %v4759_v58 = vld [vmem:[#allocation17_spill] sm:$0xff] }
 0xbf8   : > { %v2215_v21 = vmul.f32 %v2208_v50, %v3398_v38 }
 0xbfa   : > { %v2219_v1 = vadd.f32 %v2215_v21, %v2199_v18 }
 0xbfb   : > { %v2256_v16 = vpop.permute.xlu0 %2255  ;;  %v2990_v28 = vpop.eup %2989 }
 0xbfc   : > { %2993 = vrcp.f32 %v2219_v1  ;;  %2853 = vmatprep.subr.bf16.mxu1 %v2256_v16  ;;  %v2992_v52 = vpop.eup %2991  ;;  %v2228_v38 = vmul.f32 %v2990_v28, %v4475_v53 }
 0xbfd   : > { %2854 = vmatpush3.bf16.msra.mxu1 %v2256_v16  ;;  %v2230_v43 = vmul.f32 %v2992_v52, %v4455_v6 }
 0xbfe   : > { %2879 = vmatprep.subr.bf16.mxu1 %v4287_v29 }
 0xbff   : > { %v2232_v7 = vpack.c.bf16 %v2230_v43, %v2229_v9 }
 0xc06   : > { %v2994_v60 = vpop.eup %2993 }
 0xc07   : > { %v2227_v27 = vmul.f32 %v2994_v60, %v4492_v5  ;;  %v4760_v5 = vld [vmem:[#allocation15_spill] sm:$0xff] }
 0xc08   : > { %v4761_v53 = vpack.c.bf16 %v4759_v58, %v4760_v5 }
 0xc09   : > { %v2231_v61 = vpack.c.bf16 %v2228_v38, %v2227_v27 }
 0xc0b   : > { %2855 = vmatprep.mubr.bf16.mxu1 %v2231_v61 }
 0xc0c   : > { %2856 = vmatmul.mubr.bf16.vlgmr.msra.gmra.mrb[12].mxu1 %v2232_v7 }
 0xc0d   : > { %2881 = vmatpush3.bf16.msra.mxu1 %v4287_v29  ;;  %2867 = vmatprep.mubr.msk.bf16.mxu1 %vm357_vm0, %v4758_v39 }
 0xc0e   : > { %2880 = vmatprep.subr.bf16.mxu1 %v4296_v62 }
 0xc11   : > { %2882 = vmatpush3.bf16.msra.mxu1 %v4296_v62 }
 0xc14   : > { %2868 = vmatmul.mubr.msk.bf16.vlgmr.msra.gmra.mrb[16].mxu1 %vm357_vm0, %v4761_v53 }
 0xc15   : > { %2871 = vmatprep.mubr.msk.bf16.mxu1 %vm357_vm0, %v2318_v45 }
 0xc1c   : > { %2872 = vmatmul.mubr.msk.bf16.gmra.mrb[20].mxu1 %vm357_vm0, %v2319_v8 }
 0xcdf   : > { %v2857_v29 = vpop.f32.mrb[12].mxu1 }
 0xce0   : > { %v2299_v6 = vpop.f32.mrb[13].mxu1 }
 0xce1   : > { %v2858_v62 = vpop.f32.mrb[14].mxu1 }
 0xce2   : > { %v2321_v4 = vpack.c.bf16 %v2858_v62, %v2857_v29  ;;  %v2302_v47 = vpop.f32.mrb[15].mxu1 }
 0xce3   : > { %v2320_v31 = vpack.c.bf16 %v2302_v47, %v2299_v6 }
 0xce5   : > { %2875 = vmatprep.mubr.msk.bf16.mxu1 %vm357_vm0, %v2320_v31 }
 0xce6   : > { %2876 = vmatmul.mubr.msk.bf16.gmra.mrb[24].mxu1 %vm357_vm0, %v2321_v4 }
 0xce7   : > { %v2869_v42 = vpop.f32.mrb[16].mxu1 }
 0xce8   : > { %v2428_v37 = vadd.f32 %v2869_v42, %v4340_v40  ;;  %v2419_v56 = vpop.f32.mrb[17].mxu1 }
 0xce9   : > { %v2420_v34 = vadd.f32 %v4340_v40, %v2419_v56  ;;  %v2870_v8 = vpop.f32.mrb[18].mxu1 }
 0xcea   : > { %2472 = vst.msk [vmem:[%s4350_s25 + $0x30] sm:$0xff] %vm357_vm0, %v2428_v37  ;;  %v2431_v45 = vadd.f32 %v2870_v8, %v4340_v40  ;;  %v2422_v49 = vpop.f32.mrb[19].mxu1 }
 0xceb   : > { %2470 = vst.msk [vmem:[%s4350_s25 + $0x20] sm:$0xff] %vm357_vm0, %v2420_v34  ;;  %v2423_v35 = vadd.f32 %v4340_v40, %v2422_v49 }
 0xcec   : > { %2473 = vst.msk [vmem:[%s4350_s25 + $0x38] sm:$0xff] %vm357_vm0, %v2431_v45 }
 0xced   : > { %2471 = vst.msk [vmem:[%s4350_s25 + $0x28] sm:$0xff] %vm357_vm0, %v2423_v35 }
 0xcef   : > { %v2873_v23 = vpop.f32.mrb[20].mxu1 }
 0xcf0   : > { %v2444_v36 = vadd.f32 %v2873_v23, %v4340_v40  ;;  %v2435_v48 = vpop.f32.mrb[21].mxu1 }
 0xcf1   : > { %v2436_v57 = vadd.f32 %v4340_v40, %v2435_v48  ;;  %v2874_v20 = vpop.f32.mrb[22].mxu1 }
 0xcf2   : > { %2476 = vst.msk [vmem:[%s4350_s25 + $0x50] sm:$0xff] %vm357_vm0, %v2444_v36  ;;  %v2447_v30 = vadd.f32 %v2874_v20, %v4340_v40  ;;  %v2438_v26 = vpop.f32.mrb[23].mxu1 }
 0xcf3   : > { %2474 = vst.msk [vmem:[%s4350_s25 + $0x40] sm:$0xff] %vm357_vm0, %v2436_v57  ;;  %v2439_v46 = vadd.f32 %v4340_v40, %v2438_v26 }
 0xcf4   : > { %2477 = vst.msk [vmem:[%s4350_s25 + $0x58] sm:$0xff] %vm357_vm0, %v2447_v30 }
 0xcf5   : > { %2475 = vst.msk [vmem:[%s4350_s25 + $0x48] sm:$0xff] %vm357_vm0, %v2439_v46 }
 0xdb9   : > { %v2877_v14 = vpop.f32.mrb[24].mxu1 }
 0xdba   : > { %v2460_v0 = vadd.f32 %v2877_v14, %v4340_v40  ;;  %v2451_v24 = vpop.f32.mrb[25].mxu1 }
 0xdbb   : > { %v2452_v17 = vadd.f32 %v4340_v40, %v2451_v24  ;;  %v2878_v59 = vpop.f32.mrb[26].mxu1 }
 0xdbc   : > { %2480 = vst.msk [vmem:[%s4350_s25 + $0x70] sm:$0xff] %vm357_vm0, %v2460_v0  ;;  %v2463_v2 = vadd.f32 %v2878_v59, %v4340_v40  ;;  %v2454_v10 = vpop.f32.mrb[27].mxu1 }
 0xdbd   : > { %2478 = vst.msk [vmem:[%s4350_s25 + $0x60] sm:$0xff] %vm357_vm0, %v2452_v17  ;;  %v2455_v22 = vadd.f32 %v4340_v40, %v2454_v10 }
 0xdbe   : > { %2481 = vst.msk [vmem:[%s4350_s25 + $0x78] sm:$0xff] %vm357_vm0, %v2463_v2 }
 0xdbf   : > { %2479 = vst.msk [vmem:[%s4350_s25 + $0x68] sm:$0xff] %vm357_vm0, %v2455_v22 }
 0xdc0 PF: > { %s18_s27 = sadd.s32 1, %s3005_s27  }
 0xdc1   : > { %p15_p4 = scmp.ge.s32.totalorder %s18_s27, 4  }
 0xdc3   :  { %17 = sbr.rel (!%p15_p4) target bundleno = 1 (0x1), region = 82 }

</bundles_post_ra>
